<compile_context>
chip_gen: v7x
topology: tpu7x:2x2x1
jax: 0.10.0
libtpu: 0.0.40
codegen_flags: <defaults>
</compile_context>

<pallas_src>
import math

import jax
import jax.numpy as jnp
from jax.experimental import pallas as pl
from jax.experimental.pallas import tpu as pltpu


# ----------------------------- model config ---------------------------------
B = 2            # batch
S_T = 8          # target (decoder) sequence length
S_S = 8          # source (encoder) sequence length
D = 32           # d_model
H = 4            # heads
DK = D // H      # head dim
DFF = 64         # feed-forward hidden
N_LAYERS = 2     # decoder blocks
EPS = 1e-6

BT = B * S_T     # flattened target tokens
BS = B * S_S     # flattened source tokens


# ------------------------------ kernel helpers -------------------------------
def _layer_norm(t, alpha, bias):
    # Matches torch LayerNormalization: scalar alpha/bias, unbiased std (n-1 divisor),
    # normalization by (std + eps).
    mean = jnp.mean(t, axis=-1, keepdims=True)
    var = jnp.sum((t - mean) ** 2, axis=-1, keepdims=True) * (1.0 / (t.shape[-1] - 1))
    return alpha * (t - mean) / (jnp.sqrt(var) + EPS) + bias


def _softmax(s):
    m = jnp.max(s, axis=-1, keepdims=True)
    e = jnp.exp(s - m)
    return e * pl.reciprocal(jnp.sum(e, axis=-1, keepdims=True), approx=True)


def _attention(q2, k2, v2, bias, wo, bo, s_q, s_kv):
    """q2: (B*s_q, D), k2/v2: (B*s_kv, D), bias broadcastable to (B, s_q, s_kv)."""
    inv_sqrt_dk = 1.0 / math.sqrt(DK)
    # Layout-preserving reshapes (split sublane dim at a multiple of 8).
    q3 = q2.reshape(B, s_q, D)
    k3 = k2.reshape(B, s_kv, D)
    v3 = v2.reshape(B, s_kv, D)
    heads = []
    for h in range(H):                      # static loop; each step is batch-batched
        lo = h * DK
        qh = q3[:, :, lo:lo + DK]
        kh = k3[:, :, lo:lo + DK]
        vh = v3[:, :, lo:lo + DK]
        s = jnp.einsum("bqd,bkd->bqk", qh, kh,
                       preferred_element_type=jnp.float32) * inv_sqrt_dk
        p = _softmax(s + bias)
        o = jnp.einsum("bqk,bkd->bqd", p, vh, preferred_element_type=jnp.float32)
        heads.append(o.reshape(B * s_q, DK))
    attn = jnp.concatenate(heads, axis=-1)                      # (B*s_q, D)
    return jnp.dot(attn, wo, preferred_element_type=jnp.float32) + bo


# --------------------------------- kernel ------------------------------------
def decoder_kernel(
    x_ref, enc_ref, src_mask_ref, tgt_mask_ref,
    sa_wqkv_ref, sa_bqkv_ref, sa_wo_ref, sa_bo_ref,
    ca_wq_ref, ca_bq_ref, ca_wkv_ref, ca_bkv_ref, ca_wo_ref, ca_bo_ref,
    ff_w1_ref, ff_b1_ref, ff_w2_ref, ff_b2_ref,
    ln_ref,
    o_ref,
):
    neg = jnp.float32(-1e9)
    zero = jnp.float32(0.0)
    # Masks -> additive biases, computed once and reused across all layers/heads.
    tgt_bias = jnp.where(tgt_mask_ref[...] == 0.0, neg, zero)   # (B, S_T, S_T)
    src_bias = jnp.where(src_mask_ref[...] == 0.0, neg, zero)   # (B, 1, S_S)

    x = x_ref[...]                                              # (BT, D)
    enc = enc_ref[...]                                          # (BS, D)

    for l in range(N_LAYERS):
        # ---- residual 0: self-attention (pre-norm, tgt_mask) ----
        nx = _layer_norm(x, ln_ref[6 * l + 0], ln_ref[6 * l + 1])
        qkv = jnp.dot(nx, sa_wqkv_ref[l],
                      preferred_element_type=jnp.float32) + sa_bqkv_ref[l]
        x = x + _attention(qkv[:, 0:D], qkv[:, D:2 * D], qkv[:, 2 * D:3 * D],
                           tgt_bias, sa_wo_ref[l], sa_bo_ref[l], S_T, S_T)

        # ---- residual 1: cross-attention (pre-norm q; raw encoder k/v; src_mask) ----
        nx = _layer_norm(x, ln_ref[6 * l + 2], ln_ref[6 * l + 3])
        q = jnp.dot(nx, ca_wq_ref[l],
                    preferred_element_type=jnp.float32) + ca_bq_ref[l]
        kv = jnp.dot(enc, ca_wkv_ref[l],
                     preferred_element_type=jnp.float32) + ca_bkv_ref[l]
        x = x + _attention(q, kv[:, 0:D], kv[:, D:2 * D],
                           src_bias, ca_wo_ref[l], ca_bo_ref[l], S_T, S_S)

        # ---- residual 2: feed-forward (pre-norm) ----
        nx = _layer_norm(x, ln_ref[6 * l + 4], ln_ref[6 * l + 5])
        h1 = jnp.maximum(
            jnp.dot(nx, ff_w1_ref[l], preferred_element_type=jnp.float32)
            + ff_b1_ref[l], 0.0)
        x = x + jnp.dot(h1, ff_w2_ref[l],
                        preferred_element_type=jnp.float32) + ff_b2_ref[l]

    # ---- final LayerNormalization ----
    o_ref[...] = _layer_norm(
        x, ln_ref[6 * N_LAYERS], ln_ref[6 * N_LAYERS + 1]).astype(o_ref.dtype)


# -------------------------------- wrapper -------------------------------------
def decoder_forward(x, enc, src_mask, tgt_mask, layers, final_ln):
    assert len(layers) == N_LAYERS

    def stack(fn):
        return jnp.stack([fn(p) for p in layers])

    # Pre-transpose every Linear weight to (in, out); fuse Q/K/V and cross-K/V.
    sa_wqkv = stack(lambda p: jnp.concatenate(
        [p["sa_wq"].T, p["sa_wk"].T, p["sa_wv"].T], axis=1))         # (L, D, 3D)
    sa_bqkv = stack(lambda p: jnp.concatenate(
        [p["sa_bq"], p["sa_bk"], p["sa_bv"]])[None, :])              # (L, 1, 3D)
    sa_wo = stack(lambda p: p["sa_wo"].T)                            # (L, D, D)
    sa_bo = stack(lambda p: p["sa_bo"][None, :])                     # (L, 1, D)

    ca_wq = stack(lambda p: p["ca_wq"].T)                            # (L, D, D)
    ca_bq = stack(lambda p: p["ca_bq"][None, :])                     # (L, 1, D)
    ca_wkv = stack(lambda p: jnp.concatenate(
        [p["ca_wk"].T, p["ca_wv"].T], axis=1))                       # (L, D, 2D)
    ca_bkv = stack(lambda p: jnp.concatenate(
        [p["ca_bk"], p["ca_bv"]])[None, :])                          # (L, 1, 2D)
    ca_wo = stack(lambda p: p["ca_wo"].T)                            # (L, D, D)
    ca_bo = stack(lambda p: p["ca_bo"][None, :])                     # (L, 1, D)

    ff_w1 = stack(lambda p: p["ff_w1"].T)                            # (L, D, DFF)
    ff_b1 = stack(lambda p: p["ff_b1"][None, :])                     # (L, 1, DFF)
    ff_w2 = stack(lambda p: p["ff_w2"].T)                            # (L, DFF, D)
    ff_b2 = stack(lambda p: p["ff_b2"][None, :])                     # (L, 1, D)

    # All LayerNorm scalars in one small 1-D SMEM array: [6 per layer] + final (a, b).
    ln_flat = jnp.stack(
        [s for p in layers for s in p["ln"]] + list(final_ln)
    ).astype(jnp.float32)                                            # (6L + 2,)

    vmem = pl.BlockSpec(memory_space=pltpu.MemorySpace.VMEM)
    smem = pl.BlockSpec(memory_space=pltpu.MemorySpace.SMEM)

    out = pl.pallas_call(
        decoder_kernel,
        out_shape=jax.ShapeDtypeStruct((BT, D), x.dtype),
        in_specs=[vmem] * 18 + [smem],
        out_specs=vmem,
    )(
        x.reshape(BT, D), enc.reshape(BS, D), src_mask, tgt_mask,
        sa_wqkv, sa_bqkv, sa_wo, sa_bo,
        ca_wq, ca_bq, ca_wkv, ca_bkv, ca_wo, ca_bo,
        ff_w1, ff_b1, ff_w2, ff_b2,
        ln_flat,
    )
    return out.reshape(B, S_T, D)


# --------------------------- pure-JAX reference ------------------------------
def reference_decoder(x, enc, src_mask, tgt_mask, layers, final_ln):
    def ln(t, a, b):
        mean = t.mean(-1, keepdims=True)
        var = ((t - mean) ** 2).sum(-1, keepdims=True) / (t.shape[-1] - 1)
        return a * (t - mean) / (jnp.sqrt(var) + EPS) + b

    def mha(q_in, k_in, v_in, mask, wq, bq, wk, bk, wv, bv, wo, bo):
        q = q_in @ wq.T + bq
        k = k_in @ wk.T + bk
        v = v_in @ wv.T + bv

        def split(t):
            b_, s_, _ = t.shape
            return t.reshape(b_, s_, H, DK).transpose(0, 2, 1, 3)

        qh, kh, vh = split(q), split(k), split(v)
        scores = jnp.einsum("bhqd,bhkd->bhqk", qh, kh) / math.sqrt(DK)
        scores = jnp.where(mask[:, None] == 0, -1e9, scores)
        p = jax.nn.softmax(scores, axis=-1)
        o = jnp.einsum("bhqk,bhkd->bhqd", p, vh)
        o = o.transpose(0, 2, 1, 3).reshape(q_in.shape[0], q_in.shape[1], D)
        return o @ wo.T + bo

    for p in layers:
        nx = ln(x, p["ln"][0], p["ln"][1])
        x = x + mha(nx, nx, nx, tgt_mask,
                    p["sa_wq"], p["sa_bq"], p["sa_wk"], p["sa_bk"],
                    p["sa_wv"], p["sa_bv"], p["sa_wo"], p["sa_bo"])
        nx = ln(x, p["ln"][2], p["ln"][3])
        x = x + mha(nx, enc, enc, src_mask,
                    p["ca_wq"], p["ca_bq"], p["ca_wk"], p["ca_bk"],
                    p["ca_wv"], p["ca_bv"], p["ca_wo"], p["ca_bo"])
        nx = ln(x, p["ln"][4], p["ln"][5])
        x = x + (jnp.maximum(nx @ p["ff_w1"].T + p["ff_b1"], 0.0) @ p["ff_w2"].T
                 + p["ff_b2"])
    return ln(x, final_ln[0], final_ln[1])


# --------------------------------- params ------------------------------------
def make_params(key):
    def linear(k, fan_out, fan_in):
        bound = 1.0 / math.sqrt(fan_in)
        k1, k2 = jax.random.split(k)
        w = jax.random.uniform(k1, (fan_out, fan_in), jnp.float32, -bound, bound)
        b = jax.random.uniform(k2, (fan_out,), jnp.float32, -bound, bound)
        return w, b

    def norm_scalars(k):
        k1, k2 = jax.random.split(k)
        return (jax.random.uniform(k1, (), jnp.float32, 0.8, 1.2),
                jax.random.uniform(k2, (), jnp.float32, -0.1, 0.1))

    layers = []
    keys = jax.random.split(key, N_LAYERS + 1)
    for l in range(N_LAYERS):
        ks = jax.random.split(keys[l], 16)
        sa_wq, sa_bq = linear(ks[0], D, D)
        sa_wk, sa_bk = linear(ks[1], D, D)
        sa_wv, sa_bv = linear(ks[2], D, D)
        sa_wo, sa_bo = linear(ks[3], D, D)
        ca_wq, ca_bq = linear(ks[4], D, D)
        ca_wk, ca_bk = linear(ks[5], D, D)
        ca_wv, ca_bv = linear(ks[6], D, D)
        ca_wo, ca_bo = linear(ks[7], D, D)
        ff_w1, ff_b1 = linear(ks[8], DFF, D)
        ff_w2, ff_b2 = linear(ks[9], D, DFF)
        ln = norm_scalars(ks[10]) + norm_scalars(ks[11]) + norm_scalars(ks[12])
        layers.append(dict(
            sa_wq=sa_wq, sa_bq=sa_bq, sa_wk=sa_wk, sa_bk=sa_bk,
            sa_wv=sa_wv, sa_bv=sa_bv, sa_wo=sa_wo, sa_bo=sa_bo,
            ca_wq=ca_wq, ca_bq=ca_bq, ca_wk=ca_wk, ca_bk=ca_bk,
            ca_wv=ca_wv, ca_bv=ca_bv, ca_wo=ca_wo, ca_bo=ca_bo,
            ff_w1=ff_w1, ff_b1=ff_b1, ff_w2=ff_w2, ff_b2=ff_b2,
            ln=ln,
        ))
    final_ln = norm_scalars(keys[N_LAYERS])
    return layers, final_ln


# ---------------------------------- main --------------------------------------
if __name__ == "__main__":
    key = jax.random.PRNGKey(0)
    kx, ke, kp = jax.random.split(key, 3)

    x = jax.random.normal(kx, (B, S_T, D), jnp.float32)
    enc = jax.random.normal(ke, (B, S_S, D), jnp.float32)

    # Causal target mask (B, S_T, S_T), 1 = keep.
    causal = jnp.tril(jnp.ones((S_T, S_T), jnp.float32))
    tgt_mask = jnp.broadcast_to(causal, (B, S_T, S_T))
    # Source padding mask (B, 1, S_S): batch 1 has its last two positions masked.
    src_mask = jnp.ones((B, 1, S_S), jnp.float32)
    src_mask = src_mask.at[1, 0, S_S - 2:].set(0.0)

    layers, final_ln = make_params(kp)

    out = decoder_forward(x, enc, src_mask, tgt_mask, layers, final_ln)
    out = jax.block_until_ready(out)

    ref = reference_decoder(x, enc, src_mask, tgt_mask, layers, final_ln)
    assert out.shape == (B, S_T, D)
    err = jnp.max(jnp.abs(out - ref))
    assert jnp.allclose(out, ref, rtol=5e-3, atol=5e-3), f"max err {err}"
    print("KERNEL_OK")
</pallas_src>

<mosaic_0001>
module attributes {stable_mosaic.version = 11 : i64} {
  func.func @decoder_kernel(%arg0: memref<16x32xf32, #tpu.memory_space<vmem>>, %arg1: memref<16x32xf32, #tpu.memory_space<vmem>>, %arg2: memref<2x1x8xf32, #tpu.memory_space<vmem>>, %arg3: memref<2x8x8xf32, #tpu.memory_space<vmem>>, %arg4: memref<2x32x96xf32, #tpu.memory_space<vmem>>, %arg5: memref<2x1x96xf32, #tpu.memory_space<vmem>>, %arg6: memref<2x32x32xf32, #tpu.memory_space<vmem>>, %arg7: memref<2x1x32xf32, #tpu.memory_space<vmem>>, %arg8: memref<2x32x32xf32, #tpu.memory_space<vmem>>, %arg9: memref<2x1x32xf32, #tpu.memory_space<vmem>>, %arg10: memref<2x32x64xf32, #tpu.memory_space<vmem>>, %arg11: memref<2x1x64xf32, #tpu.memory_space<vmem>>, %arg12: memref<2x32x32xf32, #tpu.memory_space<vmem>>, %arg13: memref<2x1x32xf32, #tpu.memory_space<vmem>>, %arg14: memref<2x32x64xf32, #tpu.memory_space<vmem>>, %arg15: memref<2x1x64xf32, #tpu.memory_space<vmem>>, %arg16: memref<2x64x32xf32, #tpu.memory_space<vmem>>, %arg17: memref<2x1x32xf32, #tpu.memory_space<vmem>>, %arg18: memref<14xf32, #tpu.memory_space<smem>>, %arg19: memref<16x32xf32, #tpu.memory_space<vmem>>) attributes {dimension_semantics = [], scalar_prefetch = 0 : i64, scratch_operands = 0 : i64, tpu.core_type = #tpu.core_type<tc>} {
    %c0 = arith.constant 0 : index
    %c0_0 = arith.constant 0 : index
    %c0_1 = arith.constant 0 : index
    %0 = vector.load %arg3[%c0, %c0_0, %c0_1] : memref<2x8x8xf32, #tpu.memory_space<vmem>>, vector<2x8x8xf32>
    %cst = arith.constant 0.000000e+00 : f32
    %1 = vector.broadcast %cst : f32 to vector<2x8x8xf32>
    %2 = arith.cmpf oeq, %0, %1 : vector<2x8x8xf32>
    %cst_2 = arith.constant -1.000000e+09 : f32
    %cst_3 = arith.constant 0.000000e+00 : f32
    %3 = vector.broadcast %cst_2 : f32 to vector<2x8x8xf32>
    %4 = vector.broadcast %cst_3 : f32 to vector<2x8x8xf32>
    %5 = arith.select %2, %3, %4 : vector<2x8x8xi1>, vector<2x8x8xf32>
    %c0_4 = arith.constant 0 : index
    %c0_5 = arith.constant 0 : index
    %c0_6 = arith.constant 0 : index
    %6 = vector.load %arg2[%c0_4, %c0_5, %c0_6] : memref<2x1x8xf32, #tpu.memory_space<vmem>>, vector<2x1x8xf32>
    %cst_7 = arith.constant 0.000000e+00 : f32
    %7 = vector.broadcast %cst_7 : f32 to vector<2x1x8xf32>
    %8 = arith.cmpf oeq, %6, %7 : vector<2x1x8xf32>
    %cst_8 = arith.constant -1.000000e+09 : f32
    %cst_9 = arith.constant 0.000000e+00 : f32
    %9 = vector.broadcast %cst_8 : f32 to vector<2x1x8xf32>
    %10 = vector.broadcast %cst_9 : f32 to vector<2x1x8xf32>
    %11 = arith.select %8, %9, %10 : vector<2x1x8xi1>, vector<2x1x8xf32>
    %c0_10 = arith.constant 0 : index
    %c0_11 = arith.constant 0 : index
    %12 = vector.load %arg0[%c0_10, %c0_11] : memref<16x32xf32, #tpu.memory_space<vmem>>, vector<16x32xf32>
    %c0_12 = arith.constant 0 : index
    %c0_13 = arith.constant 0 : index
    %13 = vector.load %arg1[%c0_12, %c0_13] : memref<16x32xf32, #tpu.memory_space<vmem>>, vector<16x32xf32>
    %c0_14 = arith.constant 0 : index
    %14 = memref.load %arg18[%c0_14] : memref<14xf32, #tpu.memory_space<smem>>
    %c1 = arith.constant 1 : index
    %15 = memref.load %arg18[%c1] : memref<14xf32, #tpu.memory_space<smem>>
    %cst_15 = arith.constant dense<0.000000e+00> : vector<16xf32>
    %16 = vector.multi_reduction <add>, %12, %cst_15 [1] : vector<16x32xf32> to vector<16xf32>
    %17 = vector.shape_cast %16 : vector<16xf32> to vector<16x1xf32>
    %cst_16 = arith.constant 3.200000e+01 : f32
    %18 = vector.broadcast %cst_16 : f32 to vector<16x1xf32>
    %19 = arith.divf %17, %18 : vector<16x1xf32>
    %20 = vector.broadcast %19 : vector<16x1xf32> to vector<16x32xf32>
    %21 = arith.subf %12, %20 : vector<16x32xf32>
    %22 = arith.mulf %21, %21 : vector<16x32xf32>
    %cst_17 = arith.constant dense<0.000000e+00> : vector<16xf32>
    %23 = vector.multi_reduction <add>, %22, %cst_17 [1] : vector<16x32xf32> to vector<16xf32>
    %24 = vector.shape_cast %23 : vector<16xf32> to vector<16x1xf32>
    %cst_18 = arith.constant 0.0322580636 : f32
    %25 = vector.broadcast %cst_18 : f32 to vector<16x1xf32>
    %26 = arith.mulf %24, %25 : vector<16x1xf32>
    %27 = vector.broadcast %19 : vector<16x1xf32> to vector<16x32xf32>
    %28 = arith.subf %12, %27 : vector<16x32xf32>
    %29 = vector.broadcast %14 : f32 to vector<16x32xf32>
    %30 = arith.mulf %29, %28 : vector<16x32xf32>
    %31 = math.sqrt %26 : vector<16x1xf32>
    %cst_19 = arith.constant 9.99999997E-7 : f32
    %32 = vector.broadcast %cst_19 : f32 to vector<16x1xf32>
    %33 = arith.addf %31, %32 : vector<16x1xf32>
    %34 = vector.broadcast %33 : vector<16x1xf32> to vector<16x32xf32>
    %35 = arith.divf %30, %34 : vector<16x32xf32>
    %36 = vector.broadcast %15 : f32 to vector<16x32xf32>
    %37 = arith.addf %35, %36 : vector<16x32xf32>
    %c0_20 = arith.constant 0 : index
    %c0_21 = arith.constant 0 : index
    %c0_22 = arith.constant 0 : index
    %38 = vector.load %arg4[%c0_20, %c0_21, %c0_22] : memref<2x32x96xf32, #tpu.memory_space<vmem>>, vector<1x32x96xf32>
    %39 = vector.shape_cast %38 : vector<1x32x96xf32> to vector<32x96xf32>
    %cst_23 = arith.constant dense<0.000000e+00> : vector<16x96xf32>
    %40 = tpu.matmul %37, %39, %cst_23 {dimension_numbers = #tpu.dot_dimension_numbers<[1], [0], [0], [1], [0, 0, 1, 1], [], []>} : vector<16x32xf32>, vector<32x96xf32>, vector<16x96xf32> -> vector<16x96xf32>
    %c0_24 = arith.constant 0 : index
    %c0_25 = arith.constant 0 : index
    %c0_26 = arith.constant 0 : index
    %41 = vector.load %arg5[%c0_24, %c0_25, %c0_26] : memref<2x1x96xf32, #tpu.memory_space<vmem>>, vector<1x1x96xf32>
    %42 = vector.shape_cast %41 : vector<1x1x96xf32> to vector<1x96xf32>
    %43 = vector.broadcast %42 : vector<1x96xf32> to vector<16x96xf32>
    %44 = arith.addf %40, %43 : vector<16x96xf32>
    %45 = vector.extract_strided_slice %44 {offsets = [0, 0], sizes = [16, 32], strides = [1, 1]} : vector<16x96xf32> to vector<16x32xf32>
    %46 = vector.extract_strided_slice %44 {offsets = [0, 32], sizes = [16, 32], strides = [1, 1]} : vector<16x96xf32> to vector<16x32xf32>
    %47 = vector.extract_strided_slice %44 {offsets = [0, 64], sizes = [16, 32], strides = [1, 1]} : vector<16x96xf32> to vector<16x32xf32>
    %c0_27 = arith.constant 0 : index
    %c0_28 = arith.constant 0 : index
    %c0_29 = arith.constant 0 : index
    %48 = vector.load %arg6[%c0_27, %c0_28, %c0_29] : memref<2x32x32xf32, #tpu.memory_space<vmem>>, vector<1x32x32xf32>
    %49 = vector.shape_cast %48 : vector<1x32x32xf32> to vector<32x32xf32>
    %c0_30 = arith.constant 0 : index
    %c0_31 = arith.constant 0 : index
    %c0_32 = arith.constant 0 : index
    %50 = vector.load %arg7[%c0_30, %c0_31, %c0_32] : memref<2x1x32xf32, #tpu.memory_space<vmem>>, vector<1x1x32xf32>
    %51 = vector.shape_cast %50 : vector<1x1x32xf32> to vector<1x32xf32>
    %52 = vector.shape_cast %45 : vector<16x32xf32> to vector<2x8x32xf32>
    %53 = vector.shape_cast %46 : vector<16x32xf32> to vector<2x8x32xf32>
    %54 = vector.shape_cast %47 : vector<16x32xf32> to vector<2x8x32xf32>
    %55 = vector.extract_strided_slice %52 {offsets = [0, 0, 0], sizes = [2, 8, 8], strides = [1, 1, 1]} : vector<2x8x32xf32> to vector<2x8x8xf32>
    %56 = vector.extract_strided_slice %53 {offsets = [0, 0, 0], sizes = [2, 8, 8], strides = [1, 1, 1]} : vector<2x8x32xf32> to vector<2x8x8xf32>
    %57 = vector.extract_strided_slice %54 {offsets = [0, 0, 0], sizes = [2, 8, 8], strides = [1, 1, 1]} : vector<2x8x32xf32> to vector<2x8x8xf32>
    "tpu.trace_start"() <{level = 10 : i32, message = "bqd,bkd->bqk"}> : () -> ()
    %cst_33 = arith.constant dense<0.000000e+00> : vector<2x8x8xf32>
    %58 = tpu.matmul %55, %56, %cst_33 {dimension_numbers = #tpu.dot_dimension_numbers<[2], [2], [1], [1], [0, 0, 0, 1, 1, 1], [0], [0]>} : vector<2x8x8xf32>, vector<2x8x8xf32>, vector<2x8x8xf32> -> vector<2x8x8xf32>
    "tpu.trace_stop"() : () -> ()
    %cst_34 = arith.constant 0.353553385 : f32
    %59 = vector.broadcast %cst_34 : f32 to vector<2x8x8xf32>
    %60 = arith.mulf %58, %59 : vector<2x8x8xf32>
    %61 = arith.addf %60, %5 : vector<2x8x8xf32>
    %cst_35 = arith.constant dense<0xFF800000> : vector<2x8xf32>
    %62 = vector.multi_reduction <maximumf>, %61, %cst_35 [2] : vector<2x8x8xf32> to vector<2x8xf32>
    %63 = vector.shape_cast %62 : vector<2x8xf32> to vector<2x8x1xf32>
    %64 = vector.broadcast %63 : vector<2x8x1xf32> to vector<2x8x8xf32>
    %65 = arith.subf %61, %64 : vector<2x8x8xf32>
    %66 = math.exp %65 : vector<2x8x8xf32>
    %cst_36 = arith.constant dense<0.000000e+00> : vector<2x8xf32>
    %67 = vector.multi_reduction <add>, %66, %cst_36 [2] : vector<2x8x8xf32> to vector<2x8xf32>
    %68 = vector.shape_cast %67 : vector<2x8xf32> to vector<2x8x1xf32>
    %69 = tpu.reciprocal %68 {approx = true} : vector<2x8x1xf32> -> vector<2x8x1xf32>
    %70 = vector.broadcast %69 : vector<2x8x1xf32> to vector<2x8x8xf32>
    %71 = arith.mulf %66, %70 : vector<2x8x8xf32>
    "tpu.trace_start"() <{level = 10 : i32, message = "bqk,bkd->bqd"}> : () -> ()
    %cst_37 = arith.constant dense<0.000000e+00> : vector<2x8x8xf32>
    %72 = tpu.matmul %71, %57, %cst_37 {dimension_numbers = #tpu.dot_dimension_numbers<[2], [1], [1], [2], [0, 0, 0, 1, 1, 2], [0], [0]>} : vector<2x8x8xf32>, vector<2x8x8xf32>, vector<2x8x8xf32> -> vector<2x8x8xf32>
    "tpu.trace_stop"() : () -> ()
    %73 = vector.shape_cast %72 : vector<2x8x8xf32> to vector<16x8xf32>
    %74 = vector.extract_strided_slice %52 {offsets = [0, 0, 8], sizes = [2, 8, 8], strides = [1, 1, 1]} : vector<2x8x32xf32> to vector<2x8x8xf32>
    %75 = vector.extract_strided_slice %53 {offsets = [0, 0, 8], sizes = [2, 8, 8], strides = [1, 1, 1]} : vector<2x8x32xf32> to vector<2x8x8xf32>
    %76 = vector.extract_strided_slice %54 {offsets = [0, 0, 8], sizes = [2, 8, 8], strides = [1, 1, 1]} : vector<2x8x32xf32> to vector<2x8x8xf32>
    "tpu.trace_start"() <{level = 10 : i32, message = "bqd,bkd->bqk"}> : () -> ()
    %cst_38 = arith.constant dense<0.000000e+00> : vector<2x8x8xf32>
    %77 = tpu.matmul %74, %75, %cst_38 {dimension_numbers = #tpu.dot_dimension_numbers<[2], [2], [1], [1], [0, 0, 0, 1, 1, 1], [0], [0]>} : vector<2x8x8xf32>, vector<2x8x8xf32>, vector<2x8x8xf32> -> vector<2x8x8xf32>
    "tpu.trace_stop"() : () -> ()
    %cst_39 = arith.constant 0.353553385 : f32
    %78 = vector.broadcast %cst_39 : f32 to vector<2x8x8xf32>
    %79 = arith.mulf %77, %78 : vector<2x8x8xf32>
    %80 = arith.addf %79, %5 : vector<2x8x8xf32>
    %cst_40 = arith.constant dense<0xFF800000> : vector<2x8xf32>
    %81 = vector.multi_reduction <maximumf>, %80, %cst_40 [2] : vector<2x8x8xf32> to vector<2x8xf32>
    %82 = vector.shape_cast %81 : vector<2x8xf32> to vector<2x8x1xf32>
    %83 = vector.broadcast %82 : vector<2x8x1xf32> to vector<2x8x8xf32>
    %84 = arith.subf %80, %83 : vector<2x8x8xf32>
    %85 = math.exp %84 : vector<2x8x8xf32>
    %cst_41 = arith.constant dense<0.000000e+00> : vector<2x8xf32>
    %86 = vector.multi_reduction <add>, %85, %cst_41 [2] : vector<2x8x8xf32> to vector<2x8xf32>
    %87 = vector.shape_cast %86 : vector<2x8xf32> to vector<2x8x1xf32>
    %88 = tpu.reciprocal %87 {approx = true} : vector<2x8x1xf32> -> vector<2x8x1xf32>
    %89 = vector.broadcast %88 : vector<2x8x1xf32> to vector<2x8x8xf32>
    %90 = arith.mulf %85, %89 : vector<2x8x8xf32>
    "tpu.trace_start"() <{level = 10 : i32, message = "bqk,bkd->bqd"}> : () -> ()
    %cst_42 = arith.constant dense<0.000000e+00> : vector<2x8x8xf32>
    %91 = tpu.matmul %90, %76, %cst_42 {dimension_numbers = #tpu.dot_dimension_numbers<[2], [1], [1], [2], [0, 0, 0, 1, 1, 2], [0], [0]>} : vector<2x8x8xf32>, vector<2x8x8xf32>, vector<2x8x8xf32> -> vector<2x8x8xf32>
    "tpu.trace_stop"() : () -> ()
    %92 = vector.shape_cast %91 : vector<2x8x8xf32> to vector<16x8xf32>
    %93 = vector.extract_strided_slice %52 {offsets = [0, 0, 16], sizes = [2, 8, 8], strides = [1, 1, 1]} : vector<2x8x32xf32> to vector<2x8x8xf32>
    %94 = vector.extract_strided_slice %53 {offsets = [0, 0, 16], sizes = [2, 8, 8], strides = [1, 1, 1]} : vector<2x8x32xf32> to vector<2x8x8xf32>
    %95 = vector.extract_strided_slice %54 {offsets = [0, 0, 16], sizes = [2, 8, 8], strides = [1, 1, 1]} : vector<2x8x32xf32> to vector<2x8x8xf32>
    "tpu.trace_start"() <{level = 10 : i32, message = "bqd,bkd->bqk"}> : () -> ()
    %cst_43 = arith.constant dense<0.000000e+00> : vector<2x8x8xf32>
    %96 = tpu.matmul %93, %94, %cst_43 {dimension_numbers = #tpu.dot_dimension_numbers<[2], [2], [1], [1], [0, 0, 0, 1, 1, 1], [0], [0]>} : vector<2x8x8xf32>, vector<2x8x8xf32>, vector<2x8x8xf32> -> vector<2x8x8xf32>
    "tpu.trace_stop"() : () -> ()
    %cst_44 = arith.constant 0.353553385 : f32
    %97 = vector.broadcast %cst_44 : f32 to vector<2x8x8xf32>
    %98 = arith.mulf %96, %97 : vector<2x8x8xf32>
    %99 = arith.addf %98, %5 : vector<2x8x8xf32>
    %cst_45 = arith.constant dense<0xFF800000> : vector<2x8xf32>
    %100 = vector.multi_reduction <maximumf>, %99, %cst_45 [2] : vector<2x8x8xf32> to vector<2x8xf32>
    %101 = vector.shape_cast %100 : vector<2x8xf32> to vector<2x8x1xf32>
    %102 = vector.broadcast %101 : vector<2x8x1xf32> to vector<2x8x8xf32>
    %103 = arith.subf %99, %102 : vector<2x8x8xf32>
    %104 = math.exp %103 : vector<2x8x8xf32>
    %cst_46 = arith.constant dense<0.000000e+00> : vector<2x8xf32>
    %105 = vector.multi_reduction <add>, %104, %cst_46 [2] : vector<2x8x8xf32> to vector<2x8xf32>
    %106 = vector.shape_cast %105 : vector<2x8xf32> to vector<2x8x1xf32>
    %107 = tpu.reciprocal %106 {approx = true} : vector<2x8x1xf32> -> vector<2x8x1xf32>
    %108 = vector.broadcast %107 : vector<2x8x1xf32> to vector<2x8x8xf32>
    %109 = arith.mulf %104, %108 : vector<2x8x8xf32>
    "tpu.trace_start"() <{level = 10 : i32, message = "bqk,bkd->bqd"}> : () -> ()
    %cst_47 = arith.constant dense<0.000000e+00> : vector<2x8x8xf32>
    %110 = tpu.matmul %109, %95, %cst_47 {dimension_numbers = #tpu.dot_dimension_numbers<[2], [1], [1], [2], [0, 0, 0, 1, 1, 2], [0], [0]>} : vector<2x8x8xf32>, vector<2x8x8xf32>, vector<2x8x8xf32> -> vector<2x8x8xf32>
    "tpu.trace_stop"() : () -> ()
    %111 = vector.shape_cast %110 : vector<2x8x8xf32> to vector<16x8xf32>
    %112 = vector.extract_strided_slice %52 {offsets = [0, 0, 24], sizes = [2, 8, 8], strides = [1, 1, 1]} : vector<2x8x32xf32> to vector<2x8x8xf32>
    %113 = vector.extract_strided_slice %53 {offsets = [0, 0, 24], sizes = [2, 8, 8], strides = [1, 1, 1]} : vector<2x8x32xf32> to vector<2x8x8xf32>
    %114 = vector.extract_strided_slice %54 {offsets = [0, 0, 24], sizes = [2, 8, 8], strides = [1, 1, 1]} : vector<2x8x32xf32> to vector<2x8x8xf32>
    "tpu.trace_start"() <{level = 10 : i32, message = "bqd,bkd->bqk"}> : () -> ()
    %cst_48 = arith.constant dense<0.000000e+00> : vector<2x8x8xf32>
    %115 = tpu.matmul %112, %113, %cst_48 {dimension_numbers = #tpu.dot_dimension_numbers<[2], [2], [1], [1], [0, 0, 0, 1, 1, 1], [0], [0]>} : vector<2x8x8xf32>, vector<2x8x8xf32>, vector<2x8x8xf32> -> vector<2x8x8xf32>
    "tpu.trace_stop"() : () -> ()
    %cst_49 = arith.constant 0.353553385 : f32
    %116 = vector.broadcast %cst_49 : f32 to vector<2x8x8xf32>
    %117 = arith.mulf %115, %116 : vector<2x8x8xf32>
    %118 = arith.addf %117, %5 : vector<2x8x8xf32>
    %cst_50 = arith.constant dense<0xFF800000> : vector<2x8xf32>
    %119 = vector.multi_reduction <maximumf>, %118, %cst_50 [2] : vector<2x8x8xf32> to vector<2x8xf32>
    %120 = vector.shape_cast %119 : vector<2x8xf32> to vector<2x8x1xf32>
    %121 = vector.broadcast %120 : vector<2x8x1xf32> to vector<2x8x8xf32>
    %122 = arith.subf %118, %121 : vector<2x8x8xf32>
    %123 = math.exp %122 : vector<2x8x8xf32>
    %cst_51 = arith.constant dense<0.000000e+00> : vector<2x8xf32>
    %124 = vector.multi_reduction <add>, %123, %cst_51 [2] : vector<2x8x8xf32> to vector<2x8xf32>
    %125 = vector.shape_cast %124 : vector<2x8xf32> to vector<2x8x1xf32>
    %126 = tpu.reciprocal %125 {approx = true} : vector<2x8x1xf32> -> vector<2x8x1xf32>
    %127 = vector.broadcast %126 : vector<2x8x1xf32> to vector<2x8x8xf32>
    %128 = arith.mulf %123, %127 : vector<2x8x8xf32>
    "tpu.trace_start"() <{level = 10 : i32, message = "bqk,bkd->bqd"}> : () -> ()
    %cst_52 = arith.constant dense<0.000000e+00> : vector<2x8x8xf32>
    %129 = tpu.matmul %128, %114, %cst_52 {dimension_numbers = #tpu.dot_dimension_numbers<[2], [1], [1], [2], [0, 0, 0, 1, 1, 2], [0], [0]>} : vector<2x8x8xf32>, vector<2x8x8xf32>, vector<2x8x8xf32> -> vector<2x8x8xf32>
    "tpu.trace_stop"() : () -> ()
    %130 = vector.shape_cast %129 : vector<2x8x8xf32> to vector<16x8xf32>
    %131 = tpu.concatenate %73, %92, %111, %130 in 1 : vector<16x8xf32>, vector<16x8xf32>, vector<16x8xf32>, vector<16x8xf32> -> vector<16x32xf32>
    %cst_53 = arith.constant dense<0.000000e+00> : vector<16x32xf32>
    %132 = tpu.matmul %131, %49, %cst_53 {dimension_numbers = #tpu.dot_dimension_numbers<[1], [0], [0], [1], [0, 0, 1, 1], [], []>} : vector<16x32xf32>, vector<32x32xf32>, vector<16x32xf32> -> vector<16x32xf32>
    %133 = vector.broadcast %51 : vector<1x32xf32> to vector<16x32xf32>
    %134 = arith.addf %132, %133 : vector<16x32xf32>
    %135 = arith.addf %12, %134 : vector<16x32xf32>
    %c2 = arith.constant 2 : index
    %136 = memref.load %arg18[%c2] : memref<14xf32, #tpu.memory_space<smem>>
    %c3 = arith.constant 3 : index
    %137 = memref.load %arg18[%c3] : memref<14xf32, #tpu.memory_space<smem>>
    %cst_54 = arith.constant dense<0.000000e+00> : vector<16xf32>
    %138 = vector.multi_reduction <add>, %135, %cst_54 [1] : vector<16x32xf32> to vector<16xf32>
    %139 = vector.shape_cast %138 : vector<16xf32> to vector<16x1xf32>
    %cst_55 = arith.constant 3.200000e+01 : f32
    %140 = vector.broadcast %cst_55 : f32 to vector<16x1xf32>
    %141 = arith.divf %139, %140 : vector<16x1xf32>
    %142 = vector.broadcast %141 : vector<16x1xf32> to vector<16x32xf32>
    %143 = arith.subf %135, %142 : vector<16x32xf32>
    %144 = arith.mulf %143, %143 : vector<16x32xf32>
    %cst_56 = arith.constant dense<0.000000e+00> : vector<16xf32>
    %145 = vector.multi_reduction <add>, %144, %cst_56 [1] : vector<16x32xf32> to vector<16xf32>
    %146 = vector.shape_cast %145 : vector<16xf32> to vector<16x1xf32>
    %cst_57 = arith.constant 0.0322580636 : f32
    %147 = vector.broadcast %cst_57 : f32 to vector<16x1xf32>
    %148 = arith.mulf %146, %147 : vector<16x1xf32>
    %149 = vector.broadcast %141 : vector<16x1xf32> to vector<16x32xf32>
    %150 = arith.subf %135, %149 : vector<16x32xf32>
    %151 = vector.broadcast %136 : f32 to vector<16x32xf32>
    %152 = arith.mulf %151, %150 : vector<16x32xf32>
    %153 = math.sqrt %148 : vector<16x1xf32>
    %cst_58 = arith.constant 9.99999997E-7 : f32
    %154 = vector.broadcast %cst_58 : f32 to vector<16x1xf32>
    %155 = arith.addf %153, %154 : vector<16x1xf32>
    %156 = vector.broadcast %155 : vector<16x1xf32> to vector<16x32xf32>
    %157 = arith.divf %152, %156 : vector<16x32xf32>
    %158 = vector.broadcast %137 : f32 to vector<16x32xf32>
    %159 = arith.addf %157, %158 : vector<16x32xf32>
    %c0_59 = arith.constant 0 : index
    %c0_60 = arith.constant 0 : index
    %c0_61 = arith.constant 0 : index
    %160 = vector.load %arg8[%c0_59, %c0_60, %c0_61] : memref<2x32x32xf32, #tpu.memory_space<vmem>>, vector<1x32x32xf32>
    %161 = vector.shape_cast %160 : vector<1x32x32xf32> to vector<32x32xf32>
    %cst_62 = arith.constant dense<0.000000e+00> : vector<16x32xf32>
    %162 = tpu.matmul %159, %161, %cst_62 {dimension_numbers = #tpu.dot_dimension_numbers<[1], [0], [0], [1], [0, 0, 1, 1], [], []>} : vector<16x32xf32>, vector<32x32xf32>, vector<16x32xf32> -> vector<16x32xf32>
    %c0_63 = arith.constant 0 : index
    %c0_64 = arith.constant 0 : index
    %c0_65 = arith.constant 0 : index
    %163 = vector.load %arg9[%c0_63, %c0_64, %c0_65] : memref<2x1x32xf32, #tpu.memory_space<vmem>>, vector<1x1x32xf32>
    %164 = vector.shape_cast %163 : vector<1x1x32xf32> to vector<1x32xf32>
    %165 = vector.broadcast %164 : vector<1x32xf32> to vector<16x32xf32>
    %166 = arith.addf %162, %165 : vector<16x32xf32>
    %c0_66 = arith.constant 0 : index
    %c0_67 = arith.constant 0 : index
    %c0_68 = arith.constant 0 : index
    %167 = vector.load %arg10[%c0_66, %c0_67, %c0_68] : memref<2x32x64xf32, #tpu.memory_space<vmem>>, vector<1x32x64xf32>
    %168 = vector.shape_cast %167 : vector<1x32x64xf32> to vector<32x64xf32>
    %cst_69 = arith.constant dense<0.000000e+00> : vector<16x64xf32>
    %169 = tpu.matmul %13, %168, %cst_69 {dimension_numbers = #tpu.dot_dimension_numbers<[1], [0], [0], [1], [0, 0, 1, 1], [], []>} : vector<16x32xf32>, vector<32x64xf32>, vector<16x64xf32> -> vector<16x64xf32>
    %c0_70 = arith.constant 0 : index
    %c0_71 = arith.constant 0 : index
    %c0_72 = arith.constant 0 : index
    %170 = vector.load %arg11[%c0_70, %c0_71, %c0_72] : memref<2x1x64xf32, #tpu.memory_space<vmem>>, vector<1x1x64xf32>
    %171 = vector.shape_cast %170 : vector<1x1x64xf32> to vector<1x64xf32>
    %172 = vector.broadcast %171 : vector<1x64xf32> to vector<16x64xf32>
    %173 = arith.addf %169, %172 : vector<16x64xf32>
    %174 = vector.extract_strided_slice %173 {offsets = [0, 0], sizes = [16, 32], strides = [1, 1]} : vector<16x64xf32> to vector<16x32xf32>
    %175 = vector.extract_strided_slice %173 {offsets = [0, 32], sizes = [16, 32], strides = [1, 1]} : vector<16x64xf32> to vector<16x32xf32>
    %c0_73 = arith.constant 0 : index
    %c0_74 = arith.constant 0 : index
    %c0_75 = arith.constant 0 : index
    %176 = vector.load %arg12[%c0_73, %c0_74, %c0_75] : memref<2x32x32xf32, #tpu.memory_space<vmem>>, vector<1x32x32xf32>
    %177 = vector.shape_cast %176 : vector<1x32x32xf32> to vector<32x32xf32>
    %c0_76 = arith.constant 0 : index
    %c0_77 = arith.constant 0 : index
    %c0_78 = arith.constant 0 : index
    %178 = vector.load %arg13[%c0_76, %c0_77, %c0_78] : memref<2x1x32xf32, #tpu.memory_space<vmem>>, vector<1x1x32xf32>
    %179 = vector.shape_cast %178 : vector<1x1x32xf32> to vector<1x32xf32>
    %180 = vector.shape_cast %166 : vector<16x32xf32> to vector<2x8x32xf32>
    %181 = vector.shape_cast %174 : vector<16x32xf32> to vector<2x8x32xf32>
    %182 = vector.shape_cast %175 : vector<16x32xf32> to vector<2x8x32xf32>
    %183 = vector.extract_strided_slice %180 {offsets = [0, 0, 0], sizes = [2, 8, 8], strides = [1, 1, 1]} : vector<2x8x32xf32> to vector<2x8x8xf32>
    %184 = vector.extract_strided_slice %181 {offsets = [0, 0, 0], sizes = [2, 8, 8], strides = [1, 1, 1]} : vector<2x8x32xf32> to vector<2x8x8xf32>
    %185 = vector.extract_strided_slice %182 {offsets = [0, 0, 0], sizes = [2, 8, 8], strides = [1, 1, 1]} : vector<2x8x32xf32> to vector<2x8x8xf32>
    "tpu.trace_start"() <{level = 10 : i32, message = "bqd,bkd->bqk"}> : () -> ()
    %cst_79 = arith.constant dense<0.000000e+00> : vector<2x8x8xf32>
    %186 = tpu.matmul %183, %184, %cst_79 {dimension_numbers = #tpu.dot_dimension_numbers<[2], [2], [1], [1], [0, 0, 0, 1, 1, 1], [0], [0]>} : vector<2x8x8xf32>, vector<2x8x8xf32>, vector<2x8x8xf32> -> vector<2x8x8xf32>
    "tpu.trace_stop"() : () -> ()
    %cst_80 = arith.constant 0.353553385 : f32
    %187 = vector.broadcast %cst_80 : f32 to vector<2x8x8xf32>
    %188 = arith.mulf %186, %187 : vector<2x8x8xf32>
    %189 = vector.broadcast %11 : vector<2x1x8xf32> to vector<2x8x8xf32>
    %190 = arith.addf %188, %189 : vector<2x8x8xf32>
    %cst_81 = arith.constant dense<0xFF800000> : vector<2x8xf32>
    %191 = vector.multi_reduction <maximumf>, %190, %cst_81 [2] : vector<2x8x8xf32> to vector<2x8xf32>
    %192 = vector.shape_cast %191 : vector<2x8xf32> to vector<2x8x1xf32>
    %193 = vector.broadcast %192 : vector<2x8x1xf32> to vector<2x8x8xf32>
    %194 = arith.subf %190, %193 : vector<2x8x8xf32>
    %195 = math.exp %194 : vector<2x8x8xf32>
    %cst_82 = arith.constant dense<0.000000e+00> : vector<2x8xf32>
    %196 = vector.multi_reduction <add>, %195, %cst_82 [2] : vector<2x8x8xf32> to vector<2x8xf32>
    %197 = vector.shape_cast %196 : vector<2x8xf32> to vector<2x8x1xf32>
    %198 = tpu.reciprocal %197 {approx = true} : vector<2x8x1xf32> -> vector<2x8x1xf32>
    %199 = vector.broadcast %198 : vector<2x8x1xf32> to vector<2x8x8xf32>
    %200 = arith.mulf %195, %199 : vector<2x8x8xf32>
    "tpu.trace_start"() <{level = 10 : i32, message = "bqk,bkd->bqd"}> : () -> ()
    %cst_83 = arith.constant dense<0.000000e+00> : vector<2x8x8xf32>
    %201 = tpu.matmul %200, %185, %cst_83 {dimension_numbers = #tpu.dot_dimension_numbers<[2], [1], [1], [2], [0, 0, 0, 1, 1, 2], [0], [0]>} : vector<2x8x8xf32>, vector<2x8x8xf32>, vector<2x8x8xf32> -> vector<2x8x8xf32>
    "tpu.trace_stop"() : () -> ()
    %202 = vector.shape_cast %201 : vector<2x8x8xf32> to vector<16x8xf32>
    %203 = vector.extract_strided_slice %180 {offsets = [0, 0, 8], sizes = [2, 8, 8], strides = [1, 1, 1]} : vector<2x8x32xf32> to vector<2x8x8xf32>
    %204 = vector.extract_strided_slice %181 {offsets = [0, 0, 8], sizes = [2, 8, 8], strides = [1, 1, 1]} : vector<2x8x32xf32> to vector<2x8x8xf32>
    %205 = vector.extract_strided_slice %182 {offsets = [0, 0, 8], sizes = [2, 8, 8], strides = [1, 1, 1]} : vector<2x8x32xf32> to vector<2x8x8xf32>
    "tpu.trace_start"() <{level = 10 : i32, message = "bqd,bkd->bqk"}> : () -> ()
    %cst_84 = arith.constant dense<0.000000e+00> : vector<2x8x8xf32>
    %206 = tpu.matmul %203, %204, %cst_84 {dimension_numbers = #tpu.dot_dimension_numbers<[2], [2], [1], [1], [0, 0, 0, 1, 1, 1], [0], [0]>} : vector<2x8x8xf32>, vector<2x8x8xf32>, vector<2x8x8xf32> -> vector<2x8x8xf32>
    "tpu.trace_stop"() : () -> ()
    %cst_85 = arith.constant 0.353553385 : f32
    %207 = vector.broadcast %cst_85 : f32 to vector<2x8x8xf32>
    %208 = arith.mulf %206, %207 : vector<2x8x8xf32>
    %209 = vector.broadcast %11 : vector<2x1x8xf32> to vector<2x8x8xf32>
    %210 = arith.addf %208, %209 : vector<2x8x8xf32>
    %cst_86 = arith.constant dense<0xFF800000> : vector<2x8xf32>
    %211 = vector.multi_reduction <maximumf>, %210, %cst_86 [2] : vector<2x8x8xf32> to vector<2x8xf32>
    %212 = vector.shape_cast %211 : vector<2x8xf32> to vector<2x8x1xf32>
    %213 = vector.broadcast %212 : vector<2x8x1xf32> to vector<2x8x8xf32>
    %214 = arith.subf %210, %213 : vector<2x8x8xf32>
    %215 = math.exp %214 : vector<2x8x8xf32>
    %cst_87 = arith.constant dense<0.000000e+00> : vector<2x8xf32>
    %216 = vector.multi_reduction <add>, %215, %cst_87 [2] : vector<2x8x8xf32> to vector<2x8xf32>
    %217 = vector.shape_cast %216 : vector<2x8xf32> to vector<2x8x1xf32>
    %218 = tpu.reciprocal %217 {approx = true} : vector<2x8x1xf32> -> vector<2x8x1xf32>
    %219 = vector.broadcast %218 : vector<2x8x1xf32> to vector<2x8x8xf32>
    %220 = arith.mulf %215, %219 : vector<2x8x8xf32>
    "tpu.trace_start"() <{level = 10 : i32, message = "bqk,bkd->bqd"}> : () -> ()
    %cst_88 = arith.constant dense<0.000000e+00> : vector<2x8x8xf32>
    %221 = tpu.matmul %220, %205, %cst_88 {dimension_numbers = #tpu.dot_dimension_numbers<[2], [1], [1], [2], [0, 0, 0, 1, 1, 2], [0], [0]>} : vector<2x8x8xf32>, vector<2x8x8xf32>, vector<2x8x8xf32> -> vector<2x8x8xf32>
    "tpu.trace_stop"() : () -> ()
    %222 = vector.shape_cast %221 : vector<2x8x8xf32> to vector<16x8xf32>
    %223 = vector.extract_strided_slice %180 {offsets = [0, 0, 16], sizes = [2, 8, 8], strides = [1, 1, 1]} : vector<2x8x32xf32> to vector<2x8x8xf32>
    %224 = vector.extract_strided_slice %181 {offsets = [0, 0, 16], sizes = [2, 8, 8], strides = [1, 1, 1]} : vector<2x8x32xf32> to vector<2x8x8xf32>
    %225 = vector.extract_strided_slice %182 {offsets = [0, 0, 16], sizes = [2, 8, 8], strides = [1, 1, 1]} : vector<2x8x32xf32> to vector<2x8x8xf32>
    "tpu.trace_start"() <{level = 10 : i32, message = "bqd,bkd->bqk"}> : () -> ()
    %cst_89 = arith.constant dense<0.000000e+00> : vector<2x8x8xf32>
    %226 = tpu.matmul %223, %224, %cst_89 {dimension_numbers = #tpu.dot_dimension_numbers<[2], [2], [1], [1], [0, 0, 0, 1, 1, 1], [0], [0]>} : vector<2x8x8xf32>, vector<2x8x8xf32>, vector<2x8x8xf32> -> vector<2x8x8xf32>
    "tpu.trace_stop"() : () -> ()
    %cst_90 = arith.constant 0.353553385 : f32
    %227 = vector.broadcast %cst_90 : f32 to vector<2x8x8xf32>
    %228 = arith.mulf %226, %227 : vector<2x8x8xf32>
    %229 = vector.broadcast %11 : vector<2x1x8xf32> to vector<2x8x8xf32>
    %230 = arith.addf %228, %229 : vector<2x8x8xf32>
    %cst_91 = arith.constant dense<0xFF800000> : vector<2x8xf32>
    %231 = vector.multi_reduction <maximumf>, %230, %cst_91 [2] : vector<2x8x8xf32> to vector<2x8xf32>
    %232 = vector.shape_cast %231 : vector<2x8xf32> to vector<2x8x1xf32>
    %233 = vector.broadcast %232 : vector<2x8x1xf32> to vector<2x8x8xf32>
    %234 = arith.subf %230, %233 : vector<2x8x8xf32>
    %235 = math.exp %234 : vector<2x8x8xf32>
    %cst_92 = arith.constant dense<0.000000e+00> : vector<2x8xf32>
    %236 = vector.multi_reduction <add>, %235, %cst_92 [2] : vector<2x8x8xf32> to vector<2x8xf32>
    %237 = vector.shape_cast %236 : vector<2x8xf32> to vector<2x8x1xf32>
    %238 = tpu.reciprocal %237 {approx = true} : vector<2x8x1xf32> -> vector<2x8x1xf32>
    %239 = vector.broadcast %238 : vector<2x8x1xf32> to vector<2x8x8xf32>
    %240 = arith.mulf %235, %239 : vector<2x8x8xf32>
    "tpu.trace_start"() <{level = 10 : i32, message = "bqk,bkd->bqd"}> : () -> ()
    %cst_93 = arith.constant dense<0.000000e+00> : vector<2x8x8xf32>
    %241 = tpu.matmul %240, %225, %cst_93 {dimension_numbers = #tpu.dot_dimension_numbers<[2], [1], [1], [2], [0, 0, 0, 1, 1, 2], [0], [0]>} : vector<2x8x8xf32>, vector<2x8x8xf32>, vector<2x8x8xf32> -> vector<2x8x8xf32>
    "tpu.trace_stop"() : () -> ()
    %242 = vector.shape_cast %241 : vector<2x8x8xf32> to vector<16x8xf32>
    %243 = vector.extract_strided_slice %180 {offsets = [0, 0, 24], sizes = [2, 8, 8], strides = [1, 1, 1]} : vector<2x8x32xf32> to vector<2x8x8xf32>
    %244 = vector.extract_strided_slice %181 {offsets = [0, 0, 24], sizes = [2, 8, 8], strides = [1, 1, 1]} : vector<2x8x32xf32> to vector<2x8x8xf32>
    %245 = vector.extract_strided_slice %182 {offsets = [0, 0, 24], sizes = [2, 8, 8], strides = [1, 1, 1]} : vector<2x8x32xf32> to vector<2x8x8xf32>
    "tpu.trace_start"() <{level = 10 : i32, message = "bqd,bkd->bqk"}> : () -> ()
    %cst_94 = arith.constant dense<0.000000e+00> : vector<2x8x8xf32>
    %246 = tpu.matmul %243, %244, %cst_94 {dimension_numbers = #tpu.dot_dimension_numbers<[2], [2], [1], [1], [0, 0, 0, 1, 1, 1], [0], [0]>} : vector<2x8x8xf32>, vector<2x8x8xf32>, vector<2x8x8xf32> -> vector<2x8x8xf32>
    "tpu.trace_stop"() : () -> ()
    %cst_95 = arith.constant 0.353553385 : f32
    %247 = vector.broadcast %cst_95 : f32 to vector<2x8x8xf32>
    %248 = arith.mulf %246, %247 : vector<2x8x8xf32>
    %249 = vector.broadcast %11 : vector<2x1x8xf32> to vector<2x8x8xf32>
    %250 = arith.addf %248, %249 : vector<2x8x8xf32>
    %cst_96 = arith.constant dense<0xFF800000> : vector<2x8xf32>
    %251 = vector.multi_reduction <maximumf>, %250, %cst_96 [2] : vector<2x8x8xf32> to vector<2x8xf32>
    %252 = vector.shape_cast %251 : vector<2x8xf32> to vector<2x8x1xf32>
    %253 = vector.broadcast %252 : vector<2x8x1xf32> to vector<2x8x8xf32>
    %254 = arith.subf %250, %253 : vector<2x8x8xf32>
    %255 = math.exp %254 : vector<2x8x8xf32>
    %cst_97 = arith.constant dense<0.000000e+00> : vector<2x8xf32>
    %256 = vector.multi_reduction <add>, %255, %cst_97 [2] : vector<2x8x8xf32> to vector<2x8xf32>
    %257 = vector.shape_cast %256 : vector<2x8xf32> to vector<2x8x1xf32>
    %258 = tpu.reciprocal %257 {approx = true} : vector<2x8x1xf32> -> vector<2x8x1xf32>
    %259 = vector.broadcast %258 : vector<2x8x1xf32> to vector<2x8x8xf32>
    %260 = arith.mulf %255, %259 : vector<2x8x8xf32>
    "tpu.trace_start"() <{level = 10 : i32, message = "bqk,bkd->bqd"}> : () -> ()
    %cst_98 = arith.constant dense<0.000000e+00> : vector<2x8x8xf32>
    %261 = tpu.matmul %260, %245, %cst_98 {dimension_numbers = #tpu.dot_dimension_numbers<[2], [1], [1], [2], [0, 0, 0, 1, 1, 2], [0], [0]>} : vector<2x8x8xf32>, vector<2x8x8xf32>, vector<2x8x8xf32> -> vector<2x8x8xf32>
    "tpu.trace_stop"() : () -> ()
    %262 = vector.shape_cast %261 : vector<2x8x8xf32> to vector<16x8xf32>
    %263 = tpu.concatenate %202, %222, %242, %262 in 1 : vector<16x8xf32>, vector<16x8xf32>, vector<16x8xf32>, vector<16x8xf32> -> vector<16x32xf32>
    %cst_99 = arith.constant dense<0.000000e+00> : vector<16x32xf32>
    %264 = tpu.matmul %263, %177, %cst_99 {dimension_numbers = #tpu.dot_dimension_numbers<[1], [0], [0], [1], [0, 0, 1, 1], [], []>} : vector<16x32xf32>, vector<32x32xf32>, vector<16x32xf32> -> vector<16x32xf32>
    %265 = vector.broadcast %179 : vector<1x32xf32> to vector<16x32xf32>
    %266 = arith.addf %264, %265 : vector<16x32xf32>
    %267 = arith.addf %135, %266 : vector<16x32xf32>
    %c4 = arith.constant 4 : index
    %268 = memref.load %arg18[%c4] : memref<14xf32, #tpu.memory_space<smem>>
    %c5 = arith.constant 5 : index
    %269 = memref.load %arg18[%c5] : memref<14xf32, #tpu.memory_space<smem>>
    %cst_100 = arith.constant dense<0.000000e+00> : vector<16xf32>
    %270 = vector.multi_reduction <add>, %267, %cst_100 [1] : vector<16x32xf32> to vector<16xf32>
    %271 = vector.shape_cast %270 : vector<16xf32> to vector<16x1xf32>
    %cst_101 = arith.constant 3.200000e+01 : f32
    %272 = vector.broadcast %cst_101 : f32 to vector<16x1xf32>
    %273 = arith.divf %271, %272 : vector<16x1xf32>
    %274 = vector.broadcast %273 : vector<16x1xf32> to vector<16x32xf32>
    %275 = arith.subf %267, %274 : vector<16x32xf32>
    %276 = arith.mulf %275, %275 : vector<16x32xf32>
    %cst_102 = arith.constant dense<0.000000e+00> : vector<16xf32>
    %277 = vector.multi_reduction <add>, %276, %cst_102 [1] : vector<16x32xf32> to vector<16xf32>
    %278 = vector.shape_cast %277 : vector<16xf32> to vector<16x1xf32>
    %cst_103 = arith.constant 0.0322580636 : f32
    %279 = vector.broadcast %cst_103 : f32 to vector<16x1xf32>
    %280 = arith.mulf %278, %279 : vector<16x1xf32>
    %281 = vector.broadcast %273 : vector<16x1xf32> to vector<16x32xf32>
    %282 = arith.subf %267, %281 : vector<16x32xf32>
    %283 = vector.broadcast %268 : f32 to vector<16x32xf32>
    %284 = arith.mulf %283, %282 : vector<16x32xf32>
    %285 = math.sqrt %280 : vector<16x1xf32>
    %cst_104 = arith.constant 9.99999997E-7 : f32
    %286 = vector.broadcast %cst_104 : f32 to vector<16x1xf32>
    %287 = arith.addf %285, %286 : vector<16x1xf32>
    %288 = vector.broadcast %287 : vector<16x1xf32> to vector<16x32xf32>
    %289 = arith.divf %284, %288 : vector<16x32xf32>
    %290 = vector.broadcast %269 : f32 to vector<16x32xf32>
    %291 = arith.addf %289, %290 : vector<16x32xf32>
    %c0_105 = arith.constant 0 : index
    %c0_106 = arith.constant 0 : index
    %c0_107 = arith.constant 0 : index
    %292 = vector.load %arg14[%c0_105, %c0_106, %c0_107] : memref<2x32x64xf32, #tpu.memory_space<vmem>>, vector<1x32x64xf32>
    %293 = vector.shape_cast %292 : vector<1x32x64xf32> to vector<32x64xf32>
    %cst_108 = arith.constant dense<0.000000e+00> : vector<16x64xf32>
    %294 = tpu.matmul %291, %293, %cst_108 {dimension_numbers = #tpu.dot_dimension_numbers<[1], [0], [0], [1], [0, 0, 1, 1], [], []>} : vector<16x32xf32>, vector<32x64xf32>, vector<16x64xf32> -> vector<16x64xf32>
    %c0_109 = arith.constant 0 : index
    %c0_110 = arith.constant 0 : index
    %c0_111 = arith.constant 0 : index
    %295 = vector.load %arg15[%c0_109, %c0_110, %c0_111] : memref<2x1x64xf32, #tpu.memory_space<vmem>>, vector<1x1x64xf32>
    %296 = vector.shape_cast %295 : vector<1x1x64xf32> to vector<1x64xf32>
    %297 = vector.broadcast %296 : vector<1x64xf32> to vector<16x64xf32>
    %298 = arith.addf %294, %297 : vector<16x64xf32>
    %cst_112 = arith.constant 0.000000e+00 : f32
    %299 = vector.broadcast %cst_112 : f32 to vector<16x64xf32>
    %300 = arith.maximumf %298, %299 : vector<16x64xf32>
    %c0_113 = arith.constant 0 : index
    %c0_114 = arith.constant 0 : index
    %c0_115 = arith.constant 0 : index
    %301 = vector.load %arg16[%c0_113, %c0_114, %c0_115] : memref<2x64x32xf32, #tpu.memory_space<vmem>>, vector<1x64x32xf32>
    %302 = vector.shape_cast %301 : vector<1x64x32xf32> to vector<64x32xf32>
    %cst_116 = arith.constant dense<0.000000e+00> : vector<16x32xf32>
    %303 = tpu.matmul %300, %302, %cst_116 {dimension_numbers = #tpu.dot_dimension_numbers<[1], [0], [0], [1], [0, 0, 1, 1], [], []>} : vector<16x64xf32>, vector<64x32xf32>, vector<16x32xf32> -> vector<16x32xf32>
    %304 = arith.addf %267, %303 : vector<16x32xf32>
    %c0_117 = arith.constant 0 : index
    %c0_118 = arith.constant 0 : index
    %c0_119 = arith.constant 0 : index
    %305 = vector.load %arg17[%c0_117, %c0_118, %c0_119] : memref<2x1x32xf32, #tpu.memory_space<vmem>>, vector<1x1x32xf32>
    %306 = vector.shape_cast %305 : vector<1x1x32xf32> to vector<1x32xf32>
    %307 = vector.broadcast %306 : vector<1x32xf32> to vector<16x32xf32>
    %308 = arith.addf %304, %307 : vector<16x32xf32>
    %c6 = arith.constant 6 : index
    %309 = memref.load %arg18[%c6] : memref<14xf32, #tpu.memory_space<smem>>
    %c7 = arith.constant 7 : index
    %310 = memref.load %arg18[%c7] : memref<14xf32, #tpu.memory_space<smem>>
    %cst_120 = arith.constant dense<0.000000e+00> : vector<16xf32>
    %311 = vector.multi_reduction <add>, %308, %cst_120 [1] : vector<16x32xf32> to vector<16xf32>
    %312 = vector.shape_cast %311 : vector<16xf32> to vector<16x1xf32>
    %cst_121 = arith.constant 3.200000e+01 : f32
    %313 = vector.broadcast %cst_121 : f32 to vector<16x1xf32>
    %314 = arith.divf %312, %313 : vector<16x1xf32>
    %315 = vector.broadcast %314 : vector<16x1xf32> to vector<16x32xf32>
    %316 = arith.subf %308, %315 : vector<16x32xf32>
    %317 = arith.mulf %316, %316 : vector<16x32xf32>
    %cst_122 = arith.constant dense<0.000000e+00> : vector<16xf32>
    %318 = vector.multi_reduction <add>, %317, %cst_122 [1] : vector<16x32xf32> to vector<16xf32>
    %319 = vector.shape_cast %318 : vector<16xf32> to vector<16x1xf32>
    %cst_123 = arith.constant 0.0322580636 : f32
    %320 = vector.broadcast %cst_123 : f32 to vector<16x1xf32>
    %321 = arith.mulf %319, %320 : vector<16x1xf32>
    %322 = vector.broadcast %314 : vector<16x1xf32> to vector<16x32xf32>
    %323 = arith.subf %308, %322 : vector<16x32xf32>
    %324 = vector.broadcast %309 : f32 to vector<16x32xf32>
    %325 = arith.mulf %324, %323 : vector<16x32xf32>
    %326 = math.sqrt %321 : vector<16x1xf32>
    %cst_124 = arith.constant 9.99999997E-7 : f32
    %327 = vector.broadcast %cst_124 : f32 to vector<16x1xf32>
    %328 = arith.addf %326, %327 : vector<16x1xf32>
    %329 = vector.broadcast %328 : vector<16x1xf32> to vector<16x32xf32>
    %330 = arith.divf %325, %329 : vector<16x32xf32>
    %331 = vector.broadcast %310 : f32 to vector<16x32xf32>
    %332 = arith.addf %330, %331 : vector<16x32xf32>
    %c1_125 = arith.constant 1 : index
    %c0_126 = arith.constant 0 : index
    %c0_127 = arith.constant 0 : index
    %333 = vector.load %arg4[%c1_125, %c0_126, %c0_127] : memref<2x32x96xf32, #tpu.memory_space<vmem>>, vector<1x32x96xf32>
    %334 = vector.shape_cast %333 : vector<1x32x96xf32> to vector<32x96xf32>
    %cst_128 = arith.constant dense<0.000000e+00> : vector<16x96xf32>
    %335 = tpu.matmul %332, %334, %cst_128 {dimension_numbers = #tpu.dot_dimension_numbers<[1], [0], [0], [1], [0, 0, 1, 1], [], []>} : vector<16x32xf32>, vector<32x96xf32>, vector<16x96xf32> -> vector<16x96xf32>
    %c1_129 = arith.constant 1 : index
    %c0_130 = arith.constant 0 : index
    %c0_131 = arith.constant 0 : index
    %336 = vector.load %arg5[%c1_129, %c0_130, %c0_131] : memref<2x1x96xf32, #tpu.memory_space<vmem>>, vector<1x1x96xf32>
    %337 = vector.shape_cast %336 : vector<1x1x96xf32> to vector<1x96xf32>
    %338 = vector.broadcast %337 : vector<1x96xf32> to vector<16x96xf32>
    %339 = arith.addf %335, %338 : vector<16x96xf32>
    %340 = vector.extract_strided_slice %339 {offsets = [0, 0], sizes = [16, 32], strides = [1, 1]} : vector<16x96xf32> to vector<16x32xf32>
    %341 = vector.extract_strided_slice %339 {offsets = [0, 32], sizes = [16, 32], strides = [1, 1]} : vector<16x96xf32> to vector<16x32xf32>
    %342 = vector.extract_strided_slice %339 {offsets = [0, 64], sizes = [16, 32], strides = [1, 1]} : vector<16x96xf32> to vector<16x32xf32>
    %c1_132 = arith.constant 1 : index
    %c0_133 = arith.constant 0 : index
    %c0_134 = arith.constant 0 : index
    %343 = vector.load %arg6[%c1_132, %c0_133, %c0_134] : memref<2x32x32xf32, #tpu.memory_space<vmem>>, vector<1x32x32xf32>
    %344 = vector.shape_cast %343 : vector<1x32x32xf32> to vector<32x32xf32>
    %c1_135 = arith.constant 1 : index
    %c0_136 = arith.constant 0 : index
    %c0_137 = arith.constant 0 : index
    %345 = vector.load %arg7[%c1_135, %c0_136, %c0_137] : memref<2x1x32xf32, #tpu.memory_space<vmem>>, vector<1x1x32xf32>
    %346 = vector.shape_cast %345 : vector<1x1x32xf32> to vector<1x32xf32>
    %347 = vector.shape_cast %340 : vector<16x32xf32> to vector<2x8x32xf32>
    %348 = vector.shape_cast %341 : vector<16x32xf32> to vector<2x8x32xf32>
    %349 = vector.shape_cast %342 : vector<16x32xf32> to vector<2x8x32xf32>
    %350 = vector.extract_strided_slice %347 {offsets = [0, 0, 0], sizes = [2, 8, 8], strides = [1, 1, 1]} : vector<2x8x32xf32> to vector<2x8x8xf32>
    %351 = vector.extract_strided_slice %348 {offsets = [0, 0, 0], sizes = [2, 8, 8], strides = [1, 1, 1]} : vector<2x8x32xf32> to vector<2x8x8xf32>
    %352 = vector.extract_strided_slice %349 {offsets = [0, 0, 0], sizes = [2, 8, 8], strides = [1, 1, 1]} : vector<2x8x32xf32> to vector<2x8x8xf32>
    "tpu.trace_start"() <{level = 10 : i32, message = "bqd,bkd->bqk"}> : () -> ()
    %cst_138 = arith.constant dense<0.000000e+00> : vector<2x8x8xf32>
    %353 = tpu.matmul %350, %351, %cst_138 {dimension_numbers = #tpu.dot_dimension_numbers<[2], [2], [1], [1], [0, 0, 0, 1, 1, 1], [0], [0]>} : vector<2x8x8xf32>, vector<2x8x8xf32>, vector<2x8x8xf32> -> vector<2x8x8xf32>
    "tpu.trace_stop"() : () -> ()
    %cst_139 = arith.constant 0.353553385 : f32
    %354 = vector.broadcast %cst_139 : f32 to vector<2x8x8xf32>
    %355 = arith.mulf %353, %354 : vector<2x8x8xf32>
    %356 = arith.addf %355, %5 : vector<2x8x8xf32>
    %cst_140 = arith.constant dense<0xFF800000> : vector<2x8xf32>
    %357 = vector.multi_reduction <maximumf>, %356, %cst_140 [2] : vector<2x8x8xf32> to vector<2x8xf32>
    %358 = vector.shape_cast %357 : vector<2x8xf32> to vector<2x8x1xf32>
    %359 = vector.broadcast %358 : vector<2x8x1xf32> to vector<2x8x8xf32>
    %360 = arith.subf %356, %359 : vector<2x8x8xf32>
    %361 = math.exp %360 : vector<2x8x8xf32>
    %cst_141 = arith.constant dense<0.000000e+00> : vector<2x8xf32>
    %362 = vector.multi_reduction <add>, %361, %cst_141 [2] : vector<2x8x8xf32> to vector<2x8xf32>
    %363 = vector.shape_cast %362 : vector<2x8xf32> to vector<2x8x1xf32>
    %364 = tpu.reciprocal %363 {approx = true} : vector<2x8x1xf32> -> vector<2x8x1xf32>
    %365 = vector.broadcast %364 : vector<2x8x1xf32> to vector<2x8x8xf32>
    %366 = arith.mulf %361, %365 : vector<2x8x8xf32>
    "tpu.trace_start"() <{level = 10 : i32, message = "bqk,bkd->bqd"}> : () -> ()
    %cst_142 = arith.constant dense<0.000000e+00> : vector<2x8x8xf32>
    %367 = tpu.matmul %366, %352, %cst_142 {dimension_numbers = #tpu.dot_dimension_numbers<[2], [1], [1], [2], [0, 0, 0, 1, 1, 2], [0], [0]>} : vector<2x8x8xf32>, vector<2x8x8xf32>, vector<2x8x8xf32> -> vector<2x8x8xf32>
    "tpu.trace_stop"() : () -> ()
    %368 = vector.shape_cast %367 : vector<2x8x8xf32> to vector<16x8xf32>
    %369 = vector.extract_strided_slice %347 {offsets = [0, 0, 8], sizes = [2, 8, 8], strides = [1, 1, 1]} : vector<2x8x32xf32> to vector<2x8x8xf32>
    %370 = vector.extract_strided_slice %348 {offsets = [0, 0, 8], sizes = [2, 8, 8], strides = [1, 1, 1]} : vector<2x8x32xf32> to vector<2x8x8xf32>
    %371 = vector.extract_strided_slice %349 {offsets = [0, 0, 8], sizes = [2, 8, 8], strides = [1, 1, 1]} : vector<2x8x32xf32> to vector<2x8x8xf32>
    "tpu.trace_start"() <{level = 10 : i32, message = "bqd,bkd->bqk"}> : () -> ()
    %cst_143 = arith.constant dense<0.000000e+00> : vector<2x8x8xf32>
    %372 = tpu.matmul %369, %370, %cst_143 {dimension_numbers = #tpu.dot_dimension_numbers<[2], [2], [1], [1], [0, 0, 0, 1, 1, 1], [0], [0]>} : vector<2x8x8xf32>, vector<2x8x8xf32>, vector<2x8x8xf32> -> vector<2x8x8xf32>
    "tpu.trace_stop"() : () -> ()
    %cst_144 = arith.constant 0.353553385 : f32
    %373 = vector.broadcast %cst_144 : f32 to vector<2x8x8xf32>
    %374 = arith.mulf %372, %373 : vector<2x8x8xf32>
    %375 = arith.addf %374, %5 : vector<2x8x8xf32>
    %cst_145 = arith.constant dense<0xFF800000> : vector<2x8xf32>
    %376 = vector.multi_reduction <maximumf>, %375, %cst_145 [2] : vector<2x8x8xf32> to vector<2x8xf32>
    %377 = vector.shape_cast %376 : vector<2x8xf32> to vector<2x8x1xf32>
    %378 = vector.broadcast %377 : vector<2x8x1xf32> to vector<2x8x8xf32>
    %379 = arith.subf %375, %378 : vector<2x8x8xf32>
    %380 = math.exp %379 : vector<2x8x8xf32>
    %cst_146 = arith.constant dense<0.000000e+00> : vector<2x8xf32>
    %381 = vector.multi_reduction <add>, %380, %cst_146 [2] : vector<2x8x8xf32> to vector<2x8xf32>
    %382 = vector.shape_cast %381 : vector<2x8xf32> to vector<2x8x1xf32>
    %383 = tpu.reciprocal %382 {approx = true} : vector<2x8x1xf32> -> vector<2x8x1xf32>
    %384 = vector.broadcast %383 : vector<2x8x1xf32> to vector<2x8x8xf32>
    %385 = arith.mulf %380, %384 : vector<2x8x8xf32>
    "tpu.trace_start"() <{level = 10 : i32, message = "bqk,bkd->bqd"}> : () -> ()
    %cst_147 = arith.constant dense<0.000000e+00> : vector<2x8x8xf32>
    %386 = tpu.matmul %385, %371, %cst_147 {dimension_numbers = #tpu.dot_dimension_numbers<[2], [1], [1], [2], [0, 0, 0, 1, 1, 2], [0], [0]>} : vector<2x8x8xf32>, vector<2x8x8xf32>, vector<2x8x8xf32> -> vector<2x8x8xf32>
    "tpu.trace_stop"() : () -> ()
    %387 = vector.shape_cast %386 : vector<2x8x8xf32> to vector<16x8xf32>
    %388 = vector.extract_strided_slice %347 {offsets = [0, 0, 16], sizes = [2, 8, 8], strides = [1, 1, 1]} : vector<2x8x32xf32> to vector<2x8x8xf32>
    %389 = vector.extract_strided_slice %348 {offsets = [0, 0, 16], sizes = [2, 8, 8], strides = [1, 1, 1]} : vector<2x8x32xf32> to vector<2x8x8xf32>
    %390 = vector.extract_strided_slice %349 {offsets = [0, 0, 16], sizes = [2, 8, 8], strides = [1, 1, 1]} : vector<2x8x32xf32> to vector<2x8x8xf32>
    "tpu.trace_start"() <{level = 10 : i32, message = "bqd,bkd->bqk"}> : () -> ()
    %cst_148 = arith.constant dense<0.000000e+00> : vector<2x8x8xf32>
    %391 = tpu.matmul %388, %389, %cst_148 {dimension_numbers = #tpu.dot_dimension_numbers<[2], [2], [1], [1], [0, 0, 0, 1, 1, 1], [0], [0]>} : vector<2x8x8xf32>, vector<2x8x8xf32>, vector<2x8x8xf32> -> vector<2x8x8xf32>
    "tpu.trace_stop"() : () -> ()
    %cst_149 = arith.constant 0.353553385 : f32
    %392 = vector.broadcast %cst_149 : f32 to vector<2x8x8xf32>
    %393 = arith.mulf %391, %392 : vector<2x8x8xf32>
    %394 = arith.addf %393, %5 : vector<2x8x8xf32>
    %cst_150 = arith.constant dense<0xFF800000> : vector<2x8xf32>
    %395 = vector.multi_reduction <maximumf>, %394, %cst_150 [2] : vector<2x8x8xf32> to vector<2x8xf32>
    %396 = vector.shape_cast %395 : vector<2x8xf32> to vector<2x8x1xf32>
    %397 = vector.broadcast %396 : vector<2x8x1xf32> to vector<2x8x8xf32>
    %398 = arith.subf %394, %397 : vector<2x8x8xf32>
    %399 = math.exp %398 : vector<2x8x8xf32>
    %cst_151 = arith.constant dense<0.000000e+00> : vector<2x8xf32>
    %400 = vector.multi_reduction <add>, %399, %cst_151 [2] : vector<2x8x8xf32> to vector<2x8xf32>
    %401 = vector.shape_cast %400 : vector<2x8xf32> to vector<2x8x1xf32>
    %402 = tpu.reciprocal %401 {approx = true} : vector<2x8x1xf32> -> vector<2x8x1xf32>
    %403 = vector.broadcast %402 : vector<2x8x1xf32> to vector<2x8x8xf32>
    %404 = arith.mulf %399, %403 : vector<2x8x8xf32>
    "tpu.trace_start"() <{level = 10 : i32, message = "bqk,bkd->bqd"}> : () -> ()
    %cst_152 = arith.constant dense<0.000000e+00> : vector<2x8x8xf32>
    %405 = tpu.matmul %404, %390, %cst_152 {dimension_numbers = #tpu.dot_dimension_numbers<[2], [1], [1], [2], [0, 0, 0, 1, 1, 2], [0], [0]>} : vector<2x8x8xf32>, vector<2x8x8xf32>, vector<2x8x8xf32> -> vector<2x8x8xf32>
    "tpu.trace_stop"() : () -> ()
    %406 = vector.shape_cast %405 : vector<2x8x8xf32> to vector<16x8xf32>
    %407 = vector.extract_strided_slice %347 {offsets = [0, 0, 24], sizes = [2, 8, 8], strides = [1, 1, 1]} : vector<2x8x32xf32> to vector<2x8x8xf32>
    %408 = vector.extract_strided_slice %348 {offsets = [0, 0, 24], sizes = [2, 8, 8], strides = [1, 1, 1]} : vector<2x8x32xf32> to vector<2x8x8xf32>
    %409 = vector.extract_strided_slice %349 {offsets = [0, 0, 24], sizes = [2, 8, 8], strides = [1, 1, 1]} : vector<2x8x32xf32> to vector<2x8x8xf32>
    "tpu.trace_start"() <{level = 10 : i32, message = "bqd,bkd->bqk"}> : () -> ()
    %cst_153 = arith.constant dense<0.000000e+00> : vector<2x8x8xf32>
    %410 = tpu.matmul %407, %408, %cst_153 {dimension_numbers = #tpu.dot_dimension_numbers<[2], [2], [1], [1], [0, 0, 0, 1, 1, 1], [0], [0]>} : vector<2x8x8xf32>, vector<2x8x8xf32>, vector<2x8x8xf32> -> vector<2x8x8xf32>
    "tpu.trace_stop"() : () -> ()
    %cst_154 = arith.constant 0.353553385 : f32
    %411 = vector.broadcast %cst_154 : f32 to vector<2x8x8xf32>
    %412 = arith.mulf %410, %411 : vector<2x8x8xf32>
    %413 = arith.addf %412, %5 : vector<2x8x8xf32>
    %cst_155 = arith.constant dense<0xFF800000> : vector<2x8xf32>
    %414 = vector.multi_reduction <maximumf>, %413, %cst_155 [2] : vector<2x8x8xf32> to vector<2x8xf32>
    %415 = vector.shape_cast %414 : vector<2x8xf32> to vector<2x8x1xf32>
    %416 = vector.broadcast %415 : vector<2x8x1xf32> to vector<2x8x8xf32>
    %417 = arith.subf %413, %416 : vector<2x8x8xf32>
    %418 = math.exp %417 : vector<2x8x8xf32>
    %cst_156 = arith.constant dense<0.000000e+00> : vector<2x8xf32>
    %419 = vector.multi_reduction <add>, %418, %cst_156 [2] : vector<2x8x8xf32> to vector<2x8xf32>
    %420 = vector.shape_cast %419 : vector<2x8xf32> to vector<2x8x1xf32>
    %421 = tpu.reciprocal %420 {approx = true} : vector<2x8x1xf32> -> vector<2x8x1xf32>
    %422 = vector.broadcast %421 : vector<2x8x1xf32> to vector<2x8x8xf32>
    %423 = arith.mulf %418, %422 : vector<2x8x8xf32>
    "tpu.trace_start"() <{level = 10 : i32, message = "bqk,bkd->bqd"}> : () -> ()
    %cst_157 = arith.constant dense<0.000000e+00> : vector<2x8x8xf32>
    %424 = tpu.matmul %423, %409, %cst_157 {dimension_numbers = #tpu.dot_dimension_numbers<[2], [1], [1], [2], [0, 0, 0, 1, 1, 2], [0], [0]>} : vector<2x8x8xf32>, vector<2x8x8xf32>, vector<2x8x8xf32> -> vector<2x8x8xf32>
    "tpu.trace_stop"() : () -> ()
    %425 = vector.shape_cast %424 : vector<2x8x8xf32> to vector<16x8xf32>
    %426 = tpu.concatenate %368, %387, %406, %425 in 1 : vector<16x8xf32>, vector<16x8xf32>, vector<16x8xf32>, vector<16x8xf32> -> vector<16x32xf32>
    %cst_158 = arith.constant dense<0.000000e+00> : vector<16x32xf32>
    %427 = tpu.matmul %426, %344, %cst_158 {dimension_numbers = #tpu.dot_dimension_numbers<[1], [0], [0], [1], [0, 0, 1, 1], [], []>} : vector<16x32xf32>, vector<32x32xf32>, vector<16x32xf32> -> vector<16x32xf32>
    %428 = vector.broadcast %346 : vector<1x32xf32> to vector<16x32xf32>
    %429 = arith.addf %427, %428 : vector<16x32xf32>
    %430 = arith.addf %308, %429 : vector<16x32xf32>
    %c8 = arith.constant 8 : index
    %431 = memref.load %arg18[%c8] : memref<14xf32, #tpu.memory_space<smem>>
    %c9 = arith.constant 9 : index
    %432 = memref.load %arg18[%c9] : memref<14xf32, #tpu.memory_space<smem>>
    %cst_159 = arith.constant dense<0.000000e+00> : vector<16xf32>
    %433 = vector.multi_reduction <add>, %430, %cst_159 [1] : vector<16x32xf32> to vector<16xf32>
    %434 = vector.shape_cast %433 : vector<16xf32> to vector<16x1xf32>
    %cst_160 = arith.constant 3.200000e+01 : f32
    %435 = vector.broadcast %cst_160 : f32 to vector<16x1xf32>
    %436 = arith.divf %434, %435 : vector<16x1xf32>
    %437 = vector.broadcast %436 : vector<16x1xf32> to vector<16x32xf32>
    %438 = arith.subf %430, %437 : vector<16x32xf32>
    %439 = arith.mulf %438, %438 : vector<16x32xf32>
    %cst_161 = arith.constant dense<0.000000e+00> : vector<16xf32>
    %440 = vector.multi_reduction <add>, %439, %cst_161 [1] : vector<16x32xf32> to vector<16xf32>
    %441 = vector.shape_cast %440 : vector<16xf32> to vector<16x1xf32>
    %cst_162 = arith.constant 0.0322580636 : f32
    %442 = vector.broadcast %cst_162 : f32 to vector<16x1xf32>
    %443 = arith.mulf %441, %442 : vector<16x1xf32>
    %444 = vector.broadcast %436 : vector<16x1xf32> to vector<16x32xf32>
    %445 = arith.subf %430, %444 : vector<16x32xf32>
    %446 = vector.broadcast %431 : f32 to vector<16x32xf32>
    %447 = arith.mulf %446, %445 : vector<16x32xf32>
    %448 = math.sqrt %443 : vector<16x1xf32>
    %cst_163 = arith.constant 9.99999997E-7 : f32
    %449 = vector.broadcast %cst_163 : f32 to vector<16x1xf32>
    %450 = arith.addf %448, %449 : vector<16x1xf32>
    %451 = vector.broadcast %450 : vector<16x1xf32> to vector<16x32xf32>
    %452 = arith.divf %447, %451 : vector<16x32xf32>
    %453 = vector.broadcast %432 : f32 to vector<16x32xf32>
    %454 = arith.addf %452, %453 : vector<16x32xf32>
    %c1_164 = arith.constant 1 : index
    %c0_165 = arith.constant 0 : index
    %c0_166 = arith.constant 0 : index
    %455 = vector.load %arg8[%c1_164, %c0_165, %c0_166] : memref<2x32x32xf32, #tpu.memory_space<vmem>>, vector<1x32x32xf32>
    %456 = vector.shape_cast %455 : vector<1x32x32xf32> to vector<32x32xf32>
    %cst_167 = arith.constant dense<0.000000e+00> : vector<16x32xf32>
    %457 = tpu.matmul %454, %456, %cst_167 {dimension_numbers = #tpu.dot_dimension_numbers<[1], [0], [0], [1], [0, 0, 1, 1], [], []>} : vector<16x32xf32>, vector<32x32xf32>, vector<16x32xf32> -> vector<16x32xf32>
    %c1_168 = arith.constant 1 : index
    %c0_169 = arith.constant 0 : index
    %c0_170 = arith.constant 0 : index
    %458 = vector.load %arg9[%c1_168, %c0_169, %c0_170] : memref<2x1x32xf32, #tpu.memory_space<vmem>>, vector<1x1x32xf32>
    %459 = vector.shape_cast %458 : vector<1x1x32xf32> to vector<1x32xf32>
    %460 = vector.broadcast %459 : vector<1x32xf32> to vector<16x32xf32>
    %461 = arith.addf %457, %460 : vector<16x32xf32>
    %c1_171 = arith.constant 1 : index
    %c0_172 = arith.constant 0 : index
    %c0_173 = arith.constant 0 : index
    %462 = vector.load %arg10[%c1_171, %c0_172, %c0_173] : memref<2x32x64xf32, #tpu.memory_space<vmem>>, vector<1x32x64xf32>
    %463 = vector.shape_cast %462 : vector<1x32x64xf32> to vector<32x64xf32>
    %cst_174 = arith.constant dense<0.000000e+00> : vector<16x64xf32>
    %464 = tpu.matmul %13, %463, %cst_174 {dimension_numbers = #tpu.dot_dimension_numbers<[1], [0], [0], [1], [0, 0, 1, 1], [], []>} : vector<16x32xf32>, vector<32x64xf32>, vector<16x64xf32> -> vector<16x64xf32>
    %c1_175 = arith.constant 1 : index
    %c0_176 = arith.constant 0 : index
    %c0_177 = arith.constant 0 : index
    %465 = vector.load %arg11[%c1_175, %c0_176, %c0_177] : memref<2x1x64xf32, #tpu.memory_space<vmem>>, vector<1x1x64xf32>
    %466 = vector.shape_cast %465 : vector<1x1x64xf32> to vector<1x64xf32>
    %467 = vector.broadcast %466 : vector<1x64xf32> to vector<16x64xf32>
    %468 = arith.addf %464, %467 : vector<16x64xf32>
    %469 = vector.extract_strided_slice %468 {offsets = [0, 0], sizes = [16, 32], strides = [1, 1]} : vector<16x64xf32> to vector<16x32xf32>
    %470 = vector.extract_strided_slice %468 {offsets = [0, 32], sizes = [16, 32], strides = [1, 1]} : vector<16x64xf32> to vector<16x32xf32>
    %c1_178 = arith.constant 1 : index
    %c0_179 = arith.constant 0 : index
    %c0_180 = arith.constant 0 : index
    %471 = vector.load %arg12[%c1_178, %c0_179, %c0_180] : memref<2x32x32xf32, #tpu.memory_space<vmem>>, vector<1x32x32xf32>
    %472 = vector.shape_cast %471 : vector<1x32x32xf32> to vector<32x32xf32>
    %c1_181 = arith.constant 1 : index
    %c0_182 = arith.constant 0 : index
    %c0_183 = arith.constant 0 : index
    %473 = vector.load %arg13[%c1_181, %c0_182, %c0_183] : memref<2x1x32xf32, #tpu.memory_space<vmem>>, vector<1x1x32xf32>
    %474 = vector.shape_cast %473 : vector<1x1x32xf32> to vector<1x32xf32>
    %475 = vector.shape_cast %461 : vector<16x32xf32> to vector<2x8x32xf32>
    %476 = vector.shape_cast %469 : vector<16x32xf32> to vector<2x8x32xf32>
    %477 = vector.shape_cast %470 : vector<16x32xf32> to vector<2x8x32xf32>
    %478 = vector.extract_strided_slice %475 {offsets = [0, 0, 0], sizes = [2, 8, 8], strides = [1, 1, 1]} : vector<2x8x32xf32> to vector<2x8x8xf32>
    %479 = vector.extract_strided_slice %476 {offsets = [0, 0, 0], sizes = [2, 8, 8], strides = [1, 1, 1]} : vector<2x8x32xf32> to vector<2x8x8xf32>
    %480 = vector.extract_strided_slice %477 {offsets = [0, 0, 0], sizes = [2, 8, 8], strides = [1, 1, 1]} : vector<2x8x32xf32> to vector<2x8x8xf32>
    "tpu.trace_start"() <{level = 10 : i32, message = "bqd,bkd->bqk"}> : () -> ()
    %cst_184 = arith.constant dense<0.000000e+00> : vector<2x8x8xf32>
    %481 = tpu.matmul %478, %479, %cst_184 {dimension_numbers = #tpu.dot_dimension_numbers<[2], [2], [1], [1], [0, 0, 0, 1, 1, 1], [0], [0]>} : vector<2x8x8xf32>, vector<2x8x8xf32>, vector<2x8x8xf32> -> vector<2x8x8xf32>
    "tpu.trace_stop"() : () -> ()
    %cst_185 = arith.constant 0.353553385 : f32
    %482 = vector.broadcast %cst_185 : f32 to vector<2x8x8xf32>
    %483 = arith.mulf %481, %482 : vector<2x8x8xf32>
    %484 = vector.broadcast %11 : vector<2x1x8xf32> to vector<2x8x8xf32>
    %485 = arith.addf %483, %484 : vector<2x8x8xf32>
    %cst_186 = arith.constant dense<0xFF800000> : vector<2x8xf32>
    %486 = vector.multi_reduction <maximumf>, %485, %cst_186 [2] : vector<2x8x8xf32> to vector<2x8xf32>
    %487 = vector.shape_cast %486 : vector<2x8xf32> to vector<2x8x1xf32>
    %488 = vector.broadcast %487 : vector<2x8x1xf32> to vector<2x8x8xf32>
    %489 = arith.subf %485, %488 : vector<2x8x8xf32>
    %490 = math.exp %489 : vector<2x8x8xf32>
    %cst_187 = arith.constant dense<0.000000e+00> : vector<2x8xf32>
    %491 = vector.multi_reduction <add>, %490, %cst_187 [2] : vector<2x8x8xf32> to vector<2x8xf32>
    %492 = vector.shape_cast %491 : vector<2x8xf32> to vector<2x8x1xf32>
    %493 = tpu.reciprocal %492 {approx = true} : vector<2x8x1xf32> -> vector<2x8x1xf32>
    %494 = vector.broadcast %493 : vector<2x8x1xf32> to vector<2x8x8xf32>
    %495 = arith.mulf %490, %494 : vector<2x8x8xf32>
    "tpu.trace_start"() <{level = 10 : i32, message = "bqk,bkd->bqd"}> : () -> ()
    %cst_188 = arith.constant dense<0.000000e+00> : vector<2x8x8xf32>
    %496 = tpu.matmul %495, %480, %cst_188 {dimension_numbers = #tpu.dot_dimension_numbers<[2], [1], [1], [2], [0, 0, 0, 1, 1, 2], [0], [0]>} : vector<2x8x8xf32>, vector<2x8x8xf32>, vector<2x8x8xf32> -> vector<2x8x8xf32>
    "tpu.trace_stop"() : () -> ()
    %497 = vector.shape_cast %496 : vector<2x8x8xf32> to vector<16x8xf32>
    %498 = vector.extract_strided_slice %475 {offsets = [0, 0, 8], sizes = [2, 8, 8], strides = [1, 1, 1]} : vector<2x8x32xf32> to vector<2x8x8xf32>
    %499 = vector.extract_strided_slice %476 {offsets = [0, 0, 8], sizes = [2, 8, 8], strides = [1, 1, 1]} : vector<2x8x32xf32> to vector<2x8x8xf32>
    %500 = vector.extract_strided_slice %477 {offsets = [0, 0, 8], sizes = [2, 8, 8], strides = [1, 1, 1]} : vector<2x8x32xf32> to vector<2x8x8xf32>
    "tpu.trace_start"() <{level = 10 : i32, message = "bqd,bkd->bqk"}> : () -> ()
    %cst_189 = arith.constant dense<0.000000e+00> : vector<2x8x8xf32>
    %501 = tpu.matmul %498, %499, %cst_189 {dimension_numbers = #tpu.dot_dimension_numbers<[2], [2], [1], [1], [0, 0, 0, 1, 1, 1], [0], [0]>} : vector<2x8x8xf32>, vector<2x8x8xf32>, vector<2x8x8xf32> -> vector<2x8x8xf32>
    "tpu.trace_stop"() : () -> ()
    %cst_190 = arith.constant 0.353553385 : f32
    %502 = vector.broadcast %cst_190 : f32 to vector<2x8x8xf32>
    %503 = arith.mulf %501, %502 : vector<2x8x8xf32>
    %504 = vector.broadcast %11 : vector<2x1x8xf32> to vector<2x8x8xf32>
    %505 = arith.addf %503, %504 : vector<2x8x8xf32>
    %cst_191 = arith.constant dense<0xFF800000> : vector<2x8xf32>
    %506 = vector.multi_reduction <maximumf>, %505, %cst_191 [2] : vector<2x8x8xf32> to vector<2x8xf32>
    %507 = vector.shape_cast %506 : vector<2x8xf32> to vector<2x8x1xf32>
    %508 = vector.broadcast %507 : vector<2x8x1xf32> to vector<2x8x8xf32>
    %509 = arith.subf %505, %508 : vector<2x8x8xf32>
    %510 = math.exp %509 : vector<2x8x8xf32>
    %cst_192 = arith.constant dense<0.000000e+00> : vector<2x8xf32>
    %511 = vector.multi_reduction <add>, %510, %cst_192 [2] : vector<2x8x8xf32> to vector<2x8xf32>
    %512 = vector.shape_cast %511 : vector<2x8xf32> to vector<2x8x1xf32>
    %513 = tpu.reciprocal %512 {approx = true} : vector<2x8x1xf32> -> vector<2x8x1xf32>
    %514 = vector.broadcast %513 : vector<2x8x1xf32> to vector<2x8x8xf32>
    %515 = arith.mulf %510, %514 : vector<2x8x8xf32>
    "tpu.trace_start"() <{level = 10 : i32, message = "bqk,bkd->bqd"}> : () -> ()
    %cst_193 = arith.constant dense<0.000000e+00> : vector<2x8x8xf32>
    %516 = tpu.matmul %515, %500, %cst_193 {dimension_numbers = #tpu.dot_dimension_numbers<[2], [1], [1], [2], [0, 0, 0, 1, 1, 2], [0], [0]>} : vector<2x8x8xf32>, vector<2x8x8xf32>, vector<2x8x8xf32> -> vector<2x8x8xf32>
    "tpu.trace_stop"() : () -> ()
    %517 = vector.shape_cast %516 : vector<2x8x8xf32> to vector<16x8xf32>
    %518 = vector.extract_strided_slice %475 {offsets = [0, 0, 16], sizes = [2, 8, 8], strides = [1, 1, 1]} : vector<2x8x32xf32> to vector<2x8x8xf32>
    %519 = vector.extract_strided_slice %476 {offsets = [0, 0, 16], sizes = [2, 8, 8], strides = [1, 1, 1]} : vector<2x8x32xf32> to vector<2x8x8xf32>
    %520 = vector.extract_strided_slice %477 {offsets = [0, 0, 16], sizes = [2, 8, 8], strides = [1, 1, 1]} : vector<2x8x32xf32> to vector<2x8x8xf32>
    "tpu.trace_start"() <{level = 10 : i32, message = "bqd,bkd->bqk"}> : () -> ()
    %cst_194 = arith.constant dense<0.000000e+00> : vector<2x8x8xf32>
    %521 = tpu.matmul %518, %519, %cst_194 {dimension_numbers = #tpu.dot_dimension_numbers<[2], [2], [1], [1], [0, 0, 0, 1, 1, 1], [0], [0]>} : vector<2x8x8xf32>, vector<2x8x8xf32>, vector<2x8x8xf32> -> vector<2x8x8xf32>
    "tpu.trace_stop"() : () -> ()
    %cst_195 = arith.constant 0.353553385 : f32
    %522 = vector.broadcast %cst_195 : f32 to vector<2x8x8xf32>
    %523 = arith.mulf %521, %522 : vector<2x8x8xf32>
    %524 = vector.broadcast %11 : vector<2x1x8xf32> to vector<2x8x8xf32>
    %525 = arith.addf %523, %524 : vector<2x8x8xf32>
    %cst_196 = arith.constant dense<0xFF800000> : vector<2x8xf32>
    %526 = vector.multi_reduction <maximumf>, %525, %cst_196 [2] : vector<2x8x8xf32> to vector<2x8xf32>
    %527 = vector.shape_cast %526 : vector<2x8xf32> to vector<2x8x1xf32>
    %528 = vector.broadcast %527 : vector<2x8x1xf32> to vector<2x8x8xf32>
    %529 = arith.subf %525, %528 : vector<2x8x8xf32>
    %530 = math.exp %529 : vector<2x8x8xf32>
    %cst_197 = arith.constant dense<0.000000e+00> : vector<2x8xf32>
    %531 = vector.multi_reduction <add>, %530, %cst_197 [2] : vector<2x8x8xf32> to vector<2x8xf32>
    %532 = vector.shape_cast %531 : vector<2x8xf32> to vector<2x8x1xf32>
    %533 = tpu.reciprocal %532 {approx = true} : vector<2x8x1xf32> -> vector<2x8x1xf32>
    %534 = vector.broadcast %533 : vector<2x8x1xf32> to vector<2x8x8xf32>
    %535 = arith.mulf %530, %534 : vector<2x8x8xf32>
    "tpu.trace_start"() <{level = 10 : i32, message = "bqk,bkd->bqd"}> : () -> ()
    %cst_198 = arith.constant dense<0.000000e+00> : vector<2x8x8xf32>
    %536 = tpu.matmul %535, %520, %cst_198 {dimension_numbers = #tpu.dot_dimension_numbers<[2], [1], [1], [2], [0, 0, 0, 1, 1, 2], [0], [0]>} : vector<2x8x8xf32>, vector<2x8x8xf32>, vector<2x8x8xf32> -> vector<2x8x8xf32>
    "tpu.trace_stop"() : () -> ()
    %537 = vector.shape_cast %536 : vector<2x8x8xf32> to vector<16x8xf32>
    %538 = vector.extract_strided_slice %475 {offsets = [0, 0, 24], sizes = [2, 8, 8], strides = [1, 1, 1]} : vector<2x8x32xf32> to vector<2x8x8xf32>
    %539 = vector.extract_strided_slice %476 {offsets = [0, 0, 24], sizes = [2, 8, 8], strides = [1, 1, 1]} : vector<2x8x32xf32> to vector<2x8x8xf32>
    %540 = vector.extract_strided_slice %477 {offsets = [0, 0, 24], sizes = [2, 8, 8], strides = [1, 1, 1]} : vector<2x8x32xf32> to vector<2x8x8xf32>
    "tpu.trace_start"() <{level = 10 : i32, message = "bqd,bkd->bqk"}> : () -> ()
    %cst_199 = arith.constant dense<0.000000e+00> : vector<2x8x8xf32>
    %541 = tpu.matmul %538, %539, %cst_199 {dimension_numbers = #tpu.dot_dimension_numbers<[2], [2], [1], [1], [0, 0, 0, 1, 1, 1], [0], [0]>} : vector<2x8x8xf32>, vector<2x8x8xf32>, vector<2x8x8xf32> -> vector<2x8x8xf32>
    "tpu.trace_stop"() : () -> ()
    %cst_200 = arith.constant 0.353553385 : f32
    %542 = vector.broadcast %cst_200 : f32 to vector<2x8x8xf32>
    %543 = arith.mulf %541, %542 : vector<2x8x8xf32>
    %544 = vector.broadcast %11 : vector<2x1x8xf32> to vector<2x8x8xf32>
    %545 = arith.addf %543, %544 : vector<2x8x8xf32>
    %cst_201 = arith.constant dense<0xFF800000> : vector<2x8xf32>
    %546 = vector.multi_reduction <maximumf>, %545, %cst_201 [2] : vector<2x8x8xf32> to vector<2x8xf32>
    %547 = vector.shape_cast %546 : vector<2x8xf32> to vector<2x8x1xf32>
    %548 = vector.broadcast %547 : vector<2x8x1xf32> to vector<2x8x8xf32>
    %549 = arith.subf %545, %548 : vector<2x8x8xf32>
    %550 = math.exp %549 : vector<2x8x8xf32>
    %cst_202 = arith.constant dense<0.000000e+00> : vector<2x8xf32>
    %551 = vector.multi_reduction <add>, %550, %cst_202 [2] : vector<2x8x8xf32> to vector<2x8xf32>
    %552 = vector.shape_cast %551 : vector<2x8xf32> to vector<2x8x1xf32>
    %553 = tpu.reciprocal %552 {approx = true} : vector<2x8x1xf32> -> vector<2x8x1xf32>
    %554 = vector.broadcast %553 : vector<2x8x1xf32> to vector<2x8x8xf32>
    %555 = arith.mulf %550, %554 : vector<2x8x8xf32>
    "tpu.trace_start"() <{level = 10 : i32, message = "bqk,bkd->bqd"}> : () -> ()
    %cst_203 = arith.constant dense<0.000000e+00> : vector<2x8x8xf32>
    %556 = tpu.matmul %555, %540, %cst_203 {dimension_numbers = #tpu.dot_dimension_numbers<[2], [1], [1], [2], [0, 0, 0, 1, 1, 2], [0], [0]>} : vector<2x8x8xf32>, vector<2x8x8xf32>, vector<2x8x8xf32> -> vector<2x8x8xf32>
    "tpu.trace_stop"() : () -> ()
    %557 = vector.shape_cast %556 : vector<2x8x8xf32> to vector<16x8xf32>
    %558 = tpu.concatenate %497, %517, %537, %557 in 1 : vector<16x8xf32>, vector<16x8xf32>, vector<16x8xf32>, vector<16x8xf32> -> vector<16x32xf32>
    %cst_204 = arith.constant dense<0.000000e+00> : vector<16x32xf32>
    %559 = tpu.matmul %558, %472, %cst_204 {dimension_numbers = #tpu.dot_dimension_numbers<[1], [0], [0], [1], [0, 0, 1, 1], [], []>} : vector<16x32xf32>, vector<32x32xf32>, vector<16x32xf32> -> vector<16x32xf32>
    %560 = vector.broadcast %474 : vector<1x32xf32> to vector<16x32xf32>
    %561 = arith.addf %559, %560 : vector<16x32xf32>
    %562 = arith.addf %430, %561 : vector<16x32xf32>
    %c10 = arith.constant 10 : index
    %563 = memref.load %arg18[%c10] : memref<14xf32, #tpu.memory_space<smem>>
    %c11 = arith.constant 11 : index
    %564 = memref.load %arg18[%c11] : memref<14xf32, #tpu.memory_space<smem>>
    %cst_205 = arith.constant dense<0.000000e+00> : vector<16xf32>
    %565 = vector.multi_reduction <add>, %562, %cst_205 [1] : vector<16x32xf32> to vector<16xf32>
    %566 = vector.shape_cast %565 : vector<16xf32> to vector<16x1xf32>
    %cst_206 = arith.constant 3.200000e+01 : f32
    %567 = vector.broadcast %cst_206 : f32 to vector<16x1xf32>
    %568 = arith.divf %566, %567 : vector<16x1xf32>
    %569 = vector.broadcast %568 : vector<16x1xf32> to vector<16x32xf32>
    %570 = arith.subf %562, %569 : vector<16x32xf32>
    %571 = arith.mulf %570, %570 : vector<16x32xf32>
    %cst_207 = arith.constant dense<0.000000e+00> : vector<16xf32>
    %572 = vector.multi_reduction <add>, %571, %cst_207 [1] : vector<16x32xf32> to vector<16xf32>
    %573 = vector.shape_cast %572 : vector<16xf32> to vector<16x1xf32>
    %cst_208 = arith.constant 0.0322580636 : f32
    %574 = vector.broadcast %cst_208 : f32 to vector<16x1xf32>
    %575 = arith.mulf %573, %574 : vector<16x1xf32>
    %576 = vector.broadcast %568 : vector<16x1xf32> to vector<16x32xf32>
    %577 = arith.subf %562, %576 : vector<16x32xf32>
    %578 = vector.broadcast %563 : f32 to vector<16x32xf32>
    %579 = arith.mulf %578, %577 : vector<16x32xf32>
    %580 = math.sqrt %575 : vector<16x1xf32>
    %cst_209 = arith.constant 9.99999997E-7 : f32
    %581 = vector.broadcast %cst_209 : f32 to vector<16x1xf32>
    %582 = arith.addf %580, %581 : vector<16x1xf32>
    %583 = vector.broadcast %582 : vector<16x1xf32> to vector<16x32xf32>
    %584 = arith.divf %579, %583 : vector<16x32xf32>
    %585 = vector.broadcast %564 : f32 to vector<16x32xf32>
    %586 = arith.addf %584, %585 : vector<16x32xf32>
    %c1_210 = arith.constant 1 : index
    %c0_211 = arith.constant 0 : index
    %c0_212 = arith.constant 0 : index
    %587 = vector.load %arg14[%c1_210, %c0_211, %c0_212] : memref<2x32x64xf32, #tpu.memory_space<vmem>>, vector<1x32x64xf32>
    %588 = vector.shape_cast %587 : vector<1x32x64xf32> to vector<32x64xf32>
    %cst_213 = arith.constant dense<0.000000e+00> : vector<16x64xf32>
    %589 = tpu.matmul %586, %588, %cst_213 {dimension_numbers = #tpu.dot_dimension_numbers<[1], [0], [0], [1], [0, 0, 1, 1], [], []>} : vector<16x32xf32>, vector<32x64xf32>, vector<16x64xf32> -> vector<16x64xf32>
    %c1_214 = arith.constant 1 : index
    %c0_215 = arith.constant 0 : index
    %c0_216 = arith.constant 0 : index
    %590 = vector.load %arg15[%c1_214, %c0_215, %c0_216] : memref<2x1x64xf32, #tpu.memory_space<vmem>>, vector<1x1x64xf32>
    %591 = vector.shape_cast %590 : vector<1x1x64xf32> to vector<1x64xf32>
    %592 = vector.broadcast %591 : vector<1x64xf32> to vector<16x64xf32>
    %593 = arith.addf %589, %592 : vector<16x64xf32>
    %cst_217 = arith.constant 0.000000e+00 : f32
    %594 = vector.broadcast %cst_217 : f32 to vector<16x64xf32>
    %595 = arith.maximumf %593, %594 : vector<16x64xf32>
    %c1_218 = arith.constant 1 : index
    %c0_219 = arith.constant 0 : index
    %c0_220 = arith.constant 0 : index
    %596 = vector.load %arg16[%c1_218, %c0_219, %c0_220] : memref<2x64x32xf32, #tpu.memory_space<vmem>>, vector<1x64x32xf32>
    %597 = vector.shape_cast %596 : vector<1x64x32xf32> to vector<64x32xf32>
    %cst_221 = arith.constant dense<0.000000e+00> : vector<16x32xf32>
    %598 = tpu.matmul %595, %597, %cst_221 {dimension_numbers = #tpu.dot_dimension_numbers<[1], [0], [0], [1], [0, 0, 1, 1], [], []>} : vector<16x64xf32>, vector<64x32xf32>, vector<16x32xf32> -> vector<16x32xf32>
    %599 = arith.addf %562, %598 : vector<16x32xf32>
    %c1_222 = arith.constant 1 : index
    %c0_223 = arith.constant 0 : index
    %c0_224 = arith.constant 0 : index
    %600 = vector.load %arg17[%c1_222, %c0_223, %c0_224] : memref<2x1x32xf32, #tpu.memory_space<vmem>>, vector<1x1x32xf32>
    %601 = vector.shape_cast %600 : vector<1x1x32xf32> to vector<1x32xf32>
    %602 = vector.broadcast %601 : vector<1x32xf32> to vector<16x32xf32>
    %603 = arith.addf %599, %602 : vector<16x32xf32>
    %c12 = arith.constant 12 : index
    %604 = memref.load %arg18[%c12] : memref<14xf32, #tpu.memory_space<smem>>
    %c13 = arith.constant 13 : index
    %605 = memref.load %arg18[%c13] : memref<14xf32, #tpu.memory_space<smem>>
    %cst_225 = arith.constant dense<0.000000e+00> : vector<16xf32>
    %606 = vector.multi_reduction <add>, %603, %cst_225 [1] : vector<16x32xf32> to vector<16xf32>
    %607 = vector.shape_cast %606 : vector<16xf32> to vector<16x1xf32>
    %cst_226 = arith.constant 3.200000e+01 : f32
    %608 = vector.broadcast %cst_226 : f32 to vector<16x1xf32>
    %609 = arith.divf %607, %608 : vector<16x1xf32>
    %610 = vector.broadcast %609 : vector<16x1xf32> to vector<16x32xf32>
    %611 = arith.subf %603, %610 : vector<16x32xf32>
    %612 = arith.mulf %611, %611 : vector<16x32xf32>
    %cst_227 = arith.constant dense<0.000000e+00> : vector<16xf32>
    %613 = vector.multi_reduction <add>, %612, %cst_227 [1] : vector<16x32xf32> to vector<16xf32>
    %614 = vector.shape_cast %613 : vector<16xf32> to vector<16x1xf32>
    %cst_228 = arith.constant 0.0322580636 : f32
    %615 = vector.broadcast %cst_228 : f32 to vector<16x1xf32>
    %616 = arith.mulf %614, %615 : vector<16x1xf32>
    %617 = vector.broadcast %609 : vector<16x1xf32> to vector<16x32xf32>
    %618 = arith.subf %603, %617 : vector<16x32xf32>
    %619 = vector.broadcast %604 : f32 to vector<16x32xf32>
    %620 = arith.mulf %619, %618 : vector<16x32xf32>
    %621 = math.sqrt %616 : vector<16x1xf32>
    %cst_229 = arith.constant 9.99999997E-7 : f32
    %622 = vector.broadcast %cst_229 : f32 to vector<16x1xf32>
    %623 = arith.addf %621, %622 : vector<16x1xf32>
    %624 = vector.broadcast %623 : vector<16x1xf32> to vector<16x32xf32>
    %625 = arith.divf %620, %624 : vector<16x32xf32>
    %626 = vector.broadcast %605 : f32 to vector<16x32xf32>
    %627 = arith.addf %625, %626 : vector<16x32xf32>
    %c0_230 = arith.constant 0 : index
    %c0_231 = arith.constant 0 : index
    %628 = vector.load %arg19[%c0_230, %c0_231] : memref<16x32xf32, #tpu.memory_space<vmem>>, vector<16x32xf32>
    tpu.vector_store %arg19[%c0_230, %c0_231], %627 {strides = array<i32>} : memref<16x32xf32, #tpu.memory_space<vmem>>, vector<16x32xf32>,
    return
  }
}

</mosaic_0001>

<bundles_post_ra>
// kernel: tpu_custom_call.1
= control target key start
LH: loop header
LB: loop body
LE: loop exit
PB: predicated region body
PF: predicated region fallthrough
CT: control target
= control target key end

     0   :  { %s9988_s0 = inlined_call_operand.hbm [shape: f32[16,32], index: 0, kind: input, shape index: {}]   ;;  %s9989_s1 = inlined_call_operand.hbm [shape: f32[16,32], index: 1, kind: input, shape index: {}]   ;;  %s9990_s2 = inlined_call_operand.vmem [shape: f32[2,1,8], index: 2, kind: input, shape index: {}]   ;;  %s9991_s3 = inlined_call_operand.hbm [shape: f32[2,8,8], index: 3, kind: input, shape index: {}]   ;;  %s9992_s4 = inlined_call_operand.vmem [shape: f32[2,32,96], index: 4, kind: input, shape index: {}]   ;;  %s9993_s5 = inlined_call_operand.vmem [shape: f32[2,1,96], index: 5, kind: input, shape index: {}]   ;;  %s9994_s6 = inlined_call_operand.vmem [shape: f32[2,32,32], index: 6, kind: input, shape index: {}]   ;;  %s9995_s7 = inlined_call_operand.vmem [shape: f32[2,1,32], index: 7, kind: input, shape index: {}]   ;;  %s9996_s8 = inlined_call_operand.vmem [shape: f32[2,32,32], index: 8, kind: input, shape index: {}]   ;;  %s9997_s9 = inlined_call_operand.vmem [shape: f32[2,1,32], index: 9, kind: input, shape index: {}]   ;;  %s9998_s10 = inlined_call_operand.hbm [shape: f32[2,32,64], index: 10, kind: input, shape index: {}]   ;;  %s9999_s11 = inlined_call_operand.vmem [shape: f32[2,1,64], index: 11, kind: input, shape index: {}]   ;;  %s10000_s12 = inlined_call_operand.hbm [shape: f32[2,32,32], index: 12, kind: input, shape index: {}]   ;;  %s10001_s13 = inlined_call_operand.vmem [shape: f32[2,1,32], index: 13, kind: input, shape index: {}]   ;;  %s10002_s14 = inlined_call_operand.hbm [shape: f32[2,32,64], index: 14, kind: input, shape index: {}]   ;;  %s10003_s15 = inlined_call_operand.vmem [shape: f32[2,1,64], index: 15, kind: input, shape index: {}]   ;;  %s10004_s16 = inlined_call_operand.vmem [shape: f32[2,64,32], index: 16, kind: input, shape index: {}]   ;;  %s10005_s17 = inlined_call_operand.vmem [shape: f32[2,1,32], index: 17, kind: input, shape index: {}]   ;;  %s10006_s18 = inlined_call_operand.vmem [shape: f32[14], index: 18, kind: input, shape index: {}]   ;;  %s10007_s19 = inlined_call_operand.hbm [shape: f32[16,32], index: 19, kind: output, shape index: {}]  }
   0x1   :  { %10021 = sst [smem:[#allocation22_spill]] %s9988_s0 }
   0x2   :  { %10022 = sst [smem:[#allocation23_spill]] %s9989_s1 }
   0x3   :  { %10023 = sst [smem:[#allocation24_spill]] %s9990_s2 }
   0x4   :  { %10024 = sst [smem:[#allocation25_spill]] %s9991_s3 }
   0x5   :  { %10025 = sst [smem:[#allocation26_spill]] %s10005_s17 }
   0x6   :  { %10026 = sst [smem:[#allocation27_spill]] %s10007_s19 }
   0x7   :  { %24 = vsyncpa [#allocation3], 0 }
   0x8   :  { %25 = vsyncpa [#allocation7], 0 }
   0x9   :  { %26 = vsyncpa [#allocation10], 0 }
   0xa   :  { %27 = vsyncpa [#allocation13], 0 }
   0xb   :  { %28 = vsyncpa [#allocation5], 0 }
   0xc   :  { %29 = vsyncpa [#allocation4], 0  ;;  %s8732_s0 = smov [#allocation6]   ;;  %s8733_s20 = smov [#allocation9]  }
   0xd   :  { %s47_s30 = sshll.u32 %s8732_s0, 4  ;;  %s85_s21 = sshll.u32 %s8733_s20, 4  ;;  %s48_s30 = int_to_ptr.vmem [resolvable:$true] %s47_s30  ;;  %s8857_s21 = int_to_ptr.vmem [resolvable:$true] %s85_s21 }
   0xe   :  { %s10027_s2 = sld [smem:[#allocation23_spill]] }
  0x14   :  { %s8554_s23 = scalar_lea.hbm %s10027_s2, 256 }
  0x15   :  { %p8555_p0 = scmp.ne.s32.totalorder %s10027_s2, %s8554_s23  ;;  %p8558_p1 = scmp.lt.u32.totalorder %s8554_s23, %s10027_s2 }
  0x17   :  { %p8560_p2 = pnand %p8558_p1, %p8555_p0 }
  0x19   :  { %8563 = shalt.err (!%p8560_p2)
}
  0x1a   :  { %s8564_s27 = scalar_lea.vmem %s48_s30, 256  ;;  %p8569_p4 = scmp.lt.s32.totalorder %s48_s30, %s48_s30 }
  0x1b   :  { %p8565_p3 = scmp.ne.s32.totalorder %s48_s30, %s8564_s27  ;;  %p8570_p5 = scmp.lt.s32.totalorder %s8564_s27, %s8564_s27 }
  0x1d   :  { %p8571_p6 = por %p8570_p5, %p8569_p4 }
  0x1f   :  { %p8572_p7 = pnand %p8571_p6, %p8565_p3 }
  0x21   :  { %8575 = shalt.err (!%p8572_p7)
}
  0x22   :  { %s10014_s28 = smov 128   ;;  %s8735_s29 = smov 8  }
  0x23   :  { %53 = dma.hbm_to_vmem [thread:$0]  %s10027_s2, 256, %s48_s30, [#allocation7], %s10014_s28, %s10014_s28, %s8735_s29  }
  0x24   :  { %s8576_s23 = scalar_lea.hbm %s9998_s10, 1024 }
  0x25   :  { %p8577_p8 = scmp.ne.s32.totalorder %s9998_s10, %s8576_s23  ;;  %p8580_p9 = scmp.lt.u32.totalorder %s8576_s23, %s9998_s10 }
  0x27   :  { %p8582_p10 = pnand %p8580_p9, %p8577_p8 }
  0x29   :  { %8585 = shalt.err (!%p8582_p10)
}
  0x2a   :  { %s8586_s27 = scalar_lea.vmem %s8857_s21, 1024  ;;  %p8591_p12 = scmp.lt.s32.totalorder %s8857_s21, %s8857_s21 }
  0x2b   :  { %p8587_p11 = scmp.ne.s32.totalorder %s8857_s21, %s8586_s27  ;;  %p8592_p13 = scmp.lt.s32.totalorder %s8586_s27, %s8586_s27 }
  0x2d   :  { %p8593_p0 = por %p8592_p13, %p8591_p12 }
  0x2f   :  { %p8594_p1 = pnand %p8593_p0, %p8587_p11 }
  0x31   :  { %8597 = shalt.err (!%p8594_p1)
}
  0x32   :  { %91 = dma.hbm_to_vmem [thread:$0]  %s9998_s10, 1024, %s8857_s21, [#allocation10], %s10014_s28, %s10014_s28, %s8735_s29  }
  0x33   :  { %s8736_s0 = smov [#allocation2]   ;;  %s8737_s1 = smov [#allocation8]  }
  0x34   :  { %s35_s20 = sshll.u32 %s8736_s0, 4  ;;  %s61_s22 = sshll.u32 %s8737_s1, 4  ;;  %s36_s20 = int_to_ptr.vmem [resolvable:$true] %s35_s20  ;;  %s8894_s22 = int_to_ptr.vmem [resolvable:$true] %s61_s22 }
  0x35   :  { %s10028_s25 = sld [smem:[#allocation22_spill]] }
  0x3b   :  { %s8598_s3 = scalar_lea.hbm %s10028_s25, 256 }
  0x3c   :  { %p8599_p2 = scmp.ne.s32.totalorder %s10028_s25, %s8598_s3  ;;  %p8602_p3 = scmp.lt.u32.totalorder %s8598_s3, %s10028_s25 }
  0x3e   :  { %p8604_p4 = pnand %p8602_p3, %p8599_p2 }
  0x40   :  { %8607 = shalt.err (!%p8604_p4)
}
  0x41   :  { %s8608_s10 = scalar_lea.vmem %s36_s20, 256  ;;  %p8613_p6 = scmp.lt.s32.totalorder %s36_s20, %s36_s20 }
  0x42   :  { %p8609_p5 = scmp.ne.s32.totalorder %s36_s20, %s8608_s10  ;;  %p8614_p7 = scmp.lt.s32.totalorder %s8608_s10, %s8608_s10 }
  0x44   :  { %p8615_p8 = por %p8614_p7, %p8613_p6 }
  0x46   :  { %p8616_p9 = pnand %p8615_p8, %p8609_p5 }
  0x48   :  { %8619 = shalt.err (!%p8616_p9)
}
  0x49   :  { %41 = dma.hbm_to_vmem [thread:$0]  %s10028_s25, 256, %s36_s20, [#allocation3], %s10014_s28, %s10014_s28, %s8735_s29  }
  0x4a   :  { %s10029_s17 = sld [smem:[#allocation25_spill]] }
  0x50   :  { %s8620_s19 = scalar_lea.hbm %s10029_s17, 256 }
  0x51   :  { %p8621_p10 = scmp.ne.s32.totalorder %s10029_s17, %s8620_s19  ;;  %p8624_p11 = scmp.lt.u32.totalorder %s8620_s19, %s10029_s17 }
  0x53   :  { %p8626_p12 = pnand %p8624_p11, %p8621_p10 }
  0x55   :  { %8629 = shalt.err (!%p8626_p12)
}
  0x56   :  { %s8630_s26 = scalar_lea.vmem %s8894_s22, 256  ;;  %p8635_p0 = scmp.lt.s32.totalorder %s8894_s22, %s8894_s22 }
  0x57   :  { %p8631_p13 = scmp.ne.s32.totalorder %s8894_s22, %s8630_s26  ;;  %p8636_p1 = scmp.lt.s32.totalorder %s8630_s26, %s8630_s26 }
  0x59   :  { %p8637_p2 = por %p8636_p1, %p8635_p0 }
  0x5b   :  { %p8638_p3 = pnand %p8637_p2, %p8631_p13 }
  0x5d   :  { %8641 = shalt.err (!%p8638_p3)
}
  0x5e   :  { %67 = dma.hbm_to_vmem [thread:$0]  %s10029_s17, 256, %s8894_s22, [#allocation7], %s10014_s28, %s10014_s28, %s8735_s29  }
  0x5f   :  { %s8738_s27 = smov [#allocation11]   ;;  %s8739_s21 = smov [#allocation12]  }
  0x60   :  { %s99_s10 = sshll.u32 %s8738_s27, 4  ;;  %s113_s30 = sshll.u32 %s8739_s21, 4  ;;  %s100_s10 = int_to_ptr.vmem [resolvable:$true] %s99_s10  ;;  %s8931_s30 = int_to_ptr.vmem [resolvable:$true] %s113_s30 }
  0x61   :  { %s8642_s19 = scalar_lea.hbm %s10000_s12, 1024 }
  0x62   :  { %p8643_p4 = scmp.ne.s32.totalorder %s10000_s12, %s8642_s19  ;;  %p8646_p5 = scmp.lt.u32.totalorder %s8642_s19, %s10000_s12 }
  0x64   :  { %p8648_p6 = pnand %p8646_p5, %p8643_p4 }
  0x66   :  { %8651 = shalt.err (!%p8648_p6)
}
  0x67   :  { %s8652_s22 = scalar_lea.vmem %s100_s10, 1024  ;;  %p8657_p8 = scmp.lt.s32.totalorder %s100_s10, %s100_s10 }
  0x68   :  { %p8653_p7 = scmp.ne.s32.totalorder %s100_s10, %s8652_s22  ;;  %p8658_p9 = scmp.lt.s32.totalorder %s8652_s22, %s8652_s22 }
  0x6a   :  { %p8659_p10 = por %p8658_p9, %p8657_p8 }
  0x6c   :  { %p8660_p11 = pnand %p8659_p10, %p8653_p7 }
  0x6e   :  { %8663 = shalt.err (!%p8660_p11)
}
  0x6f   :  { %105 = dma.hbm_to_vmem [thread:$0]  %s10000_s12, 1024, %s100_s10, [#allocation10], %s10014_s28, %s10014_s28, %s8735_s29  }
  0x70   :  { %s8664_s27 = scalar_lea.hbm %s10002_s14, 1024 }
  0x71   :  { %p8665_p12 = scmp.ne.s32.totalorder %s10002_s14, %s8664_s27  ;;  %p8668_p13 = scmp.lt.u32.totalorder %s8664_s27, %s10002_s14 }
  0x73   :  { %p8670_p0 = pnand %p8668_p13, %p8665_p12 }
  0x75   :  { %8673 = shalt.err (!%p8670_p0)
}
  0x76   :  { %s8674_s1 = scalar_lea.vmem %s8931_s30, 1024  ;;  %p8679_p2 = scmp.lt.s32.totalorder %s8931_s30, %s8931_s30 }
  0x77   :  { %p8675_p1 = scmp.ne.s32.totalorder %s8931_s30, %s8674_s1  ;;  %p8680_p3 = scmp.lt.s32.totalorder %s8674_s1, %s8674_s1 }
  0x79   :  { %p8681_p4 = por %p8680_p3, %p8679_p2 }
  0x7b   :  { %p8682_p5 = pnand %p8681_p4, %p8675_p1 }
  0x7d   :  { %8685 = shalt.err (!%p8682_p5)
}
  0x7e   :  { %119 = dma.hbm_to_vmem [thread:$0]  %s10002_s14, 1024, %s8931_s30, [#allocation13], %s10014_s28, %s10014_s28, %s8735_s29  }
  0x7f   :  { %s132_s3 = sshll.u32 %s10006_s18, 4  ;;  %s133_s3 = int_to_ptr.vmem [resolvable:$true] %s132_s3 }
  0x80   :  { %s8686_s22 = scalar_lea.vmem %s133_s3, 16  ;;  %p8691_p7 = scmp.lt.s32.totalorder %s133_s3, %s133_s3 }
  0x81   :  { %p8687_p6 = scmp.ne.s32.totalorder %s133_s3, %s8686_s22  ;;  %p8692_p8 = scmp.lt.s32.totalorder %s8686_s22, %s8686_s22 }
  0x83   :  { %p8693_p9 = por %p8692_p8, %p8691_p7 }
  0x85   :  { %p8694_p10 = pnand %p8693_p9, %p8687_p6 }
  0x87   :  { %8697 = shalt.err (!%p8694_p10)
}
  0x88   :  { %s8740_s17 = smov [#allocation14]  }
  0x89   :  { %135 = dma.vmem_to_smem %s133_s3, 16, %s8740_s17, [#allocation5]  }
  0x8a   :  { %8720 = dma.done.wait [#allocation3], 256  }
  0x8b   :  { %8721 = vsyncadd [#allocation3], 4294967040 }
  0x8c   :  { %8722 = dma.done.wait [#allocation7], 512  }
  0x8d   :  { %8723 = vsyncadd [#allocation7], 4294966784 }
  0x8e   :  { %8724 = dma.done.wait [#allocation10], 2048  }
  0x8f   :  { %8725 = vsyncadd [#allocation10], 4294965248 }
  0x90   :  { %8726 = dma.done.wait [#allocation13], 1024  }
  0x91   :  { %8727 = vsyncadd [#allocation13], 4294966272 }
  0x92   :  { %8728 = dma.done.wait [#allocation5], 16  }
  0x93   :  { %8729 = vsyncadd [#allocation5], 4294967280 }
  0x94   :  { %157 = sfence }
  0x95   :  { %v8971_v0 = vld [vmem:[#allocation2] sm:$0xff]  ;;  %vm176_vm0 = vcmask 261120   ;;  %v8973_v1 = vld [vmem:[#allocation2 + $0x8] sm:$0xff]  ;;  %v226_v16 = vld [vmem:[%s9992_s4 + $0x10] sm:$0xff]  ;;  %s174_s2 = sld [smem:[#allocation14]]  ;;  %s7327_s0 = sld [smem:[#allocation14 + $0x1]] }
  0x96   :  { %v177_v2 = vsel %vm176_vm0, %v8971_v0, 0.0  ;;  %v180_v3 = vsel %vm176_vm0, %v8973_v1, 0.0  ;;  %v224_v14 = vld [vmem:[%s9992_s4] sm:$0xff]  ;;  %v225_v15 = vld [vmem:[%s9992_s4 + $0x8] sm:$0xff]  ;;  %v227_v18 = vld [vmem:[%s9992_s4 + $0x18] sm:$0xff]  ;;  %v8741_v46 = vmov 0.0  }
  0x97   :  { %178 = vadd.xlane.f32.xlu0 %v177_v2  ;;  %v8215_v17 = vpack.c.bf16 %v225_v15, %v224_v14  ;;  %v8219_v19 = vpack.c.bf16 %v227_v18, %v226_v16  ;;  %7746 = vmatprep.subr.mxu0 %v8741_v46  ;;  %vm8742_vm5 = vmmov 0   ;;  %v7328_v47 = vld [vmem:[%s9993_s5] ss:$0 sm:$0xff]  ;;  %s8743_s12 = smov 96   ;;  %vm324_vm6 = vcmask 64512   ;;  %v159_v55 = vld [vmem:[#allocation8 + $0x8] sm:$0xff] }
  0x98   :  { %7748 = vmatprep.mubr.msk.f32.mxu0 %vm8742_vm5, %v8741_v46  ;;  %v158_v54 = vld [vmem:[#allocation8] sm:$0xff]  ;;  %vm161_vm8 = vcmp.eq.f32.partialorder %v159_v55, 0.0  ;;  %s8744_s10 = smov 64   ;;  %s8745_s23 = smov 88   ;;  %vm1685_vm9 = vcmask 195584   ;;  %vm1682_vm10 = vcmask 130048  }
  0x99   :  { %8216 = vmatprep.subr.bf16.mxu1 %v8215_v17  ;;  %vm160_vm7 = vcmp.eq.f32.partialorder %v158_v54, 0.0  ;;  %v9031_v62 = vsel %vm161_vm8, -1e+09, %v8741_v46  ;;  %s8746_s24 = smov 120   ;;  %s8747_s3 = smov 56   ;;  %vm3627_vm8 = vcmask 523264  }
  0x9a   :  { %8218 = vmatpush3.bf16.msra.mxu1 %v8215_v17  ;;  %v9027_v57 = vsel %vm160_vm7, -1e+09, %v8741_v46  ;;  %s8748_s22 = smov 80   ;;  %s8749_s17 = smov 112  }
  0x9b   :  { %181 = vadd.xlane.f32.xlu0 %v180_v3  ;;  %8220 = vmatprep.subr.bf16.mxu1 %v8219_v19  ;;  %v198_v36 = vstv %s174_s2  ;;  %v221_v39 = vstv %s7327_s0  ;;  %s8750_s14 = smov 48   ;;  %s8751_s18 = smov 72  }
  0x9c   :  { %s8752_s30 = smov 104   ;;  %s10015_s26 = smov 40  }
  0x9d   :  { %s10019_s20 = smov 16   ;;  %s10017_s25 = smov 24  }
  0x9e   :  { %8222 = vmatpush3.bf16.msra.mxu1 %v8219_v19  ;;  %s7359_s21 = sld [smem:[#allocation14 + $0x3]]  ;;  %s7402_s28 = sld [smem:[#allocation14 + $0x7]] }
  0x9f   :  { %7736 = vmatprep.subr.mxu1 %v8741_v46  ;;  %s7444_s2 = sld [smem:[#allocation14 + $0x9]]  ;;  %s7486_s27 = sld [smem:[#allocation14 + $0xb]] }
  0xa0   :  { %s8756_s0 = smov [#allocation15]  }
  0xa1   :  { %s7311_s19 = sshll.u32 %s8756_s0, 4  ;;  %s7312_s19 = int_to_ptr.vmem [resolvable:$true] %s7311_s19 }
  0xa2   :  { %s8698_s1 = scalar_lea.vmem %s7312_s19, 256  ;;  %p8703_p12 = scmp.lt.s32.totalorder %s7312_s19, %s7312_s19 }
  0xa3   :  { %p8699_p11 = scmp.ne.s32.totalorder %s7312_s19, %s8698_s1  ;;  %p8704_p13 = scmp.lt.s32.totalorder %s8698_s1, %s8698_s1 }
  0xa5   :  { %p8705_p0 = por %p8704_p13, %p8703_p12 }
  0xa7   :  { %p8706_p1 = pnand %p8705_p0, %p8699_p11 }
 0x124   :  { %v179_v4 = vpop.xlane.xlu0 %178 }
 0x125   :  { %v184_v5 = vmul.f32 0.03125, %v179_v4 }
 0x127   :  { %v186_v6 = vsub.f32 %v8971_v0, %v184_v5 }
 0x128   :  { %v182_v7 = vpop.xlane.xlu0 %181 }
 0x129   :  { %v185_v8 = vmul.f32 0.03125, %v182_v7  ;;  %v188_v9 = vmul.f32 %v186_v6, %v186_v6  ;;  %v199_v37 = vmul.f32 %v198_v36, %v186_v6 }
 0x12b   :  { %v187_v10 = vsub.f32 %v8973_v1, %v185_v8  ;;  %v190_v11 = vsel %vm176_vm0, %v188_v9, 0.0 }
 0x12c   :  { %191 = vadd.xlane.f32.xlu1 %v190_v11 }
 0x12d   :  { %v189_v12 = vmul.f32 %v187_v10, %v187_v10  ;;  %v200_v41 = vmul.f32 %v198_v36, %v187_v10 }
 0x12f   :  { %v193_v13 = vsel %vm176_vm0, %v189_v12, 0.0 }
 0x130   :  { %194 = vadd.xlane.f32.xlu1 %v193_v13 }
 0x1b9   :  { %v192_v20 = vpop.xlane.xlu1 %191 }
 0x1ba   :  { %v196_v21 = vmul.f32 0.032258064, %v192_v20 }
 0x1bc   :  { %8368 = vrsqrt.f32 %v196_v21  ;;  %vm203_vm1 = vcmp.eq.f32.partialorder %v196_v21, inf  ;;  %v206_v26 = vand.u32 2147483648, %v196_v21  ;;  %vm205_vm2 = vcmp.eq.f32.partialorder %v196_v21, 0.0 }
 0x1bd   :  { %v195_v22 = vpop.xlane.xlu1 %194 }
 0x1be   :  { %v197_v23 = vmul.f32 0.032258064, %v195_v22 }
 0x1c0   :  { %8370 = vrsqrt.f32 %v197_v23  ;;  %vm210_vm3 = vcmp.eq.f32.partialorder %v197_v23, inf  ;;  %v213_v32 = vand.u32 2147483648, %v197_v23  ;;  %vm212_vm4 = vcmp.eq.f32.partialorder %v197_v23, 0.0 }
 0x1c6   :  { %v8369_v24 = vpop.eup %8368 }
 0x1c7   :  { %v202_v25 = vmul.f32 %v8369_v24, %v196_v21 }
 0x1c9   :  { %v204_v27 = vsel %vm203_vm1, %v196_v21, %v202_v25 }
 0x1ca   :  { %v8371_v28 = vpop.eup %8370  ;;  %v207_v29 = vsel %vm205_vm2, %v206_v26, %v204_v27 }
 0x1cb   :  { %v209_v30 = vmul.f32 %v8371_v28, %v197_v23  ;;  %v215_v31 = vadd.f32 1e-06, %v207_v29 }
 0x1cd   :  { %v211_v33 = vsel %vm210_vm3, %v197_v23, %v209_v30  ;;  %8372 = vrcp.f32 %v215_v31 }
 0x1ce   :  { %v214_v34 = vsel %vm212_vm4, %v213_v32, %v211_v33 }
 0x1cf   :  { %v216_v35 = vadd.f32 1e-06, %v214_v34 }
 0x1d1   :  { %8374 = vrcp.f32 %v216_v35 }
 0x1d7   :  { %v8373_v38 = vpop.eup %8372 }
 0x1d8   :  { %v218_v40 = vmul.f32 %v8373_v38, %v199_v37 }
 0x1da   :  { %v222_v42 = vadd.f32 %v221_v39, %v218_v40 }
 0x1db   :  { %v8375_v43 = vpop.eup %8374 }
 0x1dc   :  { %v220_v44 = vmul.f32 %v8375_v43, %v200_v41  ;;  %7733 = vmatprep.mubr.msk.f32.mxu1 %vm176_vm0, %v222_v42 }
 0x1de   :  { %v223_v45 = vadd.f32 %v221_v39, %v220_v44 }
 0x1e0   :  { %7734 = vmatmul.mubr.msk.f32.vlgmr.msra.gmra.mrb[0].mxu1 %vm176_vm0, %v223_v45 }
 0x1e1   :  { %7738 = vmatprep.mubr.msk.f32.mxu1 %vm8742_vm5, %v8741_v46 }
 0x2b3   :  { %v7735_v48 = vpop.f32.mrb[0].mxu1 }
 0x2b4   :  { %v9006_v49 = vadd.f32 %v7735_v48, %v7328_v47  ;;  %v307_v50 = vpop.f32.mrb[1].mxu1 }
 0x2b5   :  { %v9008_v51 = vadd.f32 %v7328_v47, %v307_v50 }
 0x2b6   :  { %400 = vrot.lane.b32.xlu1 %v9006_v49, %s8743_s12 }
 0x2b7   :  { %322 = vrot.lane.b32.xlu0 %v9008_v51, %s8743_s12 }
 0x328   :  { %v401_v53 = vpop.permute.xlu1 %400 }
 0x329   :  { %v323_v52 = vpop.permute.xlu0 %322 }
 0x32a   :  { %7737 = vmatpush3.xpose.msk.msra.mxu1 %vm324_vm6, %v323_v52 }
 0x32b   :  { %7741 = vmatprep.subr.mxu1 %v8741_v46 }
 0x32d   :  { %7739 = vmatmul.mubr.msk.f32.vlgmr.msra.gmra.mrb[2].mxu1 %vm324_vm6, %v9008_v51 }
 0x32e   :  { %7742 = vmatpush3.xpose.msk.msra.mxu1 %vm324_vm6, %v401_v53  ;;  %7743 = vmatprep.mubr.msk.f32.mxu1 %vm8742_vm5, %v8741_v46 }
 0x32f   :  { %7751 = vmatprep.subr.mxu1 %v8741_v46 }
 0x331   :  { %7744 = vmatmul.mubr.msk.f32.vlgmr.msra.gmra.mrb[4].mxu1 %vm324_vm6, %v9006_v49 }
 0x332   :  { %7753 = vmatprep.mubr.msk.f32.mxu1 %vm8742_vm5, %v8741_v46 }
 0x400   :  { %v395_v56 = vpop.f32.mrb[2].mxu1 }
 0x401   :  { %v476_v58 = vmul.f32 0.35355338, %v395_v56  ;;  %v7740_v59 = vpop.f32.mrb[3].mxu1 }
 0x403   :  { %v478_v60 = vadd.f32 %v476_v58, %v9027_v57 }
 0x404   :  { %v472_v61 = vpop.f32.mrb[4].mxu1 }
 0x405   :  { %v477_v63 = vmul.f32 0.35355338, %v472_v61  ;;  %v7745_v2 = vpop.f32.mrb[5].mxu1  ;;  %v480_v3 = vsel %vm324_vm6, %v478_v60, -inf }
 0x406   :  { %481 = vmax.xlane.f32.xlu1 %v480_v3 }
 0x407   :  { %v479_v4 = vadd.f32 %v477_v63, %v9031_v62 }
 0x409   :  { %v483_v5 = vsel %vm324_vm6, %v479_v4, -inf }
 0x40a   :  { %484 = vmax.xlane.f32.xlu0 %v483_v5 }
 0x417   :  { %578 = vrot.lane.b32.xlu1 %v9006_v49, %s8744_s10 }
 0x41b   :  { %656 = vrot.lane.b32.xlu1 %v9008_v51, %s8745_s23 }
 0x41f   :  { %734 = vrot.lane.b32.xlu1 %v9006_v49, %s8745_s23 }
 0x420   :  { %502 = vrot.lane.b32.xlu0 %v9008_v51, %s8744_s10 }
 0x493   :  { %v482_v6 = vpop.xlane.xlu1 %481 }
 0x494   :  { %v486_v7 = vsub.f32 %v478_v60, %v482_v6 }
 0x496   :  { %v488_v8 = vmul.f32 1.442695, %v486_v7 }
 0x497   :  { %v485_v9 = vpop.xlane.xlu0 %484  ;;  %v579_v10 = vpop.permute.xlu1 %578 }
 0x498   :  { %8376 = vpow2.f32 %v488_v8  ;;  %v487_v11 = vsub.f32 %v479_v4, %v485_v9  ;;  %7752 = vmatpush3.msra.mxu1 %v579_v10 }
 0x499   :  { %7761 = vmatprep.subr.mxu1 %v8741_v46 }
 0x49a   :  { %v490_v12 = vmul.f32 1.442695, %v487_v11 }
 0x49b   :  { %v503_v13 = vpop.permute.xlu0 %502  ;;  %v657_v18 = vpop.permute.xlu1 %656 }
 0x49c   :  { %8378 = vpow2.f32 %v490_v12  ;;  %7747 = vmatpush3.msra.mxu0 %v503_v13 }
 0x49d   :  { %7756 = vmatprep.subr.mxu0 %v8741_v46 }
 0x49f   :  { %v735_v19 = vpop.permute.xlu1 %734 }
 0x4a2   :  { %v8377_v14 = vpop.eup %8376 }
 0x4a3   :  { %v492_v15 = vsel %vm324_vm6, %v8377_v14, 0.0 }
 0x4a4   :  { %493 = vadd.xlane.f32.xlu0 %v492_v15 }
 0x4a6   :  { %v8379_v16 = vpop.eup %8378 }
 0x4a7   :  { %v495_v17 = vsel %vm324_vm6, %v8379_v16, 0.0 }
 0x4a8   :  { %496 = vadd.xlane.f32.xlu1 %v495_v17 }
 0x4b9   :  { %732 = vrot.lane.b32.xlu1 %v9006_v49, %s8746_s24 }
 0x4ba   :  { %654 = vrot.lane.b32.xlu0 %v9008_v51, %s8746_s24 }
 0x531   :  { %v494_v20 = vpop.xlane.xlu0 %493 }
 0x532   :  { %8380 = vrcp.f32 %v494_v20 }
 0x535   :  { %v497_v21 = vpop.xlane.xlu1 %496  ;;  %v655_v26 = vpop.permute.xlu0 %654 }
 0x536   :  { %8382 = vrcp.f32 %v497_v21 }
 0x539   :  { %v733_v27 = vpop.permute.xlu1 %732 }
 0x53c   :  { %v8381_v22 = vpop.eup %8380 }
 0x53d   :  { %v500_v23 = vmul.f32 %v8381_v22, %v8377_v14 }
 0x53f   :  { %7749 = vmatmul.mubr.msk.f32.vlgmr.msra.gmra.mrb[0].mxu0 %vm324_vm6, %v500_v23 }
 0x540   :  { %v8383_v24 = vpop.eup %8382  ;;  %7757 = vmatpush3.xpose.msk.msra.mxu0 %vm324_vm6, %v657_v18  ;;  %7758 = vmatprep.mubr.msk.f32.mxu0 %vm8742_vm5, %v8741_v46 }
 0x541   :  { %v501_v25 = vmul.f32 %v8383_v24, %v8379_v16  ;;  %7766 = vmatprep.subr.mxu0 %v8741_v46 }
 0x543   :  { %7754 = vmatmul.mubr.msk.f32.vlgmr.msra.gmra.mrb[6].mxu1 %vm324_vm6, %v501_v25  ;;  %7759 = vmatmul.mubr.msk.f32.vlgmr.msra.gmra.mrb[2].mxu0 %vm324_vm6, %v655_v26 }
 0x544   :  { %7762 = vmatpush3.xpose.msk.msra.mxu1 %vm324_vm6, %v735_v19  ;;  %7763 = vmatprep.mubr.msk.f32.mxu1 %vm8742_vm5, %v8741_v46 }
 0x545   :  { %7771 = vmatprep.subr.mxu1 %v8741_v46  ;;  %7768 = vmatprep.mubr.msk.f32.mxu0 %vm8742_vm5, %v8741_v46 }
 0x547   :  { %7764 = vmatmul.mubr.msk.f32.vlgmr.msra.gmra.mrb[8].mxu1 %vm324_vm6, %v733_v27 }
 0x548   :  { %7773 = vmatprep.mubr.msk.f32.mxu1 %vm8742_vm5, %v8741_v46 }
 0x612   :  { %v9068_v28 = vpop.f32.mrb[0].mxu0 }
 0x613   :  { %v7750_v29 = vpop.f32.mrb[1].mxu0 }
 0x616   :  { %v9070_v30 = vpop.f32.mrb[6].mxu1  ;;  %v728_v31 = vpop.f32.mrb[2].mxu0 }
 0x617   :  { %v810_v32 = vmul.f32 0.35355338, %v728_v31  ;;  %v7755_v33 = vpop.f32.mrb[7].mxu1  ;;  %v7760_v34 = vpop.f32.mrb[3].mxu0 }
 0x619   :  { %v812_v35 = vadd.f32 %v810_v32, %v9027_v57 }
 0x61a   :  { %v806_v36 = vpop.f32.mrb[8].mxu1 }
 0x61b   :  { %v811_v37 = vmul.f32 0.35355338, %v806_v36  ;;  %v7765_v38 = vpop.f32.mrb[9].mxu1  ;;  %v814_v39 = vsel %vm324_vm6, %v812_v35, -inf }
 0x61c   :  { %815 = vmax.xlane.f32.xlu0 %v814_v39 }
 0x61d   :  { %v813_v40 = vadd.f32 %v811_v37, %v9031_v62 }
 0x61f   :  { %v817_v41 = vsel %vm324_vm6, %v813_v40, -inf }
 0x620   :  { %818 = vmax.xlane.f32.xlu1 %v817_v41 }
 0x631   :  { %912 = vrot.lane.b32.xlu1 %v9006_v49, %s8747_s3 }
 0x632   :  { %836 = vrot.lane.b32.xlu0 %v9008_v51, %s8747_s3 }
 0x635   :  { %990 = vrot.lane.b32.xlu1 %v9008_v51, %s8748_s22 }
 0x639   :  { %1068 = vrot.lane.b32.xlu1 %v9006_v49, %s8748_s22 }
 0x63d   :  { %1066 = vrot.lane.b32.xlu1 %v9006_v49, %s8749_s17 }
 0x6a9   :  { %v816_v42 = vpop.xlane.xlu0 %815 }
 0x6aa   :  { %v820_v43 = vsub.f32 %v812_v35, %v816_v42 }
 0x6ac   :  { %v822_v44 = vmul.f32 1.442695, %v820_v43 }
 0x6ad   :  { %v837_v45 = vpop.permute.xlu0 %836  ;;  %v819_v47 = vpop.xlane.xlu1 %818 }
 0x6ae   :  { %8384 = vpow2.f32 %v822_v44  ;;  %v821_v48 = vsub.f32 %v813_v40, %v819_v47  ;;  %7767 = vmatpush3.msra.mxu0 %v837_v45 }
 0x6af   :  { %7776 = vmatprep.subr.mxu0 %v8741_v46 }
 0x6b0   :  { %v824_v50 = vmul.f32 1.442695, %v821_v48 }
 0x6b1   :  { %v913_v52 = vpop.permute.xlu1 %912 }
 0x6b2   :  { %8386 = vpow2.f32 %v824_v50  ;;  %7772 = vmatpush3.msra.mxu1 %v913_v52 }
 0x6b3   :  { %7781 = vmatprep.subr.mxu1 %v8741_v46 }
 0x6b5   :  { %v991_v60 = vpop.permute.xlu1 %990 }
 0x6b8   :  { %v8385_v53 = vpop.eup %8384 }
 0x6b9   :  { %v826_v54 = vsel %vm324_vm6, %v8385_v53, 0.0  ;;  %v1069_v3 = vpop.permute.xlu1 %1068 }
 0x6ba   :  { %827 = vadd.xlane.f32.xlu0 %v826_v54 }
 0x6bc   :  { %v8387_v55 = vpop.eup %8386 }
 0x6bd   :  { %v829_v56 = vsel %vm324_vm6, %v8387_v55, 0.0  ;;  %v1067_v6 = vpop.permute.xlu1 %1066 }
 0x6be   :  { %830 = vadd.xlane.f32.xlu0 %v829_v56 }
 0x6d4   :  { %988 = vrot.lane.b32.xlu0 %v9008_v51, %s8749_s17 }
 0x747   :  { %v828_v58 = vpop.xlane.xlu0 %827 }
 0x748   :  { %8388 = vrcp.f32 %v828_v58 }
 0x74b   :  { %v831_v59 = vpop.xlane.xlu0 %830 }
 0x74c   :  { %8390 = vrcp.f32 %v831_v59 }
 0x74f   :  { %v989_v5 = vpop.permute.xlu0 %988 }
 0x752   :  { %v8389_v61 = vpop.eup %8388 }
 0x753   :  { %v834_v63 = vmul.f32 %v8389_v61, %v8385_v53 }
 0x755   :  { %7769 = vmatmul.mubr.msk.f32.vlgmr.msra.gmra.mrb[4].mxu0 %vm324_vm6, %v834_v63 }
 0x756   :  { %v8391_v2 = vpop.eup %8390  ;;  %7777 = vmatpush3.xpose.msk.msra.mxu0 %vm324_vm6, %v991_v60  ;;  %7778 = vmatprep.mubr.msk.f32.mxu0 %vm8742_vm5, %v8741_v46 }
 0x757   :  { %v835_v4 = vmul.f32 %v8391_v2, %v8387_v55  ;;  %7786 = vmatprep.subr.mxu0 %v8741_v46 }
 0x759   :  { %7774 = vmatmul.mubr.msk.f32.vlgmr.msra.gmra.mrb[10].mxu1 %vm324_vm6, %v835_v4  ;;  %7779 = vmatmul.mubr.msk.f32.vlgmr.msra.gmra.mrb[6].mxu0 %vm324_vm6, %v989_v5 }
 0x75a   :  { %7782 = vmatpush3.xpose.msk.msra.mxu1 %vm324_vm6, %v1069_v3  ;;  %7783 = vmatprep.mubr.msk.f32.mxu1 %vm8742_vm5, %v8741_v46 }
 0x75b   :  { %7791 = vmatprep.subr.mxu1 %v8741_v46  ;;  %7788 = vmatprep.mubr.msk.f32.mxu0 %vm8742_vm5, %v8741_v46 }
 0x75d   :  { %7784 = vmatmul.mubr.msk.f32.vlgmr.msra.gmra.mrb[12].mxu1 %vm324_vm6, %v1067_v6 }
 0x75e   :  { %7793 = vmatprep.mubr.msk.f32.mxu1 %vm8742_vm5, %v8741_v46 }
 0x828   :  { %v9108_v7 = vpop.f32.mrb[4].mxu0 }
 0x829   :  { %v7770_v8 = vpop.f32.mrb[5].mxu0 }
 0x82c   :  { %v9110_v9 = vpop.f32.mrb[10].mxu1  ;;  %v1062_v10 = vpop.f32.mrb[6].mxu0 }
 0x82d   :  { %v1144_v11 = vmul.f32 0.35355338, %v1062_v10  ;;  %v7775_v12 = vpop.f32.mrb[11].mxu1  ;;  %v7780_v13 = vpop.f32.mrb[7].mxu0 }
 0x82f   :  { %v1146_v14 = vadd.f32 %v1144_v11, %v9027_v57 }
 0x830   :  { %v1140_v15 = vpop.f32.mrb[12].mxu1 }
 0x831   :  { %v1145_v16 = vmul.f32 0.35355338, %v1140_v15  ;;  %v7785_v17 = vpop.f32.mrb[13].mxu1  ;;  %v1148_v18 = vsel %vm324_vm6, %v1146_v14, -inf }
 0x832   :  { %1149 = vmax.xlane.f32.xlu0 %v1148_v18 }
 0x833   :  { %v1147_v19 = vadd.f32 %v1145_v16, %v9031_v62 }
 0x835   :  { %v1151_v20 = vsel %vm324_vm6, %v1147_v19, -inf }
 0x836   :  { %1152 = vmax.xlane.f32.xlu1 %v1151_v20 }
 0x847   :  { %1246 = vrot.lane.b32.xlu1 %v9006_v49, %s8750_s14 }
 0x848   :  { %1170 = vrot.lane.b32.xlu0 %v9008_v51, %s8750_s14 }
 0x84b   :  { %1324 = vrot.lane.b32.xlu1 %v9008_v51, %s8751_s18 }
 0x84f   :  { %1402 = vrot.lane.b32.xlu1 %v9006_v49, %s8751_s18 }
 0x853   :  { %1400 = vrot.lane.b32.xlu1 %v9006_v49, %s8752_s30 }
 0x8bf   :  { %v1150_v21 = vpop.xlane.xlu0 %1149 }
 0x8c0   :  { %v1154_v22 = vsub.f32 %v1146_v14, %v1150_v21  ;;  %v318_v21 = vld [vmem:[%s9994_s6 + $0x10] sm:$0xff] }
 0x8c2   :  { %v1156_v23 = vmul.f32 1.442695, %v1154_v22  ;;  %v319_v22 = vld [vmem:[%s9994_s6 + $0x18] sm:$0xff] }
 0x8c3   :  { %v1171_v24 = vpop.permute.xlu0 %1170  ;;  %v1153_v25 = vpop.xlane.xlu1 %1152 }
 0x8c4   :  { %8392 = vpow2.f32 %v1156_v23  ;;  %v1155_v26 = vsub.f32 %v1147_v19, %v1153_v25  ;;  %7787 = vmatpush3.msra.mxu0 %v1171_v24  ;;  %v317_v19 = vld [vmem:[%s9994_s6 + $0x8] sm:$0xff]  ;;  %v8227_v23 = vpack.c.bf16 %v319_v22, %v318_v21 }
 0x8c5   :  { %7796 = vmatprep.subr.mxu0 %v8741_v46 }
 0x8c6   :  { %v1158_v27 = vmul.f32 1.442695, %v1155_v26 }
 0x8c7   :  { %v1247_v29 = vpop.permute.xlu1 %1246 }
 0x8c8   :  { %8394 = vpow2.f32 %v1158_v27  ;;  %7792 = vmatpush3.msra.mxu1 %v1247_v29 }
 0x8c9   :  { %7801 = vmatprep.subr.mxu1 %v8741_v46 }
 0x8cb   :  { %v1325_v37 = vpop.permute.xlu1 %1324 }
 0x8ce   :  { %v8393_v31 = vpop.eup %8392 }
 0x8cf   :  { %v1160_v32 = vsel %vm324_vm6, %v8393_v31, 0.0  ;;  %v1403_v41 = vpop.permute.xlu1 %1402 }
 0x8d0   :  { %1161 = vadd.xlane.f32.xlu0 %v1160_v32 }
 0x8d2   :  { %v8395_v33 = vpop.eup %8394 }
 0x8d3   :  { %v1163_v34 = vsel %vm324_vm6, %v8395_v33, 0.0  ;;  %v1401_v44 = vpop.permute.xlu1 %1400 }
 0x8d4   :  { %1164 = vadd.xlane.f32.xlu0 %v1163_v34 }
 0x8ea   :  { %1322 = vrot.lane.b32.xlu0 %v9008_v51, %s8752_s30 }
 0x95d   :  { %v1162_v35 = vpop.xlane.xlu0 %1161 }
 0x95e   :  { %8396 = vrcp.f32 %v1162_v35 }
 0x961   :  { %v1165_v36 = vpop.xlane.xlu0 %1164 }
 0x962   :  { %8398 = vrcp.f32 %v1165_v36 }
 0x965   :  { %v1323_v43 = vpop.permute.xlu0 %1322 }
 0x968   :  { %v8397_v38 = vpop.eup %8396 }
 0x969   :  { %v1168_v39 = vmul.f32 %v8397_v38, %v8393_v31 }
 0x96b   :  { %7789 = vmatmul.mubr.msk.f32.vlgmr.msra.gmra.mrb[8].mxu0 %vm324_vm6, %v1168_v39 }
 0x96c   :  { %v8399_v40 = vpop.eup %8398  ;;  %7797 = vmatpush3.xpose.msk.msra.mxu0 %vm324_vm6, %v1325_v37  ;;  %7798 = vmatprep.mubr.msk.f32.mxu0 %vm8742_vm5, %v8741_v46 }
 0x96d   :  { %v1169_v42 = vmul.f32 %v8399_v40, %v8395_v33  ;;  %7806 = vmatprep.subr.mxu0 %v8741_v46 }
 0x96f   :  { %7794 = vmatmul.mubr.msk.f32.vlgmr.msra.gmra.mrb[14].mxu1 %vm324_vm6, %v1169_v42  ;;  %7799 = vmatmul.mubr.msk.f32.vlgmr.msra.gmra.mrb[10].mxu0 %vm324_vm6, %v1323_v43 }
 0x970   :  { %7802 = vmatpush3.xpose.msk.msra.mxu1 %vm324_vm6, %v1403_v41  ;;  %7803 = vmatprep.mubr.msk.f32.mxu1 %vm8742_vm5, %v8741_v46 }
 0x971   :  { %7811 = vmatprep.subr.mxu1 %v8741_v46  ;;  %7808 = vmatprep.mubr.msk.f32.mxu0 %vm8742_vm5, %v8741_v46 }
 0x973   :  { %7804 = vmatmul.mubr.msk.f32.vlgmr.msra.gmra.mrb[16].mxu1 %vm324_vm6, %v1401_v44 }
 0x974   :  { %7813 = vmatprep.mubr.msk.f32.mxu1 %vm8742_vm5, %v8741_v46 }
 0xa3e   :  { %v1242_v45 = vpop.f32.mrb[8].mxu0 }
 0xa3f   :  { %v7790_v47 = vpop.f32.mrb[9].mxu0 }
 0xa42   :  { %v1318_v48 = vpop.f32.mrb[14].mxu1  ;;  %v1396_v50 = vpop.f32.mrb[10].mxu0 }
 0xa43   :  { %v1478_v52 = vmul.f32 0.35355338, %v1396_v50  ;;  %v7795_v53 = vpop.f32.mrb[15].mxu1  ;;  %v7800_v54 = vpop.f32.mrb[11].mxu0 }
 0xa45   :  { %v1480_v55 = vadd.f32 %v1478_v52, %v9027_v57 }
 0xa46   :  { %v1474_v56 = vpop.f32.mrb[16].mxu1 }
 0xa47   :  { %v1479_v58 = vmul.f32 0.35355338, %v1474_v56  ;;  %v7805_v59 = vpop.f32.mrb[17].mxu1  ;;  %v1482_v60 = vsel %vm324_vm6, %v1480_v55, -inf }
 0xa48   :  { %1483 = vmax.xlane.f32.xlu0 %v1482_v60 }
 0xa49   :  { %v1481_v61 = vadd.f32 %v1479_v58, %v9031_v62 }
 0xa4b   :  { %v1485_v63 = vsel %vm324_vm6, %v1481_v61, -inf }
 0xa4c   :  { %1486 = vmax.xlane.f32.xlu1 %v1485_v63  ;;  %v1918_v63 = vld [vmem:[#allocation9 + $0x8] sm:$0xff] }
 0xa5d   :  { %1580 = vrot.lane.b32.xlu1 %v9006_v49, %s10015_s26 }
 0xa61   :  { %1658 = vrot.lane.b32.xlu1 %v9108_v7, %s8735_s29 }
 0xa65   :  { %1660 = vrot.lane.b32.xlu1 %v9110_v9, %s8735_s29 }
 0xa69   :  { %1668 = vrot.lane.b32.xlu1 %v1318_v48, %s10019_s20 }
 0xad5   :  { %v1484_v2 = vpop.xlane.xlu0 %1483 }
 0xad6   :  { %v1488_v3 = vsub.f32 %v1480_v55, %v1484_v2  ;;  %v1825_v2 = vld [vmem:[%s9996_s8] sm:$0xff] }
 0xad8   :  { %v1490_v4 = vmul.f32 1.442695, %v1488_v3 }
 0xad9   :  { %v1487_v5 = vpop.xlane.xlu1 %1486 }
 0xada   :  { %8400 = vpow2.f32 %v1490_v4  ;;  %v1489_v6 = vsub.f32 %v1481_v61, %v1487_v5  ;;  %v1917_v61 = vld [vmem:[#allocation9] sm:$0xff]  ;;  %v1826_v4 = vld [vmem:[%s9996_s8 + $0x8] sm:$0xff]  ;;  %v1919_v5 = vld [vmem:[#allocation9 + $0x10] sm:$0xff] }
 0xadb   :  { %v8239_v3 = vpack.c.bf16 %v1918_v63, %v1917_v61 }
 0xadc   :  { %v1492_v8 = vmul.f32 1.442695, %v1489_v6  ;;  %v1920_v6 = vld [vmem:[#allocation9 + $0x18] sm:$0xff] }
 0xadd   :  { %v1581_v10 = vpop.permute.xlu1 %1580 }
 0xade   :  { %8402 = vpow2.f32 %v1492_v8  ;;  %7812 = vmatpush3.msra.mxu1 %v1581_v10  ;;  %v8231_v8 = vpack.c.bf16 %v1826_v4, %v1825_v2  ;;  %v8243_v10 = vpack.c.bf16 %v1920_v6, %v1919_v5 }
 0xae0   :  { %8232 = vmatprep.subr.bf16.mxu1 %v8231_v8 }
 0xae1   :  { %v1659_v29 = vpop.permute.xlu1 %1658 }
 0xae2   :  { %v1680_v33 = vsel %vm324_vm6, %v9068_v28, %v1659_v29  ;;  %v7355_v28 = vld [vmem:[%s9995_s7] ss:$0 sm:$0xff] }
 0xae4   :  { %v8401_v49 = vpop.eup %8400 }
 0xae5   :  { %v1494_v11 = vsel %vm324_vm6, %v8401_v49, 0.0  ;;  %v1661_v31 = vpop.permute.xlu1 %1660 }
 0xae6   :  { %1495 = vadd.xlane.f32.xlu0 %v1494_v11  ;;  %v1681_v38 = vsel %vm324_vm6, %v9070_v30, %v1661_v31  ;;  %v1827_v11 = vld [vmem:[%s9996_s8 + $0x10] sm:$0xff] }
 0xae8   :  { %v8403_v7 = vpop.eup %8402 }
 0xae9   :  { %v1497_v9 = vsel %vm324_vm6, %v8403_v7, 0.0  ;;  %v1669_v34 = vpop.permute.xlu1 %1668 }
 0xaea   :  { %1498 = vadd.xlane.f32.xlu0 %v1497_v9  ;;  %v1684_v39 = vsel %vm1682_vm10, %v1681_v38, %v1669_v34 }
 0xb00   :  { %1504 = vrot.lane.b32.xlu0 %v9008_v51, %s10015_s26  ;;  %v316_v51 = vld [vmem:[%s9994_s6] sm:$0xff]  ;;  %s7358_s26 = sld [smem:[#allocation14 + $0x2]] }
 0xb01   :  { %v8223_v20 = vpack.c.bf16 %v317_v19, %v316_v51 }
 0xb04   :  { %1666 = vrot.lane.b32.xlu0 %v1242_v45, %s10019_s20 }
 0xb06   :  { %v1799_v29 = vstv %s7358_s26  ;;  %s10030_s26 = sld [smem:[#allocation24_spill]] }
 0xb73   :  { %v1496_v12 = vpop.xlane.xlu0 %1495 }
 0xb74   :  { %8404 = vrcp.f32 %v1496_v12  ;;  %v173_v12 = vld [vmem:[#allocation6 + $0x8] sm:$0xff] }
 0xb77   :  { %v1499_v13 = vpop.xlane.xlu0 %1498 }
 0xb78   :  { %8406 = vrcp.f32 %v1499_v13 }
 0xb7b   :  { %v1505_v14 = vpop.permute.xlu0 %1504 }
 0xb7c   :  { %7807 = vmatpush3.msra.mxu0 %v1505_v14 }
 0xb7d   :  { %8224 = vmatprep.subr.bf16.mxu0 %v8223_v20 }
 0xb7e   :  { %v8405_v15 = vpop.eup %8404 }
 0xb7f   :  { %v1502_v16 = vmul.f32 %v8405_v15, %v8401_v49  ;;  %v1667_v32 = vpop.permute.xlu0 %1666  ;;  %v172_v49 = vld [vmem:[#allocation6] sm:$0xff] }
 0xb80   :  { %v1683_v35 = vsel %vm1682_vm10, %v1680_v33, %v1667_v32  ;;  %v1822_v33 = vstv %s7359_s21 }
 0xb81   :  { %7809 = vmatmul.mubr.msk.f32.vlgmr.msra.gmra.mrb[12].mxu0 %vm324_vm6, %v1502_v16 }
 0xb82   :  { %v8407_v17 = vpop.eup %8406  ;;  %8226 = vmatpush3.bf16.msra.mxu0 %v8223_v20 }
 0xb83   :  { %v1503_v18 = vmul.f32 %v8407_v17, %v8403_v7  ;;  %8228 = vmatprep.subr.bf16.mxu0 %v8227_v23  ;;  %v1828_v7 = vld [vmem:[%s9996_s8 + $0x18] sm:$0xff] }
 0xb84   :  { %v8235_v9 = vpack.c.bf16 %v1828_v7, %v1827_v11 }
 0xb85   :  { %7814 = vmatmul.mubr.msk.f32.vlgmr.msra.gmra.mrb[18].mxu1 %vm324_vm6, %v1503_v18 }
 0xb86   :  { %8230 = vmatpush3.bf16.msra.mxu0 %v8227_v23  ;;  %8234 = vmatpush3.bf16.msra.mxu1 %v8231_v8 }
 0xb87   :  { %8240 = vmatprep.subr.bf16.mxu0 %v8239_v3  ;;  %8236 = vmatprep.subr.bf16.mxu1 %v8235_v9 }
 0xb8a   :  { %8238 = vmatpush3.bf16.msra.mxu1 %v8235_v9 }
 0xb8b   :  { %7849 = vmatprep.subr.mxu1 %v8741_v46 }
 0xc54   :  { %v1576_v24 = vpop.f32.mrb[12].mxu0 }
 0xc55   :  { %1674 = vrot.lane.b32.xlu0 %v1576_v24, %s10017_s25  ;;  %v7810_v25 = vpop.f32.mrb[13].mxu0 }
 0xc58   :  { %v1652_v26 = vpop.f32.mrb[18].mxu1 }
 0xc59   :  { %1676 = vrot.lane.b32.xlu1 %v1652_v26, %s10017_s25  ;;  %v7815_v27 = vpop.f32.mrb[19].mxu1 }
 0xcc7   :  { %v1675_v36 = vpop.permute.xlu0 %1674 }
 0xcc8   :  { %v1686_v37 = vsel %vm1685_vm9, %v1683_v35, %v1675_v36 }
 0xcc9   :  { %7824 = vmatprep.mubr.msk.f32.mxu0 %vm176_vm0, %v1686_v37 }
 0xccb   :  { %v1677_v40 = vpop.permute.xlu1 %1676 }
 0xccc   :  { %v1687_v41 = vsel %vm1685_vm9, %v1684_v39, %v1677_v40  ;;  %v7363_v40 = vld [vmem:[%s9999_s11] ss:$0 sm:$0xff] }
 0xccd   :  { %7825 = vmatmul.mubr.msk.f32.vlgmr.msra.gmra.mrb[14].mxu0 %vm176_vm0, %v1687_v41 }
 0xcce   :  { %7846 = vmatprep.mubr.msk.f32.mxu0 %vm176_vm0, %v172_v49  ;;  %8242 = vmatpush3.bf16.msra.mxu0 %v8239_v3 }
 0xccf   :  { %8244 = vmatprep.subr.bf16.mxu0 %v8243_v10 }
 0xcd2   :  { %8246 = vmatpush3.bf16.msra.mxu0 %v8243_v10 }
 0xcd3   :  { %7859 = vmatprep.subr.mxu0 %v8741_v46 }
 0xcd5   :  { %7847 = vmatmul.mubr.msk.f32.vlgmr.msra.gmra.mrb[16].mxu0 %vm176_vm0, %v173_v12 }
 0xcd6   :  { %7861 = vmatprep.mubr.msk.f32.mxu0 %vm8742_vm5, %v8741_v46 }
 0xda0   :  { %v7826_v42 = vpop.f32.mrb[14].mxu0 }
 0xda1   :  { %v1772_v43 = vadd.f32 %v7826_v42, %v7355_v28  ;;  %v1766_v44 = vpop.f32.mrb[15].mxu0 }
 0xda2   :  { %v1767_v45 = vadd.f32 %v7355_v28, %v1766_v44  ;;  %v7360_v44 = vld [vmem:[%s9997_s9] ss:$0 sm:$0xff] }
 0xda3   :  { %v9194_v47 = vadd.f32 %v1772_v43, %v8973_v1 }
 0xda4   :  { %v9197_v30 = vadd.f32 %v1767_v45, %v8971_v0 }
 0xda5   :  { %v1782_v48 = vsel %vm176_vm0, %v9194_v47, 0.0 }
 0xda6   :  { %1783 = vadd.xlane.f32.xlu1 %v1782_v48  ;;  %v1779_v50 = vsel %vm176_vm0, %v9197_v30, 0.0 }
 0xda7   :  { %1780 = vadd.xlane.f32.xlu0 %v1779_v50 }
 0xda8   :  { %v7848_v41 = vpop.f32.mrb[16].mxu0 }
 0xda9   :  { %v9237_v28 = vadd.f32 %v7848_v41, %v7363_v40  ;;  %v2000_v42 = vpop.f32.mrb[17].mxu0 }
 0xdaa   :  { %v9239_v43 = vadd.f32 %v7363_v40, %v2000_v42 }
 0xe33   :  { %v1784_v52 = vpop.xlane.xlu1 %1783 }
 0xe34   :  { %v1786_v53 = vmul.f32 0.03125, %v1784_v52  ;;  %v1781_v54 = vpop.xlane.xlu0 %1780 }
 0xe35   :  { %v1785_v55 = vmul.f32 0.03125, %v1781_v54  ;;  %v164_v54 = vld [vmem:[%s10030_s26] sm:$0x1] }
 0xe36   :  { %v9204_v56 = vsub.f32 %v9194_v47, %v1786_v53  ;;  %v2170_v53 = vlaneseq  ;;  %vm166_vm15 = vcmp.eq.f32.partialorder %v164_v54, 0.0 }
 0xe37   :  { %v1787_v1 = vsub.f32 %v9197_v30, %v1785_v55 }
 0xe38   :  { %v1790_v59 = vmul.f32 %v9204_v56, %v9204_v56  ;;  %v1801_v35 = vmul.f32 %v1799_v29, %v9204_v56  ;;  %v2171_v55 = vshrl.u32 %v2170_v53, 7  ;;  %v165_v56 = vld [vmem:[%s10030_s26 + $0x1] sm:$0x1] }
 0xe39   :  { %v1789_v58 = vmul.f32 %v1787_v1, %v1787_v1  ;;  %v1800_v31 = vmul.f32 %v1799_v29, %v1787_v1  ;;  %vm167_vm1 = vcmp.eq.f32.partialorder %v165_v56, 0.0 }
 0xe3a   :  { %v1794_v60 = vsel %vm176_vm0, %v1790_v59, 0.0  ;;  %v2172_v1 = vsub.s32 0, %v2171_v55 }
 0xe3b   :  { %v1791_v0 = vsel %vm176_vm0, %v1789_v58, 0.0  ;;  %v168_v58 = vsel %vm166_vm15, -1e+09, %v8741_v46 }
 0xe3c   :  { %1792 = vadd.xlane.f32.xlu0 %v1791_v0  ;;  %v9269_v0 = vrot.slane %v168_v58, %v2172_v1 }
 0xe40   :  { %1795 = vadd.xlane.f32.xlu0 %v1794_v60  ;;  %v169_v60 = vsel %vm167_vm1, -1e+09, %v8741_v46 }
 0xe41   :  { %v9273_v3 = vrot.slane %v169_v60, %v2172_v1 }
 0xec9   :  { %v1793_v13 = vpop.xlane.xlu0 %1792 }
 0xeca   :  { %v1797_v14 = vmul.f32 0.032258064, %v1793_v13 }
 0xecc   :  { %8408 = vrsqrt.f32 %v1797_v14  ;;  %vm1804_vm11 = vcmp.eq.f32.partialorder %v1797_v14, inf  ;;  %v1807_v51 = vand.u32 2147483648, %v1797_v14  ;;  %vm1806_vm12 = vcmp.eq.f32.partialorder %v1797_v14, 0.0 }
 0xecd   :  { %v1796_v15 = vpop.xlane.xlu0 %1795 }
 0xece   :  { %v1798_v16 = vmul.f32 0.032258064, %v1796_v15 }
 0xed0   :  { %8410 = vrsqrt.f32 %v1798_v16  ;;  %vm1811_vm13 = vcmp.eq.f32.partialorder %v1798_v16, inf  ;;  %v1814_v24 = vand.u32 2147483648, %v1798_v16  ;;  %vm1813_vm14 = vcmp.eq.f32.partialorder %v1798_v16, 0.0 }
 0xed6   :  { %v8409_v17 = vpop.eup %8408 }
 0xed7   :  { %v1803_v18 = vmul.f32 %v8409_v17, %v1797_v14 }
 0xed9   :  { %v1805_v19 = vsel %vm1804_vm11, %v1797_v14, %v1803_v18 }
 0xeda   :  { %v8411_v20 = vpop.eup %8410  ;;  %v1808_v21 = vsel %vm1806_vm12, %v1807_v51, %v1805_v19 }
 0xedb   :  { %v1810_v22 = vmul.f32 %v8411_v20, %v1798_v16  ;;  %v1816_v23 = vadd.f32 1e-06, %v1808_v21 }
 0xedd   :  { %v1812_v25 = vsel %vm1811_vm13, %v1798_v16, %v1810_v22  ;;  %8412 = vrcp.f32 %v1816_v23 }
 0xede   :  { %v1815_v26 = vsel %vm1813_vm14, %v1814_v24, %v1812_v25 }
 0xedf   :  { %v1817_v27 = vadd.f32 1e-06, %v1815_v26 }
 0xee1   :  { %8414 = vrcp.f32 %v1817_v27 }
 0xee7   :  { %v8413_v32 = vpop.eup %8412 }
 0xee8   :  { %v1819_v34 = vmul.f32 %v8413_v32, %v1800_v31 }
 0xeea   :  { %v1823_v36 = vadd.f32 %v1822_v33, %v1819_v34 }
 0xeeb   :  { %v8415_v37 = vpop.eup %8414 }
 0xeec   :  { %v1821_v38 = vmul.f32 %v8415_v37, %v1801_v35  ;;  %7835 = vmatprep.mubr.msk.f32.mxu1 %vm176_vm0, %v1823_v36 }
 0xeee   :  { %v1824_v39 = vadd.f32 %v1822_v33, %v1821_v38 }
 0xef0   :  { %7836 = vmatmul.mubr.msk.f32.vlgmr.msra.gmra.mrb[20].mxu1 %vm176_vm0, %v1824_v39 }
 0xef1   :  { %7851 = vmatprep.mubr.msk.f32.mxu1 %vm8742_vm5, %v8741_v46  ;;  %7850 = vmatpush3.xpose.msk.msra.mxu1 %vm324_vm6, %v9239_v43 }
 0xef2   :  { %7854 = vmatprep.subr.mxu1 %v8741_v46 }
 0xfc3   :  { %v7837_v45 = vpop.f32.mrb[20].mxu1 }
 0xfc4   :  { %v1908_v48 = vpop.f32.mrb[21].mxu1  ;;  %v9255_v52 = vadd.f32 %v7837_v45, %v7360_v44 }
 0xfc5   :  { %v9247_v50 = vadd.f32 %v7360_v44, %v1908_v48 }
 0xfc7   :  { %7852 = vmatmul.mubr.msk.f32.vlgmr.msra.gmra.mrb[22].mxu1 %vm324_vm6, %v9247_v50 }
 0xfc8   :  { %7855 = vmatpush3.xpose.msk.msra.mxu1 %vm324_vm6, %v9237_v28  ;;  %7856 = vmatprep.mubr.msk.f32.mxu1 %vm8742_vm5, %v8741_v46 }
 0xfc9   :  { %7864 = vmatprep.subr.mxu1 %v8741_v46 }
 0xfcb   :  { %7857 = vmatmul.mubr.msk.f32.vlgmr.msra.gmra.mrb[24].mxu1 %vm324_vm6, %v9255_v52 }
 0xfcc   :  { %7866 = vmatprep.mubr.msk.f32.mxu1 %vm8742_vm5, %v8741_v46 }
0x109a   :  { %v2086_v59 = vpop.f32.mrb[22].mxu1 }
0x109b   :  { %v2166_v61 = vmul.f32 0.35355338, %v2086_v59  ;;  %v7853_v63 = vpop.f32.mrb[23].mxu1 }
0x109d   :  { %v2180_v2 = vadd.f32 %v9269_v0, %v2166_v61 }
0x109e   :  { %v2162_v4 = vpop.f32.mrb[24].mxu1 }
0x109f   :  { %v2167_v5 = vmul.f32 0.35355338, %v2162_v4  ;;  %v7858_v6 = vpop.f32.mrb[25].mxu1  ;;  %v2182_v8 = vsel %vm324_vm6, %v2180_v2, -inf }
0x10a0   :  { %2183 = vmax.xlane.f32.xlu0 %v2182_v8 }
0x10a1   :  { %v2181_v10 = vadd.f32 %v9273_v3, %v2167_v5 }
0x10a3   :  { %v2185_v49 = vsel %vm324_vm6, %v2181_v10, -inf }
0x10a4   :  { %2186 = vmax.xlane.f32.xlu1 %v2185_v49 }
0x10b5   :  { %2280 = vrot.lane.b32.xlu1 %v9237_v28, %s8743_s12 }
0x10b6   :  { %2204 = vrot.lane.b32.xlu0 %v9239_v43, %s8743_s12 }
0x10b9   :  { %2358 = vrot.lane.b32.xlu1 %v9239_v43, %s8746_s24 }
0x10bd   :  { %2436 = vrot.lane.b32.xlu1 %v9237_v28, %s8746_s24 }
0x112d   :  { %v2184_v11 = vpop.xlane.xlu0 %2183 }
0x112e   :  { %v2188_v7 = vsub.f32 %v2180_v2, %v2184_v11 }
0x1130   :  { %v2190_v9 = vmul.f32 1.442695, %v2188_v7 }
0x1131   :  { %v2205_v12 = vpop.permute.xlu0 %2204  ;;  %v2187_v13 = vpop.xlane.xlu1 %2186 }
0x1132   :  { %8416 = vpow2.f32 %v2190_v9  ;;  %v2189_v14 = vsub.f32 %v2181_v10, %v2187_v13  ;;  %7860 = vmatpush3.msra.mxu0 %v2205_v12 }
0x1133   :  { %7869 = vmatprep.subr.mxu0 %v8741_v46 }
0x1134   :  { %v2192_v15 = vmul.f32 1.442695, %v2189_v14 }
0x1135   :  { %v2281_v16 = vpop.permute.xlu1 %2280 }
0x1136   :  { %8418 = vpow2.f32 %v2192_v15  ;;  %7865 = vmatpush3.msra.mxu1 %v2281_v16 }
0x1137   :  { %7874 = vmatprep.subr.mxu1 %v8741_v46 }
0x1139   :  { %v2359_v20 = vpop.permute.xlu1 %2358 }
0x113c   :  { %v8417_v17 = vpop.eup %8416 }
0x113d   :  { %v2194_v18 = vsel %vm324_vm6, %v8417_v17, 0.0  ;;  %v2437_v21 = vpop.permute.xlu1 %2436 }
0x113e   :  { %2195 = vadd.xlane.f32.xlu0 %v2194_v18 }
0x1140   :  { %v8419_v51 = vpop.eup %8418 }
0x1141   :  { %v2197_v19 = vsel %vm324_vm6, %v8419_v51, 0.0 }
0x1142   :  { %2198 = vadd.xlane.f32.xlu1 %v2197_v19 }
0x1153   :  { %2434 = vrot.lane.b32.xlu1 %v9255_v52, %s8746_s24 }
0x1154   :  { %2356 = vrot.lane.b32.xlu0 %v9247_v50, %s8746_s24 }
0x11cb   :  { %v2196_v22 = vpop.xlane.xlu0 %2195 }
0x11cc   :  { %8420 = vrcp.f32 %v2196_v22 }
0x11cf   :  { %v2199_v23 = vpop.xlane.xlu1 %2198  ;;  %v2357_v29 = vpop.permute.xlu0 %2356 }
0x11d0   :  { %8422 = vrcp.f32 %v2199_v23 }
0x11d3   :  { %v2435_v31 = vpop.permute.xlu1 %2434 }
0x11d6   :  { %v8421_v24 = vpop.eup %8420 }
0x11d7   :  { %v2202_v25 = vmul.f32 %v8421_v24, %v8417_v17 }
0x11d9   :  { %7862 = vmatmul.mubr.msk.f32.vlgmr.msra.gmra.mrb[18].mxu0 %vm324_vm6, %v2202_v25 }
0x11da   :  { %v8423_v26 = vpop.eup %8422  ;;  %7870 = vmatpush3.xpose.msk.msra.mxu0 %vm324_vm6, %v2359_v20  ;;  %7871 = vmatprep.mubr.msk.f32.mxu0 %vm8742_vm5, %v8741_v46 }
0x11db   :  { %v2203_v27 = vmul.f32 %v8423_v26, %v8419_v51  ;;  %7879 = vmatprep.subr.mxu0 %v8741_v46 }
0x11dd   :  { %7867 = vmatmul.mubr.msk.f32.vlgmr.msra.gmra.mrb[26].mxu1 %vm324_vm6, %v2203_v27  ;;  %7872 = vmatmul.mubr.msk.f32.vlgmr.msra.gmra.mrb[20].mxu0 %vm324_vm6, %v2357_v29 }
0x11de   :  { %7875 = vmatpush3.xpose.msk.msra.mxu1 %vm324_vm6, %v2437_v21  ;;  %7876 = vmatprep.mubr.msk.f32.mxu1 %vm8742_vm5, %v8741_v46 }
0x11df   :  { %7884 = vmatprep.subr.mxu1 %v8741_v46  ;;  %7881 = vmatprep.mubr.msk.f32.mxu0 %vm8742_vm5, %v8741_v46 }
0x11e1   :  { %7877 = vmatmul.mubr.msk.f32.vlgmr.msra.gmra.mrb[28].mxu1 %vm324_vm6, %v2435_v31 }
0x11e2   :  { %7886 = vmatprep.mubr.msk.f32.mxu1 %vm8742_vm5, %v8741_v46 }
0x12ac   :  { %v9310_v32 = vpop.f32.mrb[18].mxu0 }
0x12ad   :  { %v7863_v33 = vpop.f32.mrb[19].mxu0 }
0x12b0   :  { %v9312_v34 = vpop.f32.mrb[26].mxu1  ;;  %v2430_v35 = vpop.f32.mrb[20].mxu0 }
0x12b1   :  { %v2512_v36 = vmul.f32 0.35355338, %v2430_v35  ;;  %v7868_v37 = vpop.f32.mrb[27].mxu1  ;;  %v7873_v38 = vpop.f32.mrb[21].mxu0 }
0x12b3   :  { %v2514_v39 = vadd.f32 %v2512_v36, %v9269_v0 }
0x12b4   :  { %v2508_v40 = vpop.f32.mrb[28].mxu1 }
0x12b5   :  { %v2513_v41 = vmul.f32 0.35355338, %v2508_v40  ;;  %v7878_v42 = vpop.f32.mrb[29].mxu1  ;;  %v2516_v44 = vsel %vm324_vm6, %v2514_v39, -inf }
0x12b6   :  { %2517 = vmax.xlane.f32.xlu0 %v2516_v44 }
0x12b7   :  { %v2515_v45 = vadd.f32 %v2513_v41, %v9273_v3 }
0x12b9   :  { %v2519_v48 = vsel %vm324_vm6, %v2515_v45, -inf }
0x12ba   :  { %2520 = vmax.xlane.f32.xlu1 %v2519_v48 }
0x12cb   :  { %2614 = vrot.lane.b32.xlu1 %v9237_v28, %s8745_s23 }
0x12cc   :  { %2538 = vrot.lane.b32.xlu0 %v9239_v43, %s8745_s23 }
0x12cf   :  { %2692 = vrot.lane.b32.xlu1 %v9239_v43, %s8749_s17 }
0x12d3   :  { %2770 = vrot.lane.b32.xlu1 %v9237_v28, %s8749_s17 }
0x12d7   :  { %2768 = vrot.lane.b32.xlu1 %v9255_v52, %s8749_s17 }
0x1343   :  { %v2518_v53 = vpop.xlane.xlu0 %2517 }
0x1344   :  { %v2522_v54 = vsub.f32 %v2514_v39, %v2518_v53 }
0x1346   :  { %v2524_v55 = vmul.f32 1.442695, %v2522_v54 }
0x1347   :  { %v2539_v56 = vpop.permute.xlu0 %2538  ;;  %v2521_v1 = vpop.xlane.xlu1 %2520 }
0x1348   :  { %8424 = vpow2.f32 %v2524_v55  ;;  %v2523_v58 = vsub.f32 %v2515_v45, %v2521_v1  ;;  %7880 = vmatpush3.msra.mxu0 %v2539_v56 }
0x1349   :  { %7889 = vmatprep.subr.mxu0 %v8741_v46 }
0x134a   :  { %v2526_v59 = vmul.f32 1.442695, %v2523_v58 }
0x134b   :  { %v2615_v60 = vpop.permute.xlu1 %2614 }
0x134c   :  { %8426 = vpow2.f32 %v2526_v59  ;;  %7885 = vmatpush3.msra.mxu1 %v2615_v60 }
0x134d   :  { %7894 = vmatprep.subr.mxu1 %v8741_v46 }
0x134f   :  { %v2693_v8 = vpop.permute.xlu1 %2692 }
0x1352   :  { %v8425_v61 = vpop.eup %8424 }
0x1353   :  { %v2528_v63 = vsel %vm324_vm6, %v8425_v61, 0.0  ;;  %v2771_v7 = vpop.permute.xlu1 %2770 }
0x1354   :  { %2529 = vadd.xlane.f32.xlu0 %v2528_v63 }
0x1356   :  { %v8427_v2 = vpop.eup %8426 }
0x1357   :  { %v2531_v4 = vsel %vm324_vm6, %v8427_v2, 0.0  ;;  %v2769_v13 = vpop.permute.xlu1 %2768 }
0x1358   :  { %2532 = vadd.xlane.f32.xlu0 %v2531_v4 }
0x136e   :  { %2690 = vrot.lane.b32.xlu0 %v9247_v50, %s8749_s17 }
0x13e1   :  { %v2530_v5 = vpop.xlane.xlu0 %2529 }
0x13e2   :  { %8428 = vrcp.f32 %v2530_v5 }
0x13e5   :  { %v2533_v6 = vpop.xlane.xlu0 %2532 }
0x13e6   :  { %8430 = vrcp.f32 %v2533_v6 }
0x13e9   :  { %v2691_v12 = vpop.permute.xlu0 %2690 }
0x13ec   :  { %v8429_v10 = vpop.eup %8428 }
0x13ed   :  { %v2536_v49 = vmul.f32 %v8429_v10, %v8425_v61 }
0x13ef   :  { %7882 = vmatmul.mubr.msk.f32.vlgmr.msra.gmra.mrb[22].mxu0 %vm324_vm6, %v2536_v49 }
0x13f0   :  { %v8431_v11 = vpop.eup %8430  ;;  %7890 = vmatpush3.xpose.msk.msra.mxu0 %vm324_vm6, %v2693_v8  ;;  %7891 = vmatprep.mubr.msk.f32.mxu0 %vm8742_vm5, %v8741_v46 }
0x13f1   :  { %v2537_v9 = vmul.f32 %v8431_v11, %v8427_v2  ;;  %7899 = vmatprep.subr.mxu0 %v8741_v46 }
0x13f3   :  { %7887 = vmatmul.mubr.msk.f32.vlgmr.msra.gmra.mrb[30].mxu1 %vm324_vm6, %v2537_v9  ;;  %7892 = vmatmul.mubr.msk.f32.vlgmr.msra.gmra.mrb[24].mxu0 %vm324_vm6, %v2691_v12 }
0x13f4   :  { %7895 = vmatpush3.xpose.msk.msra.mxu1 %vm324_vm6, %v2771_v7  ;;  %7896 = vmatprep.mubr.msk.f32.mxu1 %vm8742_vm5, %v8741_v46 }
0x13f5   :  { %7904 = vmatprep.subr.mxu1 %v8741_v46  ;;  %7901 = vmatprep.mubr.msk.f32.mxu0 %vm8742_vm5, %v8741_v46 }
0x13f7   :  { %7897 = vmatmul.mubr.msk.f32.vlgmr.msra.gmra.mrb[32].mxu1 %vm324_vm6, %v2769_v13 }
0x13f8   :  { %7906 = vmatprep.mubr.msk.f32.mxu1 %vm8742_vm5, %v8741_v46 }
0x14c2   :  { %v9350_v14 = vpop.f32.mrb[22].mxu0 }
0x14c3   :  { %v7883_v15 = vpop.f32.mrb[23].mxu0 }
0x14c6   :  { %v9352_v16 = vpop.f32.mrb[30].mxu1  ;;  %v2764_v17 = vpop.f32.mrb[24].mxu0 }
0x14c7   :  { %v2846_v18 = vmul.f32 0.35355338, %v2764_v17  ;;  %v7888_v51 = vpop.f32.mrb[31].mxu1  ;;  %v7893_v19 = vpop.f32.mrb[25].mxu0 }
0x14c9   :  { %v2848_v20 = vadd.f32 %v2846_v18, %v9269_v0 }
0x14ca   :  { %v2842_v21 = vpop.f32.mrb[32].mxu1 }
0x14cb   :  { %v2847_v22 = vmul.f32 0.35355338, %v2842_v21  ;;  %v7898_v23 = vpop.f32.mrb[33].mxu1  ;;  %v2850_v24 = vsel %vm324_vm6, %v2848_v20, -inf }
0x14cc   :  { %2851 = vmax.xlane.f32.xlu0 %v2850_v24 }
0x14cd   :  { %v2849_v25 = vadd.f32 %v2847_v22, %v9273_v3 }
0x14cf   :  { %v2853_v26 = vsel %vm324_vm6, %v2849_v25, -inf }
0x14d0   :  { %2854 = vmax.xlane.f32.xlu1 %v2853_v26 }
0x14e1   :  { %2948 = vrot.lane.b32.xlu1 %v9237_v28, %s8748_s22 }
0x14e2   :  { %2872 = vrot.lane.b32.xlu0 %v9239_v43, %s8748_s22 }
0x14e5   :  { %3026 = vrot.lane.b32.xlu1 %v9239_v43, %s8752_s30 }
0x14e9   :  { %3104 = vrot.lane.b32.xlu1 %v9237_v28, %s8752_s30 }
0x14ed   :  { %3102 = vrot.lane.b32.xlu1 %v9255_v52, %s8752_s30 }
0x1559   :  { %v2852_v27 = vpop.xlane.xlu0 %2851 }
0x155a   :  { %v2856_v29 = vsub.f32 %v2848_v20, %v2852_v27  ;;  %v2009_v27 = vld [vmem:[#allocation11] sm:$0xff] }
0x155c   :  { %v2858_v31 = vmul.f32 1.442695, %v2856_v29  ;;  %v2010_v29 = vld [vmem:[#allocation11 + $0x8] sm:$0xff] }
0x155d   :  { %v2873_v33 = vpop.permute.xlu0 %2872  ;;  %v2855_v35 = vpop.xlane.xlu1 %2854 }
0x155e   :  { %8432 = vpow2.f32 %v2858_v31  ;;  %v2857_v36 = vsub.f32 %v2849_v25, %v2855_v35  ;;  %7900 = vmatpush3.msra.mxu0 %v2873_v33  ;;  %v8247_v31 = vpack.c.bf16 %v2010_v29, %v2009_v27  ;;  %v2012_v33 = vld [vmem:[#allocation11 + $0x18] sm:$0xff] }
0x155f   :  { %7909 = vmatprep.subr.mxu0 %v8741_v46 }
0x1560   :  { %v2860_v37 = vmul.f32 1.442695, %v2857_v36 }
0x1561   :  { %v2949_v38 = vpop.permute.xlu1 %2948 }
0x1562   :  { %8434 = vpow2.f32 %v2860_v37  ;;  %7905 = vmatpush3.msra.mxu1 %v2949_v38 }
0x1563   :  { %7914 = vmatprep.subr.mxu1 %v8741_v46 }
0x1565   :  { %v3027_v45 = vpop.permute.xlu1 %3026 }
0x1568   :  { %v8433_v39 = vpop.eup %8432 }
0x1569   :  { %v2862_v40 = vsel %vm324_vm6, %v8433_v39, 0.0  ;;  %v3105_v55 = vpop.permute.xlu1 %3104 }
0x156a   :  { %2863 = vadd.xlane.f32.xlu0 %v2862_v40 }
0x156c   :  { %v8435_v52 = vpop.eup %8434 }
0x156d   :  { %v2865_v41 = vsel %vm324_vm6, %v8435_v52, 0.0  ;;  %v3103_v1 = vpop.permute.xlu1 %3102 }
0x156e   :  { %2866 = vadd.xlane.f32.xlu0 %v2865_v41 }
0x1584   :  { %3024 = vrot.lane.b32.xlu0 %v9247_v50, %s8752_s30 }
0x15f7   :  { %v2864_v42 = vpop.xlane.xlu0 %2863 }
0x15f8   :  { %8436 = vrcp.f32 %v2864_v42 }
0x15fb   :  { %v2867_v44 = vpop.xlane.xlu0 %2866 }
0x15fc   :  { %8438 = vrcp.f32 %v2867_v44 }
0x15ff   :  { %v3025_v50 = vpop.permute.xlu0 %3024 }
0x1602   :  { %v8437_v48 = vpop.eup %8436 }
0x1603   :  { %v2870_v53 = vmul.f32 %v8437_v48, %v8433_v39 }
0x1605   :  { %7902 = vmatmul.mubr.msk.f32.vlgmr.msra.gmra.mrb[26].mxu0 %vm324_vm6, %v2870_v53 }
0x1606   :  { %v8439_v54 = vpop.eup %8438  ;;  %7910 = vmatpush3.xpose.msk.msra.mxu0 %vm324_vm6, %v3027_v45  ;;  %7911 = vmatprep.mubr.msk.f32.mxu0 %vm8742_vm5, %v8741_v46 }
0x1607   :  { %v2871_v56 = vmul.f32 %v8439_v54, %v8435_v52  ;;  %7919 = vmatprep.subr.mxu0 %v8741_v46 }
0x1609   :  { %7907 = vmatmul.mubr.msk.f32.vlgmr.msra.gmra.mrb[34].mxu1 %vm324_vm6, %v2871_v56  ;;  %7912 = vmatmul.mubr.msk.f32.vlgmr.msra.gmra.mrb[28].mxu0 %vm324_vm6, %v3025_v50 }
0x160a   :  { %7915 = vmatpush3.xpose.msk.msra.mxu1 %vm324_vm6, %v3105_v55  ;;  %7916 = vmatprep.mubr.msk.f32.mxu1 %vm8742_vm5, %v8741_v46 }
0x160b   :  { %7924 = vmatprep.subr.mxu1 %v8741_v46  ;;  %7921 = vmatprep.mubr.msk.f32.mxu0 %vm8742_vm5, %v8741_v46 }
0x160d   :  { %7917 = vmatmul.mubr.msk.f32.vlgmr.msra.gmra.mrb[36].mxu1 %vm324_vm6, %v3103_v1 }
0x160e   :  { %7926 = vmatprep.mubr.msk.f32.mxu1 %vm8742_vm5, %v8741_v46 }
0x16d8   :  { %v2944_v58 = vpop.f32.mrb[26].mxu0 }
0x16d9   :  { %v7903_v59 = vpop.f32.mrb[27].mxu0 }
0x16dc   :  { %v3020_v60 = vpop.f32.mrb[34].mxu1  ;;  %v3098_v61 = vpop.f32.mrb[28].mxu0 }
0x16dd   :  { %v3180_v63 = vmul.f32 0.35355338, %v3098_v61  ;;  %v7908_v2 = vpop.f32.mrb[35].mxu1  ;;  %v7913_v4 = vpop.f32.mrb[29].mxu0 }
0x16df   :  { %v3182_v5 = vadd.f32 %v3180_v63, %v9269_v0 }
0x16e0   :  { %v3176_v6 = vpop.f32.mrb[36].mxu1 }
0x16e1   :  { %v3181_v8 = vmul.f32 0.35355338, %v3176_v6  ;;  %v7918_v10 = vpop.f32.mrb[37].mxu1  ;;  %v3184_v49 = vsel %vm324_vm6, %v3182_v5, -inf }
0x16e2   :  { %3185 = vmax.xlane.f32.xlu0 %v3184_v49 }
0x16e3   :  { %v3183_v11 = vadd.f32 %v3181_v8, %v9273_v3 }
0x16e5   :  { %v3187_v7 = vsel %vm324_vm6, %v3183_v11, -inf }
0x16e6   :  { %3188 = vmax.xlane.f32.xlu1 %v3187_v7 }
0x16f7   :  { %3282 = vrot.lane.b32.xlu1 %v9237_v28, %s8751_s18 }
0x16fb   :  { %3360 = vrot.lane.b32.xlu1 %v9350_v14, %s8735_s29 }
0x16ff   :  { %3362 = vrot.lane.b32.xlu1 %v9352_v16, %s8735_s29 }
0x1703   :  { %3370 = vrot.lane.b32.xlu1 %v3020_v60, %s10019_s20 }
0x176f   :  { %v3186_v9 = vpop.xlane.xlu0 %3185 }
0x1770   :  { %v3190_v12 = vsub.f32 %v3182_v5, %v3186_v9  ;;  %v3525_v9 = vld [vmem:[#allocation12] sm:$0xff] }
0x1772   :  { %v3192_v13 = vmul.f32 1.442695, %v3190_v12  ;;  %v3526_v12 = vld [vmem:[#allocation12 + $0x8] sm:$0xff] }
0x1773   :  { %v3189_v15 = vpop.xlane.xlu1 %3188 }
0x1774   :  { %8440 = vpow2.f32 %v3192_v13  ;;  %v3191_v17 = vsub.f32 %v3183_v11, %v3189_v15  ;;  %v3527_v13 = vld [vmem:[#allocation12 + $0x10] sm:$0xff]  ;;  %v8255_v15 = vpack.c.bf16 %v3526_v12, %v3525_v9 }
0x1776   :  { %v3194_v18 = vmul.f32 1.442695, %v3191_v17  ;;  %v3528_v17 = vld [vmem:[#allocation12 + $0x18] sm:$0xff] }
0x1777   :  { %v3283_v51 = vpop.permute.xlu1 %3282 }
0x1778   :  { %8442 = vpow2.f32 %v3194_v18  ;;  %7925 = vmatpush3.msra.mxu1 %v3283_v51  ;;  %v8259_v18 = vpack.c.bf16 %v3528_v17, %v3527_v13  ;;  %v3619_v51 = vld [vmem:[%s10004_s16] sm:$0xff] }
0x1779   :  { %8256 = vmatprep.subr.bf16.mxu1 %v8255_v15 }
0x177b   :  { %v3361_v40 = vpop.permute.xlu1 %3360 }
0x177c   :  { %v3382_v42 = vsel %vm324_vm6, %v9310_v32, %v3361_v40  ;;  %v7390_v32 = vld [vmem:[%s10001_s13] ss:$0 sm:$0xff] }
0x177e   :  { %v8441_v19 = vpop.eup %8440 }
0x177f   :  { %v3196_v28 = vsel %vm324_vm6, %v8441_v19, 0.0  ;;  %v3363_v52 = vpop.permute.xlu1 %3362 }
0x1780   :  { %3197 = vadd.xlane.f32.xlu0 %v3196_v28  ;;  %v3383_v54 = vsel %vm324_vm6, %v9312_v34, %v3363_v52  ;;  %v3621_v28 = vld [vmem:[%s10004_s16 + $0x10] sm:$0xff] }
0x1782   :  { %v8443_v14 = vpop.eup %8442 }
0x1783   :  { %v3199_v20 = vsel %vm324_vm6, %v8443_v14, 0.0  ;;  %v3371_v44 = vpop.permute.xlu1 %3370 }
0x1784   :  { %3200 = vadd.xlane.f32.xlu0 %v3199_v20  ;;  %v3385_v55 = vsel %vm1682_vm10, %v3383_v54, %v3371_v44  ;;  %v3622_v20 = vld [vmem:[%s10004_s16 + $0x18] sm:$0xff] }
0x179a   :  { %3206 = vrot.lane.b32.xlu0 %v9239_v43, %s8751_s18  ;;  %v2011_v43 = vld [vmem:[#allocation11 + $0x10] sm:$0xff] }
0x179b   :  { %v8251_v35 = vpack.c.bf16 %v2012_v33, %v2011_v43 }
0x179e   :  { %3368 = vrot.lane.b32.xlu0 %v2944_v58, %s10019_s20  ;;  %s7393_s20 = sld [smem:[#allocation14 + $0x4]] }
0x180d   :  { %v3198_v16 = vpop.xlane.xlu0 %3197 }
0x180e   :  { %8444 = vrcp.f32 %v3198_v16  ;;  %v8267_v16 = vpack.c.bf16 %v3622_v20, %v3621_v28 }
0x1811   :  { %v3201_v21 = vpop.xlane.xlu0 %3200 }
0x1812   :  { %8446 = vrcp.f32 %v3201_v21  ;;  %v3623_v21 = vld [vmem:[%s10004_s16 + $0x20] sm:$0xff] }
0x1815   :  { %v3207_v22 = vpop.permute.xlu0 %3206 }
0x1816   :  { %7920 = vmatpush3.msra.mxu0 %v3207_v22  ;;  %v3624_v22 = vld [vmem:[%s10004_s16 + $0x28] sm:$0xff] }
0x1817   :  { %8248 = vmatprep.subr.bf16.mxu0 %v8247_v31 }
0x1818   :  { %v8445_v23 = vpop.eup %8444 }
0x1819   :  { %v3204_v24 = vmul.f32 %v8445_v23, %v8441_v19  ;;  %v3369_v41 = vpop.permute.xlu0 %3368  ;;  %v3620_v19 = vld [vmem:[%s10004_s16 + $0x8] sm:$0xff]  ;;  %v8271_v23 = vpack.c.bf16 %v3624_v22, %v3623_v21  ;;  %v7405_v22 = vld [vmem:[%s9992_s4 + $0x30] sm:$0xff] }
0x181a   :  { %v3384_v45 = vsel %vm1682_vm10, %v3382_v42, %v3369_v41  ;;  %v3499_v42 = vstv %s7393_s20  ;;  %s10031_s20 = sld [smem:[#allocation26_spill]]  ;;  %v7404_v21 = vld [vmem:[%s9992_s4 + $0x28] sm:$0xff] }
0x181b   :  { %7922 = vmatmul.mubr.msk.f32.vlgmr.msra.gmra.mrb[30].mxu0 %vm324_vm6, %v3204_v24 }
0x181c   :  { %v8447_v25 = vpop.eup %8446  ;;  %8250 = vmatpush3.bf16.msra.mxu0 %v8247_v31 }
0x181d   :  { %v3205_v26 = vmul.f32 %v8447_v25, %v8443_v14  ;;  %8252 = vmatprep.subr.bf16.mxu0 %v8251_v35  ;;  %v8263_v14 = vpack.c.bf16 %v3620_v19, %v3619_v51 }
0x181f   :  { %7927 = vmatmul.mubr.msk.f32.vlgmr.msra.gmra.mrb[38].mxu1 %vm324_vm6, %v3205_v26 }
0x1820   :  { %8254 = vmatpush3.bf16.msra.mxu0 %v8251_v35  ;;  %8258 = vmatpush3.bf16.msra.mxu1 %v8255_v15 }
0x1821   :  { %8260 = vmatprep.subr.bf16.mxu1 %v8259_v18  ;;  %8264 = vmatprep.subr.bf16.mxu0 %v8263_v14 }
0x1824   :  { %8262 = vmatpush3.bf16.msra.mxu1 %v8259_v18 }
0x18ee   :  { %v3278_v36 = vpop.f32.mrb[30].mxu0 }
0x18ef   :  { %3376 = vrot.lane.b32.xlu0 %v3278_v36, %s10017_s25  ;;  %v7923_v37 = vpop.f32.mrb[31].mxu0 }
0x18f2   :  { %v3354_v38 = vpop.f32.mrb[38].mxu1 }
0x18f3   :  { %3378 = vrot.lane.b32.xlu1 %v3354_v38, %s10017_s25  ;;  %v7928_v39 = vpop.f32.mrb[39].mxu1  ;;  %s7394_s25 = sld [smem:[#allocation14 + $0x5]] }
0x1961   :  { %v3377_v48 = vpop.permute.xlu0 %3376 }
0x1962   :  { %v3386_v53 = vsel %vm1685_vm9, %v3384_v45, %v3377_v48  ;;  %v3522_v48 = vstv %s7394_s25  ;;  %s7485_s25 = sld [smem:[#allocation14 + $0xa]] }
0x1963   :  { %7937 = vmatprep.mubr.msk.f32.mxu0 %vm176_vm0, %v3386_v53 }
0x1965   :  { %v3379_v56 = vpop.permute.xlu1 %3378 }
0x1966   :  { %v3387_v50 = vsel %vm1685_vm9, %v3385_v55, %v3379_v56 }
0x1967   :  { %7938 = vmatmul.mubr.msk.f32.vlgmr.msra.gmra.mrb[32].mxu0 %vm176_vm0, %v3387_v50 }
0x1968   :  { %8266 = vmatpush3.bf16.msra.mxu0 %v8263_v14 }
0x1969   :  { %8268 = vmatprep.subr.bf16.mxu0 %v8267_v16 }
0x196c   :  { %8270 = vmatpush3.bf16.msra.mxu0 %v8267_v16  ;;  %v7403_v16 = vld [vmem:[%s9992_s4 + $0x20] sm:$0xff] }
0x196d   :  { %8272 = vmatprep.subr.bf16.mxu0 %v8271_v23 }
0x1970   :  { %8274 = vmatpush3.bf16.msra.mxu0 %v8271_v23  ;;  %v8279_v23 = vpack.c.bf16 %v7404_v21, %v7403_v16 }
0x1972   :  { %8280 = vmatprep.subr.bf16.mxu1 %v8279_v23 }
0x1a3a   :  { %v7939_v1 = vpop.f32.mrb[32].mxu0 }
0x1a3b   :  { %v3472_v58 = vadd.f32 %v7939_v1, %v7390_v32  ;;  %v3466_v59 = vpop.f32.mrb[33].mxu0  ;;  %v3625_v1 = vld [vmem:[%s10004_s16 + $0x30] sm:$0xff] }
0x1a3c   :  { %v3467_v60 = vadd.f32 %v7390_v32, %v3466_v59 }
0x1a3d   :  { %v9424_v61 = vadd.f32 %v3472_v58, %v9194_v47  ;;  %v3626_v58 = vld [vmem:[%s10004_s16 + $0x38] sm:$0xff] }
0x1a3e   :  { %v9427_v34 = vadd.f32 %v3467_v60, %v9197_v30  ;;  %v8275_v59 = vpack.c.bf16 %v3626_v58, %v3625_v1  ;;  %v7395_v60 = vld [vmem:[%s10003_s15] ss:$0 sm:$0xff] }
0x1a3f   :  { %v3482_v63 = vsel %vm176_vm0, %v9424_v61, 0.0 }
0x1a40   :  { %3483 = vadd.xlane.f32.xlu1 %v3482_v63  ;;  %v3479_v2 = vsel %vm176_vm0, %v9427_v34, 0.0  ;;  %8276 = vmatprep.subr.bf16.mxu0 %v8275_v59 }
0x1a41   :  { %3480 = vadd.xlane.f32.xlu0 %v3479_v2  ;;  %8278 = vmatpush3.bf16.msra.mxu0 %v8275_v59  ;;  %v7408_v59 = vld [vmem:[%s9993_s5 + $0x1] ss:$0 sm:$0xff]  ;;  %s10032_s5 = smov 40  }
0x1a42   :  { %7991 = vmatprep.subr.mxu0 %v8741_v46 }
0x1acd   :  { %v3484_v4 = vpop.xlane.xlu1 %3483 }
0x1ace   :  { %v3486_v5 = vmul.f32 0.03125, %v3484_v4  ;;  %v3481_v6 = vpop.xlane.xlu0 %3480 }
0x1acf   :  { %v3485_v8 = vmul.f32 0.03125, %v3481_v6 }
0x1ad0   :  { %v9434_v10 = vsub.f32 %v9424_v61, %v3486_v5 }
0x1ad1   :  { %v3487_v47 = vsub.f32 %v9427_v34, %v3485_v8 }
0x1ad2   :  { %v3490_v11 = vmul.f32 %v9434_v10, %v9434_v10  ;;  %v3501_v54 = vmul.f32 %v3499_v42, %v9434_v10 }
0x1ad3   :  { %v3489_v49 = vmul.f32 %v3487_v47, %v3487_v47  ;;  %v3500_v44 = vmul.f32 %v3499_v42, %v3487_v47  ;;  %v7400_v47 = vld [vmem:[%s10031_s20] ss:$0 sm:$0xff] }
0x1ad4   :  { %v3494_v7 = vsel %vm176_vm0, %v3490_v11, 0.0 }
0x1ad5   :  { %v3491_v30 = vsel %vm176_vm0, %v3489_v49, 0.0 }
0x1ad6   :  { %3492 = vadd.xlane.f32.xlu0 %v3491_v30 }
0x1ada   :  { %3495 = vadd.xlane.f32.xlu0 %v3494_v7 }
0x1b63   :  { %v3493_v24 = vpop.xlane.xlu0 %3492 }
0x1b64   :  { %v3497_v25 = vmul.f32 0.032258064, %v3493_v24  ;;  %v7406_v24 = vld [vmem:[%s9992_s4 + $0x38] sm:$0xff]  ;;  %s7401_s4 = sld [smem:[#allocation14 + $0x6]] }
0x1b66   :  { %8448 = vrsqrt.f32 %v3497_v25  ;;  %vm3504_vm2 = vcmp.eq.f32.partialorder %v3497_v25, inf  ;;  %v3507_v43 = vand.u32 2147483648, %v3497_v25  ;;  %vm3506_vm3 = vcmp.eq.f32.partialorder %v3497_v25, 0.0 }
0x1b67   :  { %v3496_v26 = vpop.xlane.xlu0 %3495 }
0x1b68   :  { %v3498_v27 = vmul.f32 0.032258064, %v3496_v26 }
0x1b6a   :  { %8450 = vrsqrt.f32 %v3498_v27  ;;  %vm3511_vm4 = vcmp.eq.f32.partialorder %v3498_v27, inf  ;;  %v3514_v39 = vand.u32 2147483648, %v3498_v27  ;;  %vm3513_vm7 = vcmp.eq.f32.partialorder %v3498_v27, 0.0 }
0x1b70   :  { %v8449_v29 = vpop.eup %8448 }
0x1b71   :  { %v3503_v31 = vmul.f32 %v8449_v29, %v3497_v25 }
0x1b73   :  { %v3505_v33 = vsel %vm3504_vm2, %v3497_v25, %v3503_v31  ;;  %v8283_v25 = vpack.c.bf16 %v7406_v24, %v7405_v22 }
0x1b74   :  { %v8451_v35 = vpop.eup %8450  ;;  %v3508_v36 = vsel %vm3506_vm3, %v3507_v43, %v3505_v33 }
0x1b75   :  { %v3510_v37 = vmul.f32 %v8451_v35, %v3498_v27  ;;  %v3516_v38 = vadd.f32 1e-06, %v3508_v36 }
0x1b77   :  { %v3512_v40 = vsel %vm3511_vm4, %v3498_v27, %v3510_v37  ;;  %8452 = vrcp.f32 %v3516_v38 }
0x1b78   :  { %v3515_v52 = vsel %vm3513_vm7, %v3514_v39, %v3512_v40 }
0x1b79   :  { %v3517_v41 = vadd.f32 1e-06, %v3515_v52 }
0x1b7b   :  { %8454 = vrcp.f32 %v3517_v41 }
0x1b81   :  { %v8453_v45 = vpop.eup %8452 }
0x1b82   :  { %v3519_v53 = vmul.f32 %v8453_v45, %v3500_v44  ;;  %v3742_v45 = vstv %s7401_s4  ;;  %s10034_s4 = smov 24  }
0x1b84   :  { %v3523_v55 = vadd.f32 %v3522_v48, %v3519_v53 }
0x1b85   :  { %v8455_v56 = vpop.eup %8454 }
0x1b86   :  { %v3521_v50 = vmul.f32 %v8455_v56, %v3501_v54  ;;  %7948 = vmatprep.mubr.msk.f32.mxu1 %vm176_vm0, %v3523_v55 }
0x1b88   :  { %v3524_v32 = vadd.f32 %v3522_v48, %v3521_v50  ;;  %v3765_v50 = vstv %s7402_s28 }
0x1b8a   :  { %7949 = vmatmul.mubr.msk.f32.vlgmr.msra.gmra.mrb[40].mxu1 %vm176_vm0, %v3524_v32 }
0x1b8b   :  { %8282 = vmatpush3.bf16.msra.mxu1 %v8279_v23 }
0x1b8c   :  { %8284 = vmatprep.subr.bf16.mxu1 %v8283_v25 }
0x1b8f   :  { %8286 = vmatpush3.bf16.msra.mxu1 %v8283_v25 }
0x1b90   :  { %7981 = vmatprep.subr.mxu1 %v8741_v46 }
0x1c5d   :  { %v7950_v63 = vpop.f32.mrb[40].mxu1 }
0x1c5e   :  { %v3614_v2 = vadd.f32 %v7950_v63, %v7395_v60  ;;  %v3608_v4 = vpop.f32.mrb[41].mxu1 }
0x1c5f   :  { %v3609_v5 = vadd.f32 %v7395_v60, %v3608_v4 }
0x1c60   :  { %v3618_v8 = vmax.f32 %v3614_v2, 0.0 }
0x1c61   :  { %v3617_v6 = vmax.f32 %v3609_v5, 0.0 }
0x1c63   :  { %7967 = vmatprep.mubr.msk.f32.mxu0 %vm3627_vm8, %v3617_v6 }
0x1c64   :  { %7968 = vmatmul.mubr.msk.f32.vlgmr.msra.gmra.mrb[34].mxu0 %vm3627_vm8, %v3618_v8 }
0x1c65   :  { %7993 = vmatprep.mubr.msk.f32.mxu0 %vm8742_vm5, %v8741_v46 }
0x1d37   :  { %v7969_v10 = vpop.f32.mrb[34].mxu0 }
0x1d38   :  { %v3710_v49 = vadd.f32 %v7969_v10, %v9424_v61  ;;  %v3700_v30 = vpop.f32.mrb[35].mxu0 }
0x1d39   :  { %v3709_v11 = vadd.f32 %v3700_v30, %v9427_v34 }
0x1d3a   :  { %v9481_v7 = vadd.f32 %v7400_v47, %v3710_v49 }
0x1d3b   :  { %v9483_v9 = vadd.f32 %v7400_v47, %v3709_v11 }
0x1d3c   :  { %v3725_v12 = vsel %vm176_vm0, %v9481_v7, 0.0 }
0x1d3d   :  { %3726 = vadd.xlane.f32.xlu1 %v3725_v12  ;;  %v3722_v13 = vsel %vm176_vm0, %v9483_v9, 0.0 }
0x1d3e   :  { %3723 = vadd.xlane.f32.xlu0 %v3722_v13 }
0x1dca   :  { %v3727_v15 = vpop.xlane.xlu1 %3726 }
0x1dcb   :  { %v3729_v17 = vmul.f32 0.03125, %v3727_v15  ;;  %v3724_v18 = vpop.xlane.xlu0 %3723 }
0x1dcc   :  { %v3728_v51 = vmul.f32 0.03125, %v3724_v18 }
0x1dcd   :  { %v3731_v61 = vsub.f32 %v9481_v7, %v3729_v17 }
0x1dce   :  { %v3730_v34 = vsub.f32 %v9483_v9, %v3728_v51 }
0x1dcf   :  { %v3733_v19 = vmul.f32 %v3731_v61, %v3731_v61  ;;  %v3744_v48 = vmul.f32 %v3742_v45, %v3731_v61 }
0x1dd0   :  { %v3732_v28 = vmul.f32 %v3730_v34, %v3730_v34  ;;  %v3743_v54 = vmul.f32 %v3742_v45, %v3730_v34 }
0x1dd1   :  { %v3737_v14 = vsel %vm176_vm0, %v3733_v19, 0.0 }
0x1dd2   :  { %3738 = vadd.xlane.f32.xlu1 %v3737_v14  ;;  %v3734_v20 = vsel %vm176_vm0, %v3732_v28, 0.0 }
0x1dd3   :  { %3735 = vadd.xlane.f32.xlu0 %v3734_v20 }
0x1e5f   :  { %v3739_v26 = vpop.xlane.xlu1 %3738 }
0x1e60   :  { %v3741_v27 = vmul.f32 0.032258064, %v3739_v26  ;;  %v3736_v29 = vpop.xlane.xlu0 %3735 }
0x1e61   :  { %v3740_v31 = vmul.f32 0.032258064, %v3736_v29 }
0x1e62   :  { %8456 = vrsqrt.f32 %v3741_v27  ;;  %vm3754_vm11 = vcmp.eq.f32.partialorder %v3741_v27, inf  ;;  %v3757_v36 = vand.u32 2147483648, %v3741_v27  ;;  %vm3756_vm12 = vcmp.eq.f32.partialorder %v3741_v27, 0.0 }
0x1e63   :  { %8458 = vrsqrt.f32 %v3740_v31  ;;  %vm3747_vm13 = vcmp.eq.f32.partialorder %v3740_v31, inf  ;;  %v3750_v39 = vand.u32 2147483648, %v3740_v31  ;;  %vm3749_vm14 = vcmp.eq.f32.partialorder %v3740_v31, 0.0 }
0x1e6c   :  { %v8457_v43 = vpop.eup %8456 }
0x1e6d   :  { %v8459_v33 = vpop.eup %8458  ;;  %v3753_v35 = vmul.f32 %v8457_v43, %v3741_v27 }
0x1e6e   :  { %v3746_v37 = vmul.f32 %v8459_v33, %v3740_v31 }
0x1e6f   :  { %v3755_v38 = vsel %vm3754_vm11, %v3741_v27, %v3753_v35 }
0x1e70   :  { %v3758_v40 = vsel %vm3756_vm12, %v3757_v36, %v3755_v38  ;;  %v3748_v52 = vsel %vm3747_vm13, %v3740_v31, %v3746_v37 }
0x1e71   :  { %v3760_v41 = vadd.f32 1e-06, %v3758_v40  ;;  %v3751_v42 = vsel %vm3749_vm14, %v3750_v39, %v3748_v52 }
0x1e72   :  { %v3759_v44 = vadd.f32 1e-06, %v3751_v42 }
0x1e73   :  { %8460 = vrcp.f32 %v3760_v41 }
0x1e74   :  { %8462 = vrcp.f32 %v3759_v44 }
0x1e7d   :  { %v8461_v53 = vpop.eup %8460 }
0x1e7e   :  { %v8463_v55 = vpop.eup %8462  ;;  %v3764_v56 = vmul.f32 %v8461_v53, %v3744_v48 }
0x1e7f   :  { %v3762_v32 = vmul.f32 %v8463_v55, %v3743_v54 }
0x1e80   :  { %v3767_v58 = vadd.f32 %v3765_v50, %v3764_v56 }
0x1e81   :  { %v3766_v1 = vadd.f32 %v3765_v50, %v3762_v32 }
0x1e83   :  { %7978 = vmatprep.mubr.msk.f32.mxu1 %vm176_vm0, %v3766_v1 }
0x1e84   :  { %7979 = vmatmul.mubr.msk.f32.vlgmr.msra.gmra.mrb[42].mxu1 %vm176_vm0, %v3767_v58 }
0x1e85   :  { %7983 = vmatprep.mubr.msk.f32.mxu1 %vm8742_vm5, %v8741_v46 }
0x1f57   :  { %v7980_v60 = vpop.f32.mrb[42].mxu1 }
0x1f58   :  { %v9513_v63 = vadd.f32 %v7980_v60, %v7408_v59  ;;  %v3853_v2 = vpop.f32.mrb[43].mxu1 }
0x1f59   :  { %v9515_v4 = vadd.f32 %v7408_v59, %v3853_v2 }
0x1f5a   :  { %3947 = vrot.lane.b32.xlu1 %v9513_v63, %s8743_s12 }
0x1f5b   :  { %3870 = vrot.lane.b32.xlu0 %v9515_v4, %s8743_s12 }
0x1fcc   :  { %v3948_v6 = vpop.permute.xlu1 %3947 }
0x1fcd   :  { %v3871_v5 = vpop.permute.xlu0 %3870 }
0x1fce   :  { %7982 = vmatpush3.xpose.msk.msra.mxu1 %vm324_vm6, %v3871_v5 }
0x1fcf   :  { %7986 = vmatprep.subr.mxu1 %v8741_v46 }
0x1fd1   :  { %7984 = vmatmul.mubr.msk.f32.vlgmr.msra.gmra.mrb[44].mxu1 %vm324_vm6, %v9515_v4 }
0x1fd2   :  { %7987 = vmatpush3.xpose.msk.msra.mxu1 %vm324_vm6, %v3948_v6  ;;  %7988 = vmatprep.mubr.msk.f32.mxu1 %vm8742_vm5, %v8741_v46 }
0x1fd3   :  { %7996 = vmatprep.subr.mxu1 %v8741_v46 }
0x1fd5   :  { %7989 = vmatmul.mubr.msk.f32.vlgmr.msra.gmra.mrb[46].mxu1 %vm324_vm6, %v9513_v63 }
0x1fd6   :  { %7998 = vmatprep.mubr.msk.f32.mxu1 %vm8742_vm5, %v8741_v46 }
0x20a4   :  { %v3942_v8 = vpop.f32.mrb[44].mxu1 }
0x20a5   :  { %v4023_v10 = vmul.f32 0.35355338, %v3942_v8  ;;  %v7985_v47 = vpop.f32.mrb[45].mxu1 }
0x20a7   :  { %v4025_v49 = vadd.f32 %v4023_v10, %v9027_v57 }
0x20a8   :  { %v4019_v30 = vpop.f32.mrb[46].mxu1 }
0x20a9   :  { %v4024_v11 = vmul.f32 0.35355338, %v4019_v30  ;;  %v7990_v12 = vpop.f32.mrb[47].mxu1  ;;  %v4027_v13 = vsel %vm324_vm6, %v4025_v49, -inf }
0x20aa   :  { %4028 = vmax.xlane.f32.xlu1 %v4027_v13 }
0x20ab   :  { %v4026_v15 = vadd.f32 %v4024_v11, %v9031_v62 }
0x20ad   :  { %v4030_v17 = vsel %vm324_vm6, %v4026_v15, -inf }
0x20ae   :  { %4031 = vmax.xlane.f32.xlu0 %v4030_v17 }
0x20bb   :  { %4125 = vrot.lane.b32.xlu1 %v9513_v63, %s8744_s10 }
0x20bf   :  { %4203 = vrot.lane.b32.xlu1 %v9515_v4, %s8745_s23 }
0x20c3   :  { %4281 = vrot.lane.b32.xlu1 %v9513_v63, %s8745_s23 }
0x20c4   :  { %4049 = vrot.lane.b32.xlu0 %v9515_v4, %s8744_s10  ;;  %s10033_s10 = smov 16  }
0x2137   :  { %v4029_v18 = vpop.xlane.xlu1 %4028 }
0x2138   :  { %v4033_v51 = vsub.f32 %v4025_v49, %v4029_v18 }
0x213a   :  { %v4035_v61 = vmul.f32 1.442695, %v4033_v51 }
0x213b   :  { %v4126_v34 = vpop.permute.xlu1 %4125  ;;  %v4032_v19 = vpop.xlane.xlu0 %4031 }
0x213c   :  { %8464 = vpow2.f32 %v4035_v61  ;;  %v4034_v28 = vsub.f32 %v4026_v15, %v4032_v19  ;;  %7997 = vmatpush3.msra.mxu1 %v4126_v34 }
0x213d   :  { %8006 = vmatprep.subr.mxu1 %v8741_v46 }
0x213e   :  { %v4037_v14 = vmul.f32 1.442695, %v4034_v28 }
0x213f   :  { %v4050_v20 = vpop.permute.xlu0 %4049  ;;  %v4204_v24 = vpop.permute.xlu1 %4203 }
0x2140   :  { %8466 = vpow2.f32 %v4037_v14  ;;  %7992 = vmatpush3.msra.mxu0 %v4050_v20 }
0x2141   :  { %8001 = vmatprep.subr.mxu0 %v8741_v46 }
0x2143   :  { %v4282_v25 = vpop.permute.xlu1 %4281 }
0x2146   :  { %v8465_v16 = vpop.eup %8464 }
0x2147   :  { %v4039_v21 = vsel %vm324_vm6, %v8465_v16, 0.0 }
0x2148   :  { %4040 = vadd.xlane.f32.xlu0 %v4039_v21 }
0x214a   :  { %v8467_v22 = vpop.eup %8466 }
0x214b   :  { %v4042_v23 = vsel %vm324_vm6, %v8467_v22, 0.0 }
0x214c   :  { %4043 = vadd.xlane.f32.xlu1 %v4042_v23 }
0x215d   :  { %4279 = vrot.lane.b32.xlu1 %v9513_v63, %s8746_s24 }
0x215e   :  { %4201 = vrot.lane.b32.xlu0 %v9515_v4, %s8746_s24 }
0x21d5   :  { %v4041_v26 = vpop.xlane.xlu0 %4040 }
0x21d6   :  { %8468 = vrcp.f32 %v4041_v26 }
0x21d9   :  { %v4044_v27 = vpop.xlane.xlu1 %4043  ;;  %v4202_v35 = vpop.permute.xlu0 %4201 }
0x21da   :  { %8470 = vrcp.f32 %v4044_v27 }
0x21dd   :  { %v4280_v36 = vpop.permute.xlu1 %4279 }
0x21e0   :  { %v8469_v29 = vpop.eup %8468 }
0x21e1   :  { %v4047_v31 = vmul.f32 %v8469_v29, %v8465_v16 }
0x21e3   :  { %7994 = vmatmul.mubr.msk.f32.vlgmr.msra.gmra.mrb[36].mxu0 %vm324_vm6, %v4047_v31 }
0x21e4   :  { %v8471_v43 = vpop.eup %8470  ;;  %8002 = vmatpush3.xpose.msk.msra.mxu0 %vm324_vm6, %v4204_v24  ;;  %8003 = vmatprep.mubr.msk.f32.mxu0 %vm8742_vm5, %v8741_v46 }
0x21e5   :  { %v4048_v33 = vmul.f32 %v8471_v43, %v8467_v22  ;;  %8011 = vmatprep.subr.mxu0 %v8741_v46 }
0x21e7   :  { %7999 = vmatmul.mubr.msk.f32.vlgmr.msra.gmra.mrb[48].mxu1 %vm324_vm6, %v4048_v33  ;;  %8004 = vmatmul.mubr.msk.f32.vlgmr.msra.gmra.mrb[38].mxu0 %vm324_vm6, %v4202_v35 }
0x21e8   :  { %8007 = vmatpush3.xpose.msk.msra.mxu1 %vm324_vm6, %v4282_v25  ;;  %8008 = vmatprep.mubr.msk.f32.mxu1 %vm8742_vm5, %v8741_v46 }
0x21e9   :  { %8016 = vmatprep.subr.mxu1 %v8741_v46  ;;  %8013 = vmatprep.mubr.msk.f32.mxu0 %vm8742_vm5, %v8741_v46 }
0x21eb   :  { %8009 = vmatmul.mubr.msk.f32.vlgmr.msra.gmra.mrb[50].mxu1 %vm324_vm6, %v4280_v36 }
0x21ec   :  { %8018 = vmatprep.mubr.msk.f32.mxu1 %vm8742_vm5, %v8741_v46 }
0x22b6   :  { %v9569_v37 = vpop.f32.mrb[36].mxu0 }
0x22b7   :  { %v7995_v38 = vpop.f32.mrb[37].mxu0 }
0x22ba   :  { %v9571_v39 = vpop.f32.mrb[48].mxu1  ;;  %v4275_v40 = vpop.f32.mrb[38].mxu0 }
0x22bb   :  { %v4357_v52 = vmul.f32 0.35355338, %v4275_v40  ;;  %v8000_v41 = vpop.f32.mrb[49].mxu1  ;;  %v8005_v42 = vpop.f32.mrb[39].mxu0 }
0x22bd   :  { %v4359_v44 = vadd.f32 %v4357_v52, %v9027_v57 }
0x22be   :  { %v4353_v45 = vpop.f32.mrb[50].mxu1 }
0x22bf   :  { %v4358_v48 = vmul.f32 0.35355338, %v4353_v45  ;;  %v8010_v53 = vpop.f32.mrb[51].mxu1  ;;  %v4361_v54 = vsel %vm324_vm6, %v4359_v44, -inf }
0x22c0   :  { %4362 = vmax.xlane.f32.xlu0 %v4361_v54 }
0x22c1   :  { %v4360_v55 = vadd.f32 %v4358_v48, %v9031_v62 }
0x22c3   :  { %v4364_v56 = vsel %vm324_vm6, %v4360_v55, -inf }
0x22c4   :  { %4365 = vmax.xlane.f32.xlu1 %v4364_v56 }
0x22d5   :  { %4459 = vrot.lane.b32.xlu1 %v9513_v63, %s8747_s3 }
0x22d6   :  { %4383 = vrot.lane.b32.xlu0 %v9515_v4, %s8747_s3 }
0x22d9   :  { %4537 = vrot.lane.b32.xlu1 %v9515_v4, %s8748_s22 }
0x22dd   :  { %4615 = vrot.lane.b32.xlu1 %v9513_v63, %s8748_s22 }
0x22e1   :  { %4613 = vrot.lane.b32.xlu1 %v9513_v63, %s8749_s17 }
0x234d   :  { %v4363_v50 = vpop.xlane.xlu0 %4362 }
0x234e   :  { %v4367_v32 = vsub.f32 %v4359_v44, %v4363_v50 }
0x2350   :  { %v4369_v1 = vmul.f32 1.442695, %v4367_v32 }
0x2351   :  { %v4384_v58 = vpop.permute.xlu0 %4383  ;;  %v4366_v59 = vpop.xlane.xlu1 %4365 }
0x2352   :  { %8472 = vpow2.f32 %v4369_v1  ;;  %v4368_v60 = vsub.f32 %v4360_v55, %v4366_v59  ;;  %8012 = vmatpush3.msra.mxu0 %v4384_v58 }
0x2353   :  { %8021 = vmatprep.subr.mxu0 %v8741_v46 }
0x2354   :  { %v4371_v2 = vmul.f32 1.442695, %v4368_v60 }
0x2355   :  { %v4460_v5 = vpop.permute.xlu1 %4459 }
0x2356   :  { %8474 = vpow2.f32 %v4371_v2  ;;  %8017 = vmatpush3.msra.mxu1 %v4460_v5 }
0x2357   :  { %8026 = vmatprep.subr.mxu1 %v8741_v46 }
0x2359   :  { %v4538_v11 = vpop.permute.xlu1 %4537 }
0x235c   :  { %v8473_v6 = vpop.eup %8472 }
0x235d   :  { %v4373_v8 = vsel %vm324_vm6, %v8473_v6, 0.0  ;;  %v4616_v17 = vpop.permute.xlu1 %4615 }
0x235e   :  { %4374 = vadd.xlane.f32.xlu0 %v4373_v8 }
0x2360   :  { %v8475_v10 = vpop.eup %8474 }
0x2361   :  { %v4376_v47 = vsel %vm324_vm6, %v8475_v10, 0.0  ;;  %v4614_v61 = vpop.permute.xlu1 %4613 }
0x2362   :  { %4377 = vadd.xlane.f32.xlu0 %v4376_v47 }
0x2378   :  { %4535 = vrot.lane.b32.xlu0 %v9515_v4, %s8749_s17 }
0x23eb   :  { %v4375_v49 = vpop.xlane.xlu0 %4374 }
0x23ec   :  { %8476 = vrcp.f32 %v4375_v49 }
0x23ef   :  { %v4378_v30 = vpop.xlane.xlu0 %4377 }
0x23f0   :  { %8478 = vrcp.f32 %v4378_v30 }
0x23f3   :  { %v4536_v51 = vpop.permute.xlu0 %4535 }
0x23f6   :  { %v8477_v12 = vpop.eup %8476 }
0x23f7   :  { %v4381_v13 = vmul.f32 %v8477_v12, %v8473_v6 }
0x23f9   :  { %8014 = vmatmul.mubr.msk.f32.vlgmr.msra.gmra.mrb[40].mxu0 %vm324_vm6, %v4381_v13 }
0x23fa   :  { %v8479_v15 = vpop.eup %8478  ;;  %8022 = vmatpush3.xpose.msk.msra.mxu0 %vm324_vm6, %v4538_v11  ;;  %8023 = vmatprep.mubr.msk.f32.mxu0 %vm8742_vm5, %v8741_v46 }
0x23fb   :  { %v4382_v18 = vmul.f32 %v8479_v15, %v8475_v10  ;;  %8031 = vmatprep.subr.mxu0 %v8741_v46 }
0x23fd   :  { %8019 = vmatmul.mubr.msk.f32.vlgmr.msra.gmra.mrb[52].mxu1 %vm324_vm6, %v4382_v18  ;;  %8024 = vmatmul.mubr.msk.f32.vlgmr.msra.gmra.mrb[42].mxu0 %vm324_vm6, %v4536_v51 }
0x23fe   :  { %8027 = vmatpush3.xpose.msk.msra.mxu1 %vm324_vm6, %v4616_v17  ;;  %8028 = vmatprep.mubr.msk.f32.mxu1 %vm8742_vm5, %v8741_v46 }
0x23ff   :  { %8036 = vmatprep.subr.mxu1 %v8741_v46  ;;  %8033 = vmatprep.mubr.msk.f32.mxu0 %vm8742_vm5, %v8741_v46 }
0x2401   :  { %8029 = vmatmul.mubr.msk.f32.vlgmr.msra.gmra.mrb[54].mxu1 %vm324_vm6, %v4614_v61 }
0x2402   :  { %8038 = vmatprep.mubr.msk.f32.mxu1 %vm8742_vm5, %v8741_v46 }
0x24cc   :  { %v9609_v34 = vpop.f32.mrb[40].mxu0 }
0x24cd   :  { %v8015_v19 = vpop.f32.mrb[41].mxu0 }
0x24d0   :  { %v9611_v28 = vpop.f32.mrb[52].mxu1  ;;  %v4609_v14 = vpop.f32.mrb[42].mxu0 }
0x24d1   :  { %v4691_v20 = vmul.f32 0.35355338, %v4609_v14  ;;  %v8020_v16 = vpop.f32.mrb[53].mxu1  ;;  %v8025_v21 = vpop.f32.mrb[43].mxu0 }
0x24d3   :  { %v4693_v22 = vadd.f32 %v4691_v20, %v9027_v57 }
0x24d4   :  { %v4687_v23 = vpop.f32.mrb[54].mxu1 }
0x24d5   :  { %v4692_v24 = vmul.f32 0.35355338, %v4687_v23  ;;  %v8030_v25 = vpop.f32.mrb[55].mxu1  ;;  %v4695_v26 = vsel %vm324_vm6, %v4693_v22, -inf }
0x24d6   :  { %4696 = vmax.xlane.f32.xlu0 %v4695_v26 }
0x24d7   :  { %v4694_v27 = vadd.f32 %v4692_v24, %v9031_v62 }
0x24d9   :  { %v4698_v29 = vsel %vm324_vm6, %v4694_v27, -inf }
0x24da   :  { %4699 = vmax.xlane.f32.xlu1 %v4698_v29 }
0x24eb   :  { %4793 = vrot.lane.b32.xlu1 %v9513_v63, %s8750_s14 }
0x24ec   :  { %4717 = vrot.lane.b32.xlu0 %v9515_v4, %s8750_s14 }
0x24ef   :  { %4871 = vrot.lane.b32.xlu1 %v9515_v4, %s8751_s18 }
0x24f3   :  { %4949 = vrot.lane.b32.xlu1 %v9513_v63, %s8751_s18 }
0x24f7   :  { %4947 = vrot.lane.b32.xlu1 %v9513_v63, %s8752_s30 }
0x2563   :  { %v4697_v31 = vpop.xlane.xlu0 %4696 }
0x2564   :  { %v4701_v43 = vsub.f32 %v4693_v22, %v4697_v31  ;;  %v7413_v31 = vld [vmem:[%s9994_s6 + $0x30] sm:$0xff] }
0x2566   :  { %v4703_v33 = vmul.f32 1.442695, %v4701_v43  ;;  %v7414_v43 = vld [vmem:[%s9994_s6 + $0x38] sm:$0xff] }
0x2567   :  { %v4718_v35 = vpop.permute.xlu0 %4717  ;;  %v4700_v36 = vpop.xlane.xlu1 %4699 }
0x2568   :  { %8480 = vpow2.f32 %v4703_v33  ;;  %v4702_v38 = vsub.f32 %v4694_v27, %v4700_v36  ;;  %8032 = vmatpush3.msra.mxu0 %v4718_v35  ;;  %v7412_v27 = vld [vmem:[%s9994_s6 + $0x28] sm:$0xff]  ;;  %v8291_v33 = vpack.c.bf16 %v7414_v43, %v7413_v31 }
0x2569   :  { %8041 = vmatprep.subr.mxu0 %v8741_v46 }
0x256a   :  { %v4705_v40 = vmul.f32 1.442695, %v4702_v38 }
0x256b   :  { %v4794_v52 = vpop.permute.xlu1 %4793 }
0x256c   :  { %8482 = vpow2.f32 %v4705_v40  ;;  %8037 = vmatpush3.msra.mxu1 %v4794_v52 }
0x256d   :  { %8046 = vmatprep.subr.mxu1 %v8741_v46 }
0x256f   :  { %v4872_v54 = vpop.permute.xlu1 %4871 }
0x2572   :  { %v8481_v41 = vpop.eup %8480 }
0x2573   :  { %v4707_v42 = vsel %vm324_vm6, %v8481_v41, 0.0  ;;  %v4950_v32 = vpop.permute.xlu1 %4949 }
0x2574   :  { %4708 = vadd.xlane.f32.xlu0 %v4707_v42 }
0x2576   :  { %v8483_v44 = vpop.eup %8482 }
0x2577   :  { %v4710_v45 = vsel %vm324_vm6, %v8483_v44, 0.0  ;;  %v4948_v59 = vpop.permute.xlu1 %4947 }
0x2578   :  { %4711 = vadd.xlane.f32.xlu0 %v4710_v45 }
0x258e   :  { %4869 = vrot.lane.b32.xlu0 %v9515_v4, %s8752_s30 }
0x2601   :  { %v4709_v48 = vpop.xlane.xlu0 %4708 }
0x2602   :  { %8484 = vrcp.f32 %v4709_v48 }
0x2605   :  { %v4712_v53 = vpop.xlane.xlu0 %4711 }
0x2606   :  { %8486 = vrcp.f32 %v4712_v53 }
0x2609   :  { %v4870_v58 = vpop.permute.xlu0 %4869 }
0x260c   :  { %v8485_v55 = vpop.eup %8484 }
0x260d   :  { %v4715_v56 = vmul.f32 %v8485_v55, %v8481_v41 }
0x260f   :  { %8034 = vmatmul.mubr.msk.f32.vlgmr.msra.gmra.mrb[44].mxu0 %vm324_vm6, %v4715_v56 }
0x2610   :  { %v8487_v50 = vpop.eup %8486  ;;  %8042 = vmatpush3.xpose.msk.msra.mxu0 %vm324_vm6, %v4872_v54  ;;  %8043 = vmatprep.mubr.msk.f32.mxu0 %vm8742_vm5, %v8741_v46 }
0x2611   :  { %v4716_v1 = vmul.f32 %v8487_v50, %v8483_v44  ;;  %8051 = vmatprep.subr.mxu0 %v8741_v46 }
0x2613   :  { %8039 = vmatmul.mubr.msk.f32.vlgmr.msra.gmra.mrb[56].mxu1 %vm324_vm6, %v4716_v1  ;;  %8044 = vmatmul.mubr.msk.f32.vlgmr.msra.gmra.mrb[46].mxu0 %vm324_vm6, %v4870_v58  ;;  %v8552_v1 = vld [vmem:[#allocation6] sm:$0xff] }
0x2614   :  { %8047 = vmatpush3.xpose.msk.msra.mxu1 %vm324_vm6, %v4950_v32  ;;  %8048 = vmatprep.mubr.msk.f32.mxu1 %vm8742_vm5, %v8741_v46 }
0x2615   :  { %8056 = vmatprep.subr.mxu1 %v8741_v46  ;;  %8053 = vmatprep.mubr.msk.f32.mxu0 %vm8742_vm5, %v8741_v46 }
0x2617   :  { %8049 = vmatmul.mubr.msk.f32.vlgmr.msra.gmra.mrb[58].mxu1 %vm324_vm6, %v4948_v59 }
0x2618   :  { %8058 = vmatprep.mubr.msk.f32.mxu1 %vm8742_vm5, %v8741_v46 }
0x26e2   :  { %v4789_v60 = vpop.f32.mrb[44].mxu0 }
0x26e3   :  { %v8035_v2 = vpop.f32.mrb[45].mxu0 }
0x26e6   :  { %v4865_v5 = vpop.f32.mrb[56].mxu1  ;;  %v4943_v6 = vpop.f32.mrb[46].mxu0 }
0x26e7   :  { %v5025_v8 = vmul.f32 0.35355338, %v4943_v6  ;;  %v8040_v10 = vpop.f32.mrb[57].mxu1  ;;  %v8045_v47 = vpop.f32.mrb[47].mxu0 }
0x26e9   :  { %v5027_v49 = vadd.f32 %v5025_v8, %v9027_v57 }
0x26ea   :  { %v5021_v30 = vpop.f32.mrb[58].mxu1 }
0x26eb   :  { %v5026_v11 = vmul.f32 0.35355338, %v5021_v30  ;;  %v8050_v12 = vpop.f32.mrb[59].mxu1  ;;  %v5029_v13 = vsel %vm324_vm6, %v5027_v49, -inf }
0x26ec   :  { %5030 = vmax.xlane.f32.xlu0 %v5029_v13 }
0x26ed   :  { %v5028_v15 = vadd.f32 %v5026_v11, %v9031_v62 }
0x26ef   :  { %v5032_v17 = vsel %vm324_vm6, %v5028_v15, -inf }
0x26f0   :  { %5033 = vmax.xlane.f32.xlu1 %v5032_v17  ;;  %v5465_v17 = vld [vmem:[#allocation9 + $0x20] sm:$0xff] }
0x2701   :  { %5127 = vrot.lane.b32.xlu1 %v9513_v63, %s10032_s5 }
0x2705   :  { %5205 = vrot.lane.b32.xlu1 %v9609_v34, %s8735_s29 }
0x2709   :  { %5207 = vrot.lane.b32.xlu1 %v9611_v28, %s8735_s29 }
0x270d   :  { %5215 = vrot.lane.b32.xlu1 %v4865_v5, %s10033_s10 }
0x2779   :  { %v5031_v57 = vpop.xlane.xlu0 %5030 }
0x277a   :  { %v5035_v18 = vsub.f32 %v5027_v49, %v5031_v57  ;;  %v5466_v57 = vld [vmem:[#allocation9 + $0x28] sm:$0xff] }
0x277c   :  { %v5037_v51 = vmul.f32 1.442695, %v5035_v18  ;;  %v7445_v18 = vld [vmem:[%s9996_s8 + $0x20] sm:$0xff] }
0x277d   :  { %v5034_v61 = vpop.xlane.xlu1 %5033 }
0x277e   :  { %8488 = vpow2.f32 %v5037_v51  ;;  %v5036_v62 = vsub.f32 %v5028_v15, %v5034_v61  ;;  %v8303_v51 = vpack.c.bf16 %v5466_v57, %v5465_v17  ;;  %v7446_v61 = vld [vmem:[%s9996_s8 + $0x28] sm:$0xff] }
0x2780   :  { %v5039_v19 = vmul.f32 1.442695, %v5036_v62  ;;  %v5467_v62 = vld [vmem:[#allocation9 + $0x30] sm:$0xff] }
0x2781   :  { %v5128_v14 = vpop.permute.xlu1 %5127 }
0x2782   :  { %8490 = vpow2.f32 %v5039_v19  ;;  %8057 = vmatpush3.msra.mxu1 %v5128_v14  ;;  %v5468_v19 = vld [vmem:[#allocation9 + $0x38] sm:$0xff]  ;;  %v8295_v14 = vpack.c.bf16 %v7446_v61, %v7445_v18 }
0x2784   :  { %8296 = vmatprep.subr.bf16.mxu1 %v8295_v14 }
0x2785   :  { %v5206_v52 = vpop.permute.xlu1 %5205 }
0x2786   :  { %v5227_v44 = vsel %vm324_vm6, %v9569_v37, %v5206_v52  ;;  %v7440_v37 = vld [vmem:[%s9995_s7 + $0x1] ss:$0 sm:$0xff] }
0x2788   :  { %v8489_v20 = vpop.eup %8488 }
0x2789   :  { %v5041_v63 = vsel %vm324_vm6, %v8489_v20, 0.0  ;;  %v5208_v41 = vpop.permute.xlu1 %5207 }
0x278a   :  { %5042 = vadd.xlane.f32.xlu0 %v5041_v63  ;;  %v5228_v55 = vsel %vm324_vm6, %v9571_v39, %v5208_v41  ;;  %v7447_v63 = vld [vmem:[%s9996_s8 + $0x30] sm:$0xff] }
0x278c   :  { %v8491_v34 = vpop.eup %8490 }
0x278d   :  { %v5044_v16 = vsel %vm324_vm6, %v8491_v34, 0.0  ;;  %v5216_v45 = vpop.permute.xlu1 %5215 }
0x278e   :  { %5045 = vadd.xlane.f32.xlu0 %v5044_v16  ;;  %v5230_v56 = vsel %vm1682_vm10, %v5228_v55, %v5216_v45 }
0x27a4   :  { %5051 = vrot.lane.b32.xlu0 %v9515_v4, %s10032_s5  ;;  %v7411_v4 = vld [vmem:[%s9994_s6 + $0x20] sm:$0xff] }
0x27a5   :  { %v8287_v29 = vpack.c.bf16 %v7412_v27, %v7411_v4 }
0x27a8   :  { %5213 = vrot.lane.b32.xlu0 %v4789_v60, %s10033_s10 }
0x2817   :  { %v5043_v28 = vpop.xlane.xlu0 %5042 }
0x2818   :  { %8492 = vrcp.f32 %v5043_v28  ;;  %v8553_v28 = vld [vmem:[#allocation6 + $0x8] sm:$0xff] }
0x281b   :  { %v5046_v21 = vpop.xlane.xlu0 %5045 }
0x281c   :  { %8494 = vrcp.f32 %v5046_v21 }
0x281f   :  { %v5052_v22 = vpop.permute.xlu0 %5051 }
0x2820   :  { %8052 = vmatpush3.msra.mxu0 %v5052_v22 }
0x2821   :  { %8288 = vmatprep.subr.bf16.mxu0 %v8287_v29 }
0x2822   :  { %v8493_v23 = vpop.eup %8492 }
0x2823   :  { %v5049_v24 = vmul.f32 %v8493_v23, %v8489_v20  ;;  %v5214_v42 = vpop.permute.xlu0 %5213  ;;  %v8307_v20 = vpack.c.bf16 %v5468_v19, %v5467_v62 }
0x2824   :  { %v5229_v48 = vsel %vm1682_vm10, %v5227_v44, %v5214_v42  ;;  %v5367_v44 = vstv %s7444_s2 }
0x2825   :  { %8054 = vmatmul.mubr.msk.f32.vlgmr.msra.gmra.mrb[48].mxu0 %vm324_vm6, %v5049_v24 }
0x2826   :  { %v8495_v25 = vpop.eup %8494  ;;  %8290 = vmatpush3.bf16.msra.mxu0 %v8287_v29 }
0x2827   :  { %v5050_v26 = vmul.f32 %v8495_v25, %v8491_v34  ;;  %8292 = vmatprep.subr.bf16.mxu0 %v8291_v33  ;;  %v7448_v34 = vld [vmem:[%s9996_s8 + $0x38] sm:$0xff]  ;;  %s7443_s8 = sld [smem:[#allocation14 + $0x8]] }
0x2828   :  { %v8299_v16 = vpack.c.bf16 %v7448_v34, %v7447_v63 }
0x2829   :  { %8059 = vmatmul.mubr.msk.f32.vlgmr.msra.gmra.mrb[60].mxu1 %vm324_vm6, %v5050_v26 }
0x282a   :  { %8294 = vmatpush3.bf16.msra.mxu0 %v8291_v33  ;;  %8298 = vmatpush3.bf16.msra.mxu1 %v8295_v14 }
0x282b   :  { %8304 = vmatprep.subr.bf16.mxu0 %v8303_v51  ;;  %8300 = vmatprep.subr.bf16.mxu1 %v8299_v16 }
0x282d   :  { %v5344_v52 = vstv %s7443_s8 }
0x282e   :  { %8302 = vmatpush3.bf16.msra.mxu1 %v8299_v16 }
0x282f   :  { %8094 = vmatprep.subr.mxu1 %v8741_v46 }
0x28f8   :  { %v5123_v35 = vpop.f32.mrb[48].mxu0 }
0x28f9   :  { %5221 = vrot.lane.b32.xlu0 %v5123_v35, %s10034_s4  ;;  %v8055_v36 = vpop.f32.mrb[49].mxu0 }
0x28fc   :  { %v5199_v38 = vpop.f32.mrb[60].mxu1 }
0x28fd   :  { %5223 = vrot.lane.b32.xlu1 %v5199_v38, %s10034_s4  ;;  %v8060_v40 = vpop.f32.mrb[61].mxu1 }
0x296b   :  { %v5222_v53 = vpop.permute.xlu0 %5221 }
0x296c   :  { %v5231_v54 = vsel %vm1685_vm9, %v5229_v48, %v5222_v53 }
0x296d   :  { %8069 = vmatprep.mubr.msk.f32.mxu0 %vm176_vm0, %v5231_v54 }
0x296f   :  { %v5224_v50 = vpop.permute.xlu1 %5223 }
0x2970   :  { %v5232_v32 = vsel %vm1685_vm9, %v5230_v56, %v5224_v50  ;;  %v7454_v50 = vld [vmem:[%s9999_s11 + $0x1] ss:$0 sm:$0xff] }
0x2971   :  { %8070 = vmatmul.mubr.msk.f32.vlgmr.msra.gmra.mrb[50].mxu0 %vm176_vm0, %v5232_v32 }
0x2972   :  { %8091 = vmatprep.mubr.msk.f32.mxu0 %vm176_vm0, %v8552_v1  ;;  %8306 = vmatpush3.bf16.msra.mxu0 %v8303_v51 }
0x2973   :  { %8308 = vmatprep.subr.bf16.mxu0 %v8307_v20 }
0x2976   :  { %8310 = vmatpush3.bf16.msra.mxu0 %v8307_v20 }
0x2977   :  { %8104 = vmatprep.subr.mxu0 %v8741_v46 }
0x2979   :  { %8092 = vmatmul.mubr.msk.f32.vlgmr.msra.gmra.mrb[52].mxu0 %vm176_vm0, %v8553_v28 }
0x297a   :  { %8106 = vmatprep.mubr.msk.f32.mxu0 %vm8742_vm5, %v8741_v46 }
0x2a44   :  { %v8071_v58 = vpop.f32.mrb[50].mxu0 }
0x2a45   :  { %v5317_v59 = vadd.f32 %v8071_v58, %v7440_v37  ;;  %v5311_v60 = vpop.f32.mrb[51].mxu0 }
0x2a46   :  { %v5312_v2 = vadd.f32 %v7440_v37, %v5311_v60 }
0x2a47   :  { %v9696_v39 = vadd.f32 %v5317_v59, %v9481_v7  ;;  %v7450_v59 = vld [vmem:[%s9997_s9 + $0x1] ss:$0 sm:$0xff] }
0x2a48   :  { %v9699_v5 = vadd.f32 %v5312_v2, %v9483_v9 }
0x2a49   :  { %v5327_v6 = vsel %vm176_vm0, %v9696_v39, 0.0 }
0x2a4a   :  { %5328 = vadd.xlane.f32.xlu1 %v5327_v6  ;;  %v5324_v8 = vsel %vm176_vm0, %v9699_v5, 0.0 }
0x2a4b   :  { %5325 = vadd.xlane.f32.xlu0 %v5324_v8 }
0x2a4c   :  { %v8093_v32 = vpop.f32.mrb[52].mxu0 }
0x2a4d   :  { %v9738_v1 = vadd.f32 %v8093_v32, %v7454_v50  ;;  %v5543_v37 = vpop.f32.mrb[53].mxu0 }
0x2a4e   :  { %v9740_v58 = vadd.f32 %v7454_v50, %v5543_v37 }
0x2ad7   :  { %v5329_v10 = vpop.xlane.xlu1 %5328 }
0x2ad8   :  { %v5331_v47 = vmul.f32 0.03125, %v5329_v10  ;;  %v5326_v49 = vpop.xlane.xlu0 %5325 }
0x2ad9   :  { %v5330_v30 = vmul.f32 0.03125, %v5326_v49 }
0x2ada   :  { %v9706_v11 = vsub.f32 %v9696_v39, %v5331_v47 }
0x2adb   :  { %v5332_v7 = vsub.f32 %v9699_v5, %v5330_v30 }
0x2adc   :  { %v5335_v13 = vmul.f32 %v9706_v11, %v9706_v11  ;;  %v5346_v48 = vmul.f32 %v5344_v52, %v9706_v11 }
0x2add   :  { %v5334_v12 = vmul.f32 %v5332_v7, %v5332_v7  ;;  %v5345_v41 = vmul.f32 %v5344_v52, %v5332_v7 }
0x2ade   :  { %v5339_v15 = vsel %vm176_vm0, %v5335_v13, 0.0 }
0x2adf   :  { %v5336_v9 = vsel %vm176_vm0, %v5334_v12, 0.0 }
0x2ae0   :  { %5337 = vadd.xlane.f32.xlu0 %v5336_v9 }
0x2ae4   :  { %5340 = vadd.xlane.f32.xlu0 %v5339_v15 }
0x2b6d   :  { %v5338_v21 = vpop.xlane.xlu0 %5337 }
0x2b6e   :  { %v5342_v22 = vmul.f32 0.032258064, %v5338_v21 }
0x2b70   :  { %8496 = vrsqrt.f32 %v5342_v22  ;;  %vm5349_vm15 = vcmp.eq.f32.partialorder %v5342_v22, inf  ;;  %v5352_v4 = vand.u32 2147483648, %v5342_v22  ;;  %vm5351_vm1 = vcmp.eq.f32.partialorder %v5342_v22, 0.0 }
0x2b71   :  { %v5341_v23 = vpop.xlane.xlu0 %5340 }
0x2b72   :  { %v5343_v24 = vmul.f32 0.032258064, %v5341_v23 }
0x2b74   :  { %8498 = vrsqrt.f32 %v5343_v24  ;;  %vm5356_vm2 = vcmp.eq.f32.partialorder %v5343_v24, inf  ;;  %v5359_v35 = vand.u32 2147483648, %v5343_v24  ;;  %vm5358_vm3 = vcmp.eq.f32.partialorder %v5343_v24, 0.0 }
0x2b7a   :  { %v8497_v25 = vpop.eup %8496 }
0x2b7b   :  { %v5348_v26 = vmul.f32 %v8497_v25, %v5342_v22 }
0x2b7d   :  { %v5350_v27 = vsel %vm5349_vm15, %v5342_v22, %v5348_v26 }
0x2b7e   :  { %v8499_v29 = vpop.eup %8498  ;;  %v5353_v31 = vsel %vm5351_vm1, %v5352_v4, %v5350_v27 }
0x2b7f   :  { %v5355_v43 = vmul.f32 %v8499_v29, %v5343_v24  ;;  %v5361_v33 = vadd.f32 1e-06, %v5353_v31 }
0x2b81   :  { %v5357_v36 = vsel %vm5356_vm2, %v5343_v24, %v5355_v43  ;;  %8500 = vrcp.f32 %v5361_v33 }
0x2b82   :  { %v5360_v38 = vsel %vm5358_vm3, %v5359_v35, %v5357_v36 }
0x2b83   :  { %v5362_v40 = vadd.f32 1e-06, %v5360_v38 }
0x2b85   :  { %8502 = vrcp.f32 %v5362_v40 }
0x2b8b   :  { %v8501_v42 = vpop.eup %8500 }
0x2b8c   :  { %v5364_v45 = vmul.f32 %v8501_v42, %v5345_v41 }
0x2b8e   :  { %v5368_v53 = vadd.f32 %v5367_v44, %v5364_v45 }
0x2b8f   :  { %v8503_v54 = vpop.eup %8502 }
0x2b90   :  { %v5366_v55 = vmul.f32 %v8503_v54, %v5346_v48  ;;  %8080 = vmatprep.mubr.msk.f32.mxu1 %vm176_vm0, %v5368_v53 }
0x2b92   :  { %v5369_v56 = vadd.f32 %v5367_v44, %v5366_v55 }
0x2b94   :  { %8081 = vmatmul.mubr.msk.f32.vlgmr.msra.gmra.mrb[62].mxu1 %vm176_vm0, %v5369_v56 }
0x2b95   :  { %8096 = vmatprep.mubr.msk.f32.mxu1 %vm8742_vm5, %v8741_v46  ;;  %8095 = vmatpush3.xpose.msk.msra.mxu1 %vm324_vm6, %v9740_v58 }
0x2b96   :  { %8099 = vmatprep.subr.mxu1 %v8741_v46 }
0x2c67   :  { %v8082_v60 = vpop.f32.mrb[62].mxu1 }
0x2c68   :  { %v5455_v2 = vpop.f32.mrb[63].mxu1  ;;  %v9756_v8 = vadd.f32 %v8082_v60, %v7450_v59 }
0x2c69   :  { %v9748_v6 = vadd.f32 %v7450_v59, %v5455_v2 }
0x2c6b   :  { %8097 = vmatmul.mubr.msk.f32.vlgmr.msra.gmra.mrb[64].mxu1 %vm324_vm6, %v9748_v6 }
0x2c6c   :  { %8100 = vmatpush3.xpose.msk.msra.mxu1 %vm324_vm6, %v9738_v1  ;;  %8101 = vmatprep.mubr.msk.f32.mxu1 %vm8742_vm5, %v8741_v46 }
0x2c6d   :  { %8109 = vmatprep.subr.mxu1 %v8741_v46 }
0x2c6f   :  { %8102 = vmatmul.mubr.msk.f32.vlgmr.msra.gmra.mrb[66].mxu1 %vm324_vm6, %v9756_v8 }
0x2c70   :  { %8111 = vmatprep.mubr.msk.f32.mxu1 %vm8742_vm5, %v8741_v46 }
0x2d3e   :  { %v5631_v10 = vpop.f32.mrb[64].mxu1 }
0x2d3f   :  { %v5711_v47 = vmul.f32 0.35355338, %v5631_v10  ;;  %v8098_v49 = vpop.f32.mrb[65].mxu1 }
0x2d41   :  { %v5713_v30 = vadd.f32 %v5711_v47, %v9269_v0 }
0x2d42   :  { %v5707_v11 = vpop.f32.mrb[66].mxu1 }
0x2d43   :  { %v5712_v7 = vmul.f32 0.35355338, %v5707_v11  ;;  %v8103_v12 = vpop.f32.mrb[67].mxu1  ;;  %v5715_v9 = vsel %vm324_vm6, %v5713_v30, -inf }
0x2d44   :  { %5716 = vmax.xlane.f32.xlu0 %v5715_v9 }
0x2d45   :  { %v5714_v13 = vadd.f32 %v5712_v7, %v9273_v3 }
0x2d47   :  { %v5718_v15 = vsel %vm324_vm6, %v5714_v13, -inf }
0x2d48   :  { %5719 = vmax.xlane.f32.xlu1 %v5718_v15 }
0x2d59   :  { %5813 = vrot.lane.b32.xlu1 %v9738_v1, %s8743_s12 }
0x2d5a   :  { %5737 = vrot.lane.b32.xlu0 %v9740_v58, %s8743_s12 }
0x2d5d   :  { %5891 = vrot.lane.b32.xlu1 %v9740_v58, %s8746_s24 }
0x2d61   :  { %5969 = vrot.lane.b32.xlu1 %v9738_v1, %s8746_s24 }
0x2dd1   :  { %v5717_v17 = vpop.xlane.xlu0 %5716 }
0x2dd2   :  { %v5721_v57 = vsub.f32 %v5713_v30, %v5717_v17 }
0x2dd4   :  { %v5723_v18 = vmul.f32 1.442695, %v5721_v57 }
0x2dd5   :  { %v5738_v51 = vpop.permute.xlu0 %5737  ;;  %v5720_v61 = vpop.xlane.xlu1 %5719 }
0x2dd6   :  { %8504 = vpow2.f32 %v5723_v18  ;;  %v5722_v62 = vsub.f32 %v5714_v13, %v5720_v61  ;;  %8105 = vmatpush3.msra.mxu0 %v5738_v51 }
0x2dd7   :  { %8114 = vmatprep.subr.mxu0 %v8741_v46 }
0x2dd8   :  { %v5725_v19 = vmul.f32 1.442695, %v5722_v62 }
0x2dd9   :  { %v5814_v14 = vpop.permute.xlu1 %5813 }
0x2dda   :  { %8506 = vpow2.f32 %v5725_v19  ;;  %8110 = vmatpush3.msra.mxu1 %v5814_v14 }
0x2ddb   :  { %8119 = vmatprep.subr.mxu1 %v8741_v46 }
0x2ddd   :  { %v5892_v28 = vpop.permute.xlu1 %5891 }
0x2de0   :  { %v8505_v20 = vpop.eup %8504 }
0x2de1   :  { %v5727_v63 = vsel %vm324_vm6, %v8505_v20, 0.0  ;;  %v5970_v21 = vpop.permute.xlu1 %5969 }
0x2de2   :  { %5728 = vadd.xlane.f32.xlu0 %v5727_v63 }
0x2de4   :  { %v8507_v34 = vpop.eup %8506 }
0x2de5   :  { %v5730_v16 = vsel %vm324_vm6, %v8507_v34, 0.0 }
0x2de6   :  { %5731 = vadd.xlane.f32.xlu1 %v5730_v16 }
0x2df7   :  { %5967 = vrot.lane.b32.xlu1 %v9756_v8, %s8746_s24 }
0x2df8   :  { %5889 = vrot.lane.b32.xlu0 %v9748_v6, %s8746_s24 }
0x2e6f   :  { %v5729_v22 = vpop.xlane.xlu0 %5728 }
0x2e70   :  { %8508 = vrcp.f32 %v5729_v22 }
0x2e73   :  { %v5732_v23 = vpop.xlane.xlu1 %5731  ;;  %v5890_v27 = vpop.permute.xlu0 %5889 }
0x2e74   :  { %8510 = vrcp.f32 %v5732_v23 }
0x2e77   :  { %v5968_v29 = vpop.permute.xlu1 %5967 }
0x2e7a   :  { %v8509_v24 = vpop.eup %8508 }
0x2e7b   :  { %v5735_v25 = vmul.f32 %v8509_v24, %v8505_v20 }
0x2e7d   :  { %8107 = vmatmul.mubr.msk.f32.vlgmr.msra.gmra.mrb[54].mxu0 %vm324_vm6, %v5735_v25 }
0x2e7e   :  { %v8511_v26 = vpop.eup %8510  ;;  %8115 = vmatpush3.xpose.msk.msra.mxu0 %vm324_vm6, %v5892_v28  ;;  %8116 = vmatprep.mubr.msk.f32.mxu0 %vm8742_vm5, %v8741_v46 }
0x2e7f   :  { %v5736_v4 = vmul.f32 %v8511_v26, %v8507_v34  ;;  %8124 = vmatprep.subr.mxu0 %v8741_v46 }
0x2e81   :  { %8112 = vmatmul.mubr.msk.f32.vlgmr.msra.gmra.mrb[68].mxu1 %vm324_vm6, %v5736_v4  ;;  %8117 = vmatmul.mubr.msk.f32.vlgmr.msra.gmra.mrb[56].mxu0 %vm324_vm6, %v5890_v27 }
0x2e82   :  { %8120 = vmatpush3.xpose.msk.msra.mxu1 %vm324_vm6, %v5970_v21  ;;  %8121 = vmatprep.mubr.msk.f32.mxu1 %vm8742_vm5, %v8741_v46 }
0x2e83   :  { %8129 = vmatprep.subr.mxu1 %v8741_v46  ;;  %8126 = vmatprep.mubr.msk.f32.mxu0 %vm8742_vm5, %v8741_v46 }
0x2e85   :  { %8122 = vmatmul.mubr.msk.f32.vlgmr.msra.gmra.mrb[70].mxu1 %vm324_vm6, %v5968_v29 }
0x2e86   :  { %8131 = vmatprep.mubr.msk.f32.mxu1 %vm8742_vm5, %v8741_v46 }
0x2f50   :  { %v9799_v31 = vpop.f32.mrb[54].mxu0 }
0x2f51   :  { %v8108_v43 = vpop.f32.mrb[55].mxu0 }
0x2f54   :  { %v9801_v33 = vpop.f32.mrb[68].mxu1  ;;  %v5963_v35 = vpop.f32.mrb[56].mxu0 }
0x2f55   :  { %v6045_v36 = vmul.f32 0.35355338, %v5963_v35  ;;  %v8113_v38 = vpop.f32.mrb[69].mxu1  ;;  %v8118_v40 = vpop.f32.mrb[57].mxu0 }
0x2f57   :  { %v6047_v52 = vadd.f32 %v6045_v36, %v9269_v0 }
0x2f58   :  { %v6041_v41 = vpop.f32.mrb[70].mxu1 }
0x2f59   :  { %v6046_v42 = vmul.f32 0.35355338, %v6041_v41  ;;  %v8123_v44 = vpop.f32.mrb[71].mxu1  ;;  %v6049_v45 = vsel %vm324_vm6, %v6047_v52, -inf }
0x2f5a   :  { %6050 = vmax.xlane.f32.xlu0 %v6049_v45 }
0x2f5b   :  { %v6048_v48 = vadd.f32 %v6046_v42, %v9273_v3 }
0x2f5d   :  { %v6052_v53 = vsel %vm324_vm6, %v6048_v48, -inf }
0x2f5e   :  { %6053 = vmax.xlane.f32.xlu1 %v6052_v53 }
0x2f6f   :  { %6147 = vrot.lane.b32.xlu1 %v9738_v1, %s8745_s23 }
0x2f70   :  { %6071 = vrot.lane.b32.xlu0 %v9740_v58, %s8745_s23 }
0x2f73   :  { %6225 = vrot.lane.b32.xlu1 %v9740_v58, %s8749_s17 }
0x2f77   :  { %6303 = vrot.lane.b32.xlu1 %v9738_v1, %s8749_s17 }
0x2f7b   :  { %6301 = vrot.lane.b32.xlu1 %v9756_v8, %s8749_s17 }
0x2fe7   :  { %v6051_v54 = vpop.xlane.xlu0 %6050 }
0x2fe8   :  { %v6055_v55 = vsub.f32 %v6047_v52, %v6051_v54 }
0x2fea   :  { %v6057_v56 = vmul.f32 1.442695, %v6055_v55 }
0x2feb   :  { %v6072_v50 = vpop.permute.xlu0 %6071  ;;  %v6054_v32 = vpop.xlane.xlu1 %6053 }
0x2fec   :  { %8512 = vpow2.f32 %v6057_v56  ;;  %v6056_v37 = vsub.f32 %v6048_v48, %v6054_v32  ;;  %8125 = vmatpush3.msra.mxu0 %v6072_v50 }
0x2fed   :  { %8134 = vmatprep.subr.mxu0 %v8741_v46 }
0x2fee   :  { %v6059_v59 = vmul.f32 1.442695, %v6056_v37 }
0x2fef   :  { %v6148_v60 = vpop.permute.xlu1 %6147 }
0x2ff0   :  { %8514 = vpow2.f32 %v6059_v59  ;;  %8130 = vmatpush3.msra.mxu1 %v6148_v60 }
0x2ff1   :  { %8139 = vmatprep.subr.mxu1 %v8741_v46 }
0x2ff3   :  { %v6226_v7 = vpop.permute.xlu1 %6225 }
0x2ff6   :  { %v8513_v2 = vpop.eup %8512 }
0x2ff7   :  { %v6061_v10 = vsel %vm324_vm6, %v8513_v2, 0.0  ;;  %v6304_v15 = vpop.permute.xlu1 %6303 }
0x2ff8   :  { %6062 = vadd.xlane.f32.xlu0 %v6061_v10 }
0x2ffa   :  { %v8515_v47 = vpop.eup %8514 }
0x2ffb   :  { %v6064_v49 = vsel %vm324_vm6, %v8515_v47, 0.0  ;;  %v6302_v18 = vpop.permute.xlu1 %6301 }
0x2ffc   :  { %6065 = vadd.xlane.f32.xlu0 %v6064_v49 }
0x3012   :  { %6223 = vrot.lane.b32.xlu0 %v9748_v6, %s8749_s17 }
0x3085   :  { %v6063_v30 = vpop.xlane.xlu0 %6062 }
0x3086   :  { %8516 = vrcp.f32 %v6063_v30 }
0x3089   :  { %v6066_v11 = vpop.xlane.xlu0 %6065 }
0x308a   :  { %8518 = vrcp.f32 %v6066_v11 }
0x308d   :  { %v6224_v57 = vpop.permute.xlu0 %6223 }
0x3090   :  { %v8517_v12 = vpop.eup %8516 }
0x3091   :  { %v6069_v9 = vmul.f32 %v8517_v12, %v8513_v2 }
0x3093   :  { %8127 = vmatmul.mubr.msk.f32.vlgmr.msra.gmra.mrb[58].mxu0 %vm324_vm6, %v6069_v9 }
0x3094   :  { %v8519_v13 = vpop.eup %8518  ;;  %8135 = vmatpush3.xpose.msk.msra.mxu0 %vm324_vm6, %v6226_v7  ;;  %8136 = vmatprep.mubr.msk.f32.mxu0 %vm8742_vm5, %v8741_v46 }
0x3095   :  { %v6070_v17 = vmul.f32 %v8519_v13, %v8515_v47  ;;  %8144 = vmatprep.subr.mxu0 %v8741_v46 }
0x3097   :  { %8132 = vmatmul.mubr.msk.f32.vlgmr.msra.gmra.mrb[72].mxu1 %vm324_vm6, %v6070_v17  ;;  %8137 = vmatmul.mubr.msk.f32.vlgmr.msra.gmra.mrb[60].mxu0 %vm324_vm6, %v6224_v57 }
0x3098   :  { %8140 = vmatpush3.xpose.msk.msra.mxu1 %vm324_vm6, %v6304_v15  ;;  %8141 = vmatprep.mubr.msk.f32.mxu1 %vm8742_vm5, %v8741_v46 }
0x3099   :  { %8149 = vmatprep.subr.mxu1 %v8741_v46  ;;  %8146 = vmatprep.mubr.msk.f32.mxu0 %vm8742_vm5, %v8741_v46 }
0x309b   :  { %8142 = vmatmul.mubr.msk.f32.vlgmr.msra.gmra.mrb[74].mxu1 %vm324_vm6, %v6302_v18 }
0x309c   :  { %8151 = vmatprep.mubr.msk.f32.mxu1 %vm8742_vm5, %v8741_v46 }
0x3166   :  { %v9839_v51 = vpop.f32.mrb[58].mxu0 }
0x3167   :  { %v8128_v61 = vpop.f32.mrb[59].mxu0 }
0x316a   :  { %v9841_v62 = vpop.f32.mrb[72].mxu1  ;;  %v6297_v19 = vpop.f32.mrb[60].mxu0 }
0x316b   :  { %v6379_v14 = vmul.f32 0.35355338, %v6297_v19  ;;  %v8133_v20 = vpop.f32.mrb[73].mxu1  ;;  %v8138_v63 = vpop.f32.mrb[61].mxu0 }
0x316d   :  { %v6381_v34 = vadd.f32 %v6379_v14, %v9269_v0 }
0x316e   :  { %v6375_v16 = vpop.f32.mrb[74].mxu1 }
0x316f   :  { %v6380_v28 = vmul.f32 0.35355338, %v6375_v16  ;;  %v8143_v21 = vpop.f32.mrb[75].mxu1  ;;  %v6383_v22 = vsel %vm324_vm6, %v6381_v34, -inf }
0x3170   :  { %6384 = vmax.xlane.f32.xlu0 %v6383_v22  ;;  %v5554_v21 = vld [vmem:[#allocation11 + $0x28] sm:$0xff] }
0x3171   :  { %v6382_v23 = vadd.f32 %v6380_v28, %v9273_v3  ;;  %v5553_v28 = vld [vmem:[#allocation11 + $0x20] sm:$0xff] }
0x3172   :  { %v8311_v22 = vpack.c.bf16 %v5554_v21, %v5553_v28 }
0x3173   :  { %v6386_v24 = vsel %vm324_vm6, %v6382_v23, -inf }
0x3174   :  { %6387 = vmax.xlane.f32.xlu1 %v6386_v24 }
0x3185   :  { %6481 = vrot.lane.b32.xlu1 %v9738_v1, %s8748_s22 }
0x3186   :  { %6405 = vrot.lane.b32.xlu0 %v9740_v58, %s8748_s22 }
0x3189   :  { %6559 = vrot.lane.b32.xlu1 %v9740_v58, %s8752_s30 }
0x318d   :  { %6637 = vrot.lane.b32.xlu1 %v9738_v1, %s8752_s30 }
0x3191   :  { %6635 = vrot.lane.b32.xlu1 %v9756_v8, %s8752_s30 }
0x31fd   :  { %v6385_v25 = vpop.xlane.xlu0 %6384 }
0x31fe   :  { %v6389_v26 = vsub.f32 %v6381_v34, %v6385_v25 }
0x3200   :  { %v6391_v4 = vmul.f32 1.442695, %v6389_v26 }
0x3201   :  { %v6406_v27 = vpop.permute.xlu0 %6405  ;;  %v6388_v29 = vpop.xlane.xlu1 %6387 }
0x3202   :  { %8520 = vpow2.f32 %v6391_v4  ;;  %v6390_v43 = vsub.f32 %v6382_v23, %v6388_v29  ;;  %8145 = vmatpush3.msra.mxu0 %v6406_v27  ;;  %v5556_v23 = vld [vmem:[#allocation11 + $0x38] sm:$0xff] }
0x3203   :  { %8154 = vmatprep.subr.mxu0 %v8741_v46 }
0x3204   :  { %v6393_v35 = vmul.f32 1.442695, %v6390_v43 }
0x3205   :  { %v6482_v36 = vpop.permute.xlu1 %6481 }
0x3206   :  { %8522 = vpow2.f32 %v6393_v35  ;;  %8150 = vmatpush3.msra.mxu1 %v6482_v36 }
0x3207   :  { %8159 = vmatprep.subr.mxu1 %v8741_v46 }
0x3209   :  { %v6560_v44 = vpop.permute.xlu1 %6559 }
0x320c   :  { %v8521_v38 = vpop.eup %8520 }
0x320d   :  { %v6395_v40 = vsel %vm324_vm6, %v8521_v38, 0.0  ;;  %v6638_v54 = vpop.permute.xlu1 %6637 }
0x320e   :  { %6396 = vadd.xlane.f32.xlu0 %v6395_v40 }
0x3210   :  { %v8523_v8 = vpop.eup %8522 }
0x3211   :  { %v6398_v52 = vsel %vm324_vm6, %v8523_v8, 0.0  ;;  %v6636_v56 = vpop.permute.xlu1 %6635 }
0x3212   :  { %6399 = vadd.xlane.f32.xlu0 %v6398_v52 }
0x3228   :  { %6557 = vrot.lane.b32.xlu0 %v9748_v6, %s8752_s30 }
0x329b   :  { %v6397_v41 = vpop.xlane.xlu0 %6396 }
0x329c   :  { %8524 = vrcp.f32 %v6397_v41 }
0x329f   :  { %v6400_v42 = vpop.xlane.xlu0 %6399 }
0x32a0   :  { %8526 = vrcp.f32 %v6400_v42 }
0x32a3   :  { %v6558_v6 = vpop.permute.xlu0 %6557 }
0x32a6   :  { %v8525_v45 = vpop.eup %8524 }
0x32a7   :  { %v6403_v48 = vmul.f32 %v8525_v45, %v8521_v38 }
0x32a9   :  { %8147 = vmatmul.mubr.msk.f32.vlgmr.msra.gmra.mrb[62].mxu0 %vm324_vm6, %v6403_v48 }
0x32aa   :  { %v8527_v53 = vpop.eup %8526  ;;  %8155 = vmatpush3.xpose.msk.msra.mxu0 %vm324_vm6, %v6560_v44  ;;  %8156 = vmatprep.mubr.msk.f32.mxu0 %vm8742_vm5, %v8741_v46 }
0x32ab   :  { %v6404_v55 = vmul.f32 %v8527_v53, %v8523_v8  ;;  %8164 = vmatprep.subr.mxu0 %v8741_v46 }
0x32ad   :  { %8152 = vmatmul.mubr.msk.f32.vlgmr.msra.gmra.mrb[76].mxu1 %vm324_vm6, %v6404_v55  ;;  %8157 = vmatmul.mubr.msk.f32.vlgmr.msra.gmra.mrb[64].mxu0 %vm324_vm6, %v6558_v6 }
0x32ae   :  { %8160 = vmatpush3.xpose.msk.msra.mxu1 %vm324_vm6, %v6638_v54  ;;  %8161 = vmatprep.mubr.msk.f32.mxu1 %vm8742_vm5, %v8741_v46 }
0x32af   :  { %8169 = vmatprep.subr.mxu1 %v8741_v46  ;;  %8166 = vmatprep.mubr.msk.f32.mxu0 %vm8742_vm5, %v8741_v46 }
0x32b1   :  { %8162 = vmatmul.mubr.msk.f32.vlgmr.msra.gmra.mrb[78].mxu1 %vm324_vm6, %v6636_v56 }
0x32b2   :  { %8171 = vmatprep.mubr.msk.f32.mxu1 %vm8742_vm5, %v8741_v46 }
0x337c   :  { %v6477_v50 = vpop.f32.mrb[62].mxu0 }
0x337d   :  { %v8148_v32 = vpop.f32.mrb[63].mxu0 }
0x3380   :  { %v6553_v37 = vpop.f32.mrb[76].mxu1  ;;  %v6631_v59 = vpop.f32.mrb[64].mxu0 }
0x3381   :  { %v6713_v60 = vmul.f32 0.35355338, %v6631_v59  ;;  %v8153_v2 = vpop.f32.mrb[77].mxu1  ;;  %v8158_v10 = vpop.f32.mrb[65].mxu0 }
0x3383   :  { %v6715_v47 = vadd.f32 %v6713_v60, %v9269_v0 }
0x3384   :  { %v6709_v49 = vpop.f32.mrb[78].mxu1 }
0x3385   :  { %v6714_v30 = vmul.f32 0.35355338, %v6709_v49  ;;  %v8163_v11 = vpop.f32.mrb[79].mxu1  ;;  %v6717_v7 = vsel %vm324_vm6, %v6715_v47, -inf }
0x3386   :  { %6718 = vmax.xlane.f32.xlu0 %v6717_v7  ;;  %v7060_v11 = vld [vmem:[#allocation12 + $0x28] sm:$0xff]  ;;  %v7061_v7 = vld [vmem:[#allocation12 + $0x30] sm:$0xff] }
0x3387   :  { %v6716_v12 = vadd.f32 %v6714_v30, %v9273_v3  ;;  %v7059_v30 = vld [vmem:[#allocation12 + $0x20] sm:$0xff] }
0x3389   :  { %v6720_v9 = vsel %vm324_vm6, %v6716_v12, -inf }
0x338a   :  { %6721 = vmax.xlane.f32.xlu1 %v6720_v9  ;;  %v7062_v9 = vld [vmem:[#allocation12 + $0x38] sm:$0xff] }
0x339b   :  { %6815 = vrot.lane.b32.xlu1 %v9738_v1, %s8751_s18 }
0x339f   :  { %6893 = vrot.lane.b32.xlu1 %v9839_v51, %s8735_s29 }
0x33a3   :  { %6895 = vrot.lane.b32.xlu1 %v9841_v62, %s8735_s29 }
0x33a7   :  { %6903 = vrot.lane.b32.xlu1 %v6553_v37, %s10033_s10 }
0x3413   :  { %v6719_v46 = vpop.xlane.xlu0 %6718 }
0x3414   :  { %v6723_v0 = vsub.f32 %v6715_v47, %v6719_v46  ;;  %v8323_v46 = vpack.c.bf16 %v7062_v9, %v7061_v7 }
0x3416   :  { %v6725_v13 = vmul.f32 1.442695, %v6723_v0  ;;  %v7491_v0 = vld [vmem:[%s10004_s16 + $0x40] sm:$0xff] }
0x3417   :  { %v6722_v15 = vpop.xlane.xlu1 %6721 }
0x3418   :  { %8528 = vpow2.f32 %v6725_v13  ;;  %v6724_v3 = vsub.f32 %v6716_v12, %v6722_v15  ;;  %v8319_v12 = vpack.c.bf16 %v7060_v11, %v7059_v30  ;;  %v7492_v13 = vld [vmem:[%s10004_s16 + $0x48] sm:$0xff]  ;;  %v7493_v15 = vld [vmem:[%s10004_s16 + $0x50] sm:$0xff] }
0x341a   :  { %v6727_v17 = vmul.f32 1.442695, %v6724_v3  ;;  %v8327_v3 = vpack.c.bf16 %v7492_v13, %v7491_v0 }
0x341b   :  { %v6816_v57 = vpop.permute.xlu1 %6815 }
0x341c   :  { %8530 = vpow2.f32 %v6727_v17  ;;  %8170 = vmatpush3.msra.mxu1 %v6816_v57  ;;  %v7494_v17 = vld [vmem:[%s10004_s16 + $0x58] sm:$0xff] }
0x341d   :  { %8320 = vmatprep.subr.bf16.mxu1 %v8319_v12  ;;  %v8331_v57 = vpack.c.bf16 %v7494_v17, %v7493_v15 }
0x341f   :  { %v6894_v29 = vpop.permute.xlu1 %6893 }
0x3420   :  { %v6915_v36 = vsel %vm324_vm6, %v9799_v31, %v6894_v29  ;;  %v7482_v31 = vld [vmem:[%s10001_s13 + $0x1] ss:$0 sm:$0xff] }
0x3422   :  { %v8529_v18 = vpop.eup %8528 }
0x3423   :  { %v6729_v1 = vsel %vm324_vm6, %v8529_v18, 0.0  ;;  %v6896_v43 = vpop.permute.xlu1 %6895 }
0x3424   :  { %6730 = vadd.xlane.f32.xlu0 %v6729_v1  ;;  %v6916_v41 = vsel %vm324_vm6, %v9801_v33, %v6896_v43  ;;  %v7496_v1 = vld [vmem:[%s10004_s16 + $0x68] sm:$0xff]  ;;  %v7055_v43 = vstv %s7486_s27 }
0x3426   :  { %v8531_v51 = vpop.eup %8530 }
0x3427   :  { %v6732_v61 = vsel %vm324_vm6, %v8531_v51, 0.0  ;;  %v6904_v38 = vpop.permute.xlu1 %6903 }
0x3428   :  { %6733 = vadd.xlane.f32.xlu0 %v6732_v61  ;;  %v6918_v42 = vsel %vm1682_vm10, %v6916_v41, %v6904_v38  ;;  %v7497_v41 = vld [vmem:[%s10004_s16 + $0x70] sm:$0xff] }
0x343e   :  { %6739 = vrot.lane.b32.xlu0 %v9740_v58, %s8751_s18  ;;  %v5555_v58 = vld [vmem:[#allocation11 + $0x30] sm:$0xff] }
0x343f   :  { %v8315_v24 = vpack.c.bf16 %v5556_v23, %v5555_v58 }
0x3442   :  { %6901 = vrot.lane.b32.xlu0 %v6477_v50, %s10033_s10 }
0x34b1   :  { %v6731_v62 = vpop.xlane.xlu0 %6730 }
0x34b2   :  { %8532 = vrcp.f32 %v6731_v62 }
0x34b5   :  { %v6734_v19 = vpop.xlane.xlu0 %6733 }
0x34b6   :  { %8534 = vrcp.f32 %v6734_v19 }
0x34b9   :  { %v6740_v14 = vpop.permute.xlu0 %6739 }
0x34ba   :  { %8165 = vmatpush3.msra.mxu0 %v6740_v14 }
0x34bb   :  { %8312 = vmatprep.subr.bf16.mxu0 %v8311_v22 }
0x34bc   :  { %v8533_v20 = vpop.eup %8532 }
0x34bd   :  { %v6737_v63 = vmul.f32 %v8533_v20, %v8529_v18  ;;  %v6902_v35 = vpop.permute.xlu0 %6901  ;;  %v7495_v18 = vld [vmem:[%s10004_s16 + $0x60] sm:$0xff] }
0x34be   :  { %v6917_v40 = vsel %vm1682_vm10, %v6915_v36, %v6902_v35 }
0x34bf   :  { %8167 = vmatmul.mubr.msk.f32.vlgmr.msra.gmra.mrb[66].mxu0 %vm324_vm6, %v6737_v63 }
0x34c0   :  { %v8535_v34 = vpop.eup %8534  ;;  %8314 = vmatpush3.bf16.msra.mxu0 %v8311_v22 }
0x34c1   :  { %v6738_v16 = vmul.f32 %v8535_v34, %v8531_v51  ;;  %8316 = vmatprep.subr.bf16.mxu0 %v8315_v24  ;;  %v8335_v51 = vpack.c.bf16 %v7496_v1, %v7495_v18 }
0x34c3   :  { %8172 = vmatmul.mubr.msk.f32.vlgmr.msra.gmra.mrb[80].mxu1 %vm324_vm6, %v6738_v16 }
0x34c4   :  { %8318 = vmatpush3.bf16.msra.mxu0 %v8315_v24  ;;  %8322 = vmatpush3.bf16.msra.mxu1 %v8319_v12 }
0x34c5   :  { %8324 = vmatprep.subr.bf16.mxu1 %v8323_v46  ;;  %8328 = vmatprep.subr.bf16.mxu0 %v8327_v3 }
0x34c8   :  { %8326 = vmatpush3.bf16.msra.mxu1 %v8323_v46 }
0x3592   :  { %v6811_v25 = vpop.f32.mrb[66].mxu0 }
0x3593   :  { %6909 = vrot.lane.b32.xlu0 %v6811_v25, %s10034_s4  ;;  %v8168_v26 = vpop.f32.mrb[67].mxu0 }
0x3596   :  { %v6887_v4 = vpop.f32.mrb[80].mxu1 }
0x3597   :  { %6911 = vrot.lane.b32.xlu1 %v6887_v4, %s10034_s4  ;;  %v8173_v27 = vpop.f32.mrb[81].mxu1  ;;  %v7032_v4 = vstv %s7485_s25 }
0x3605   :  { %v6910_v8 = vpop.permute.xlu0 %6909 }
0x3606   :  { %v6919_v52 = vsel %vm1685_vm9, %v6917_v40, %v6910_v8 }
0x3607   :  { %8182 = vmatprep.mubr.msk.f32.mxu0 %vm176_vm0, %v6919_v52 }
0x3609   :  { %v6912_v44 = vpop.permute.xlu1 %6911 }
0x360a   :  { %v6920_v45 = vsel %vm1685_vm9, %v6918_v42, %v6912_v44  ;;  %v7498_v42 = vld [vmem:[%s10004_s16 + $0x78] sm:$0xff] }
0x360b   :  { %8183 = vmatmul.mubr.msk.f32.vlgmr.msra.gmra.mrb[68].mxu0 %vm176_vm0, %v6920_v45  ;;  %v8339_v44 = vpack.c.bf16 %v7498_v42, %v7497_v41  ;;  %v7488_v45 = vld [vmem:[%s10003_s15 + $0x1] ss:$0 sm:$0xff]  ;;  %s7503_s15 = sld [smem:[#allocation14 + $0xc]] }
0x360c   :  { %8330 = vmatpush3.bf16.msra.mxu0 %v8327_v3 }
0x360d   :  { %8332 = vmatprep.subr.bf16.mxu0 %v8331_v57 }
0x3610   :  { %8334 = vmatpush3.bf16.msra.mxu0 %v8331_v57 }
0x3611   :  { %8336 = vmatprep.subr.bf16.mxu0 %v8335_v51 }
0x3614   :  { %8338 = vmatpush3.bf16.msra.mxu0 %v8335_v51 }
0x3615   :  { %8340 = vmatprep.subr.bf16.mxu0 %v8339_v44 }
0x3618   :  { %8342 = vmatpush3.bf16.msra.mxu0 %v8339_v44 }
0x36de   :  { %v8184_v48 = vpop.f32.mrb[68].mxu0 }
0x36df   :  { %v7005_v53 = vadd.f32 %v8184_v48, %v7482_v31  ;;  %v6999_v54 = vpop.f32.mrb[69].mxu0 }
0x36e0   :  { %v7000_v55 = vadd.f32 %v7482_v31, %v6999_v54 }
0x36e1   :  { %v9913_v6 = vadd.f32 %v7005_v53, %v9696_v39 }
0x36e2   :  { %v9916_v33 = vadd.f32 %v7000_v55, %v9699_v5 }
0x36e3   :  { %v7015_v56 = vsel %vm176_vm0, %v9913_v6, 0.0 }
0x36e4   :  { %7016 = vadd.xlane.f32.xlu1 %v7015_v56  ;;  %v7012_v50 = vsel %vm176_vm0, %v9916_v33, 0.0 }
0x36e5   :  { %7013 = vadd.xlane.f32.xlu0 %v7012_v50 }
0x3771   :  { %v7017_v32 = vpop.xlane.xlu1 %7016 }
0x3772   :  { %v7019_v37 = vmul.f32 0.03125, %v7017_v32  ;;  %v7014_v59 = vpop.xlane.xlu0 %7013  ;;  %v7502_v32 = vld [vmem:[%s10031_s20 + $0x1] ss:$0 sm:$0xff]  ;;  %s7504_s20 = sld [smem:[#allocation14 + $0xd]] }
0x3773   :  { %v7018_v60 = vmul.f32 0.03125, %v7014_v59 }
0x3774   :  { %v9923_v2 = vsub.f32 %v9913_v6, %v7019_v37 }
0x3775   :  { %v7020_v39 = vsub.f32 %v9916_v33, %v7018_v60 }
0x3776   :  { %v7023_v47 = vmul.f32 %v9923_v2, %v9923_v2  ;;  %v7034_v36 = vmul.f32 %v7032_v4, %v9923_v2 }
0x3777   :  { %v7022_v10 = vmul.f32 %v7020_v39, %v7020_v39  ;;  %v7033_v27 = vmul.f32 %v7032_v4, %v7020_v39 }
0x3778   :  { %v7027_v49 = vsel %vm176_vm0, %v7023_v47, 0.0 }
0x3779   :  { %v7024_v5 = vsel %vm176_vm0, %v7022_v10, 0.0 }
0x377a   :  { %7025 = vadd.xlane.f32.xlu0 %v7024_v5 }
0x377e   :  { %7028 = vadd.xlane.f32.xlu0 %v7027_v49 }
0x3807   :  { %v7026_v61 = vpop.xlane.xlu0 %7025 }
0x3808   :  { %v7030_v62 = vmul.f32 0.032258064, %v7026_v61 }
0x380a   :  { %8536 = vrsqrt.f32 %v7030_v62  ;;  %vm7037_vm5 = vcmp.eq.f32.partialorder %v7030_v62, inf  ;;  %v7040_v34 = vand.u32 2147483648, %v7030_v62  ;;  %vm7039_vm6 = vcmp.eq.f32.partialorder %v7030_v62, 0.0 }
0x380b   :  { %v7029_v19 = vpop.xlane.xlu0 %7028 }
0x380c   :  { %v7031_v14 = vmul.f32 0.032258064, %v7029_v19 }
0x380e   :  { %8538 = vrsqrt.f32 %v7031_v14  ;;  %vm7044_vm9 = vcmp.eq.f32.partialorder %v7031_v14, inf  ;;  %v7047_v23 = vand.u32 2147483648, %v7031_v14  ;;  %vm7046_vm10 = vcmp.eq.f32.partialorder %v7031_v14, 0.0 }
0x3814   :  { %v8537_v20 = vpop.eup %8536 }
0x3815   :  { %v7036_v63 = vmul.f32 %v8537_v20, %v7030_v62 }
0x3817   :  { %v7038_v16 = vsel %vm7037_vm5, %v7030_v62, %v7036_v63 }
0x3818   :  { %v8539_v28 = vpop.eup %8538  ;;  %v7041_v21 = vsel %vm7039_vm6, %v7040_v34, %v7038_v16  ;;  %v7278_v16 = vstv %s7503_s15 }
0x3819   :  { %v7043_v22 = vmul.f32 %v8539_v28, %v7031_v14  ;;  %v7049_v58 = vadd.f32 1e-06, %v7041_v21 }
0x381b   :  { %v7045_v24 = vsel %vm7044_vm9, %v7031_v14, %v7043_v22  ;;  %8540 = vrcp.f32 %v7049_v58  ;;  %v7301_v58 = vstv %s7504_s20 }
0x381c   :  { %v7048_v25 = vsel %vm7046_vm10, %v7047_v23, %v7045_v24 }
0x381d   :  { %v7050_v26 = vadd.f32 1e-06, %v7048_v25 }
0x381f   :  { %8542 = vrcp.f32 %v7050_v26 }
0x3825   :  { %v8541_v29 = vpop.eup %8540 }
0x3826   :  { %v7052_v35 = vmul.f32 %v8541_v29, %v7033_v27 }
0x3828   :  { %v7056_v38 = vadd.f32 %v7055_v43, %v7052_v35 }
0x3829   :  { %v8543_v40 = vpop.eup %8542 }
0x382a   :  { %v7054_v8 = vmul.f32 %v8543_v40, %v7034_v36  ;;  %8193 = vmatprep.mubr.msk.f32.mxu1 %vm176_vm0, %v7056_v38 }
0x382c   :  { %v7057_v52 = vadd.f32 %v7055_v43, %v7054_v8 }
0x382e   :  { %8194 = vmatmul.mubr.msk.f32.vlgmr.msra.gmra.mrb[82].mxu1 %vm176_vm0, %v7057_v52 }
0x3901   :  { %v8195_v31 = vpop.f32.mrb[82].mxu1 }
0x3902   :  { %v7149_v48 = vadd.f32 %v8195_v31, %v7488_v45  ;;  %v7143_v53 = vpop.f32.mrb[83].mxu1 }
0x3903   :  { %v7144_v54 = vadd.f32 %v7488_v45, %v7143_v53 }
0x3904   :  { %v7153_v56 = vmax.f32 %v7149_v48, 0.0 }
0x3905   :  { %v7152_v55 = vmax.f32 %v7144_v54, 0.0 }
0x3907   :  { %8212 = vmatprep.mubr.msk.f32.mxu0 %vm3627_vm8, %v7152_v55 }
0x3908   :  { %8213 = vmatmul.mubr.msk.f32.vlgmr.msra.gmra.mrb[70].mxu0 %vm3627_vm8, %v7153_v56 }
0x39db   :  { %v8214_v50 = vpop.f32.mrb[70].mxu0 }
0x39dc   :  { %v7245_v37 = vadd.f32 %v8214_v50, %v9913_v6  ;;  %v7235_v59 = vpop.f32.mrb[71].mxu0 }
0x39dd   :  { %v7244_v60 = vadd.f32 %v7235_v59, %v9916_v33 }
0x39de   :  { %v7255_v2 = vadd.f32 %v7502_v32, %v7245_v37 }
0x39df   :  { %v7254_v39 = vadd.f32 %v7502_v32, %v7244_v60 }
0x39e0   :  { %v7261_v10 = vsel %vm176_vm0, %v7255_v2, 0.0 }
0x39e1   :  { %7262 = vadd.xlane.f32.xlu1 %v7261_v10  ;;  %v7258_v5 = vsel %vm176_vm0, %v7254_v39, 0.0 }
0x39e2   :  { %7259 = vadd.xlane.f32.xlu0 %v7258_v5 }
0x3a6e   :  { %v7263_v47 = vpop.xlane.xlu1 %7262 }
0x3a6f   :  { %v7265_v49 = vmul.f32 0.03125, %v7263_v47  ;;  %v7260_v30 = vpop.xlane.xlu0 %7259 }
0x3a70   :  { %v7264_v11 = vmul.f32 0.03125, %v7260_v30 }
0x3a71   :  { %v7267_v7 = vsub.f32 %v7255_v2, %v7265_v49 }
0x3a72   :  { %v7266_v12 = vsub.f32 %v7254_v39, %v7264_v11 }
0x3a73   :  { %v7269_v9 = vmul.f32 %v7267_v7, %v7267_v7  ;;  %v7280_v28 = vmul.f32 %v7278_v16, %v7267_v7 }
0x3a74   :  { %v7268_v46 = vmul.f32 %v7266_v12, %v7266_v12  ;;  %v7279_v22 = vmul.f32 %v7278_v16, %v7266_v12 }
0x3a75   :  { %v7273_v6 = vsel %vm176_vm0, %v7269_v9, 0.0 }
0x3a76   :  { %7274 = vadd.xlane.f32.xlu1 %v7273_v6  ;;  %v7270_v33 = vsel %vm176_vm0, %v7268_v46, 0.0 }
0x3a77   :  { %7271 = vadd.xlane.f32.xlu0 %v7270_v33 }
0x3b03   :  { %v7275_v0 = vpop.xlane.xlu1 %7274 }
0x3b04   :  { %v7277_v13 = vmul.f32 0.032258064, %v7275_v0  ;;  %v7272_v15 = vpop.xlane.xlu0 %7271 }
0x3b05   :  { %v7276_v3 = vmul.f32 0.032258064, %v7272_v15 }
0x3b06   :  { %8544 = vrsqrt.f32 %v7277_v13  ;;  %vm7290_vm4 = vcmp.eq.f32.partialorder %v7277_v13, inf  ;;  %v7293_v1 = vand.u32 2147483648, %v7277_v13  ;;  %vm7292_vm7 = vcmp.eq.f32.partialorder %v7277_v13, 0.0 }
0x3b07   :  { %8546 = vrsqrt.f32 %v7276_v3  ;;  %vm7283_vm8 = vcmp.eq.f32.partialorder %v7276_v3, inf  ;;  %v7286_v62 = vand.u32 2147483648, %v7276_v3  ;;  %vm7285_vm11 = vcmp.eq.f32.partialorder %v7276_v3, 0.0 }
0x3b10   :  { %v8545_v17 = vpop.eup %8544 }
0x3b11   :  { %v8547_v57 = vpop.eup %8546  ;;  %v7289_v18 = vmul.f32 %v8545_v17, %v7277_v13 }
0x3b12   :  { %v7282_v51 = vmul.f32 %v8547_v57, %v7276_v3 }
0x3b13   :  { %v7291_v61 = vsel %vm7290_vm4, %v7277_v13, %v7289_v18 }
0x3b14   :  { %v7284_v19 = vsel %vm7283_vm8, %v7276_v3, %v7282_v51  ;;  %v7294_v14 = vsel %vm7292_vm7, %v7293_v1, %v7291_v61 }
0x3b15   :  { %v7287_v20 = vsel %vm7285_vm11, %v7286_v62, %v7284_v19  ;;  %v7296_v63 = vadd.f32 1e-06, %v7294_v14 }
0x3b16   :  { %v7295_v34 = vadd.f32 1e-06, %v7287_v20 }
0x3b17   :  { %8548 = vrcp.f32 %v7296_v63 }
0x3b18   :  { %8550 = vrcp.f32 %v7295_v34 }
0x3b21   :  { %v8549_v21 = vpop.eup %8548 }
0x3b22   :  { %v8551_v23 = vpop.eup %8550  ;;  %v7300_v24 = vmul.f32 %v8549_v21, %v7280_v28 }
0x3b23   :  { %v7298_v25 = vmul.f32 %v8551_v23, %v7279_v22 }
0x3b24   :  { %v7303_v26 = vadd.f32 %v7301_v58, %v7300_v24 }
0x3b25   :  { %v7302_v4 = vadd.f32 %v7301_v58, %v7298_v25 }
0x3b26   :  { %7305 = vst.msk [vmem:[#allocation15 + $0x8] sm:$0xff] %vm176_vm0, %v7303_v26 }
0x3b27   :  { %7304 = vst.msk [vmem:[#allocation15] sm:$0xff] %vm176_vm0, %v7302_v4 }
0x3b28   :  { %8709 = shalt.err (!%p8706_p1)
}
0x3b29   :  { %s10035_s11 = sld [smem:[#allocation27_spill]] }
0x3b2f   :  { %s8710_s13 = scalar_lea.hbm %s10035_s11, 256 }
0x3b30   :  { %p8711_p2 = scmp.ne.s32.totalorder %s10035_s11, %s8710_s13  ;;  %p8714_p3 = scmp.lt.u32.totalorder %s8710_s13, %s10035_s11 }
0x3b32   :  { %p8716_p4 = pnand %p8714_p3, %p8711_p2 }
0x3b34   :  { %8719 = shalt.err (!%p8716_p4)
}
0x3b35   :  { %s10036_s17 = smov 128  }
0x3b36   :  { %7317 = dma.vmem_to_hbm [thread:$0]  %s7312_s19, 256, %s10035_s11, [#allocation4], %s10036_s17, %s10036_s17, %s8735_s29  }
0x3b37   :  { %8730 = dma.done.wait [#allocation4], 256  }
0x3b38   :  { %8731 = vsyncadd [#allocation4], 4294967040 }
0x3b39   :  { %7321 = vsyncpa [#allocation3], 1 }
0x3b3a   :  { %7322 = vsyncpa [#allocation7], 1 }
0x3b3b   :  { %7323 = vsyncpa [#allocation10], 1 }
0x3b3c   :  { %7324 = vsyncpa [#allocation13], 1 }
0x3b3d   :  { %7325 = vsyncpa [#allocation4], 1 }
0x3b3e   :  { %7326 = vsyncpa [#allocation5], 1 }

</bundles_post_ra>
